<compile_context>
chip_gen: v5e
topology: v5e:2x2
jax: 0.10.0
libtpu: 0.0.40
codegen_flags: <defaults>
</compile_context>

<pallas_src>
import functools
import math

import jax
import jax.numpy as jnp
from jax.experimental import pallas as pl
from jax.experimental.pallas import tpu as pltpu

LRELU_SLOPE = 0.2

# ----- synthetic config (config.*) -----
MLP_DIMS = (1024, 512, 256)   # config.mlp_dims (dims[0] == flattened input size)
OUT_DIM = 8                   # out_dim


def _round_up(x, m):
    return -(-x // m) * m


# ======================================================================
# Fused whole-MLP Pallas kernel
# ======================================================================
def _mlp_kernel(*refs, n_layers, acts):
    """refs = (x_ref, w0_ref, b0_ref, ..., w{n-1}_ref, b{n-1}_ref, o_ref).

    x_ref : (tm, D0p)  f32  (cast to bf16 in-kernel)
    wi_ref: (Kip, Nip) bf16 (pre-transposed to (in,out), tile-padded)
    bi_ref: (1,  Nip)  bf16
    o_ref : (tm, Nlast_p) f32
    """
    x_ref, o_ref = refs[0], refs[-1]
    h = x_ref[...].astype(jnp.bfloat16)          # in-kernel cast (spare VPU slots)
    for i in range(n_layers):
        w = refs[1 + 2 * i][...]                 # bf16 weight tile (full K, full N)
        b = refs[2 + 2 * i][...]                 # bf16 bias row
        y = jnp.dot(h, w, preferred_element_type=jnp.float32)   # MXU, f32 acc
        if i == n_layers - 1:
            # Final layer: keep the f32 accumulator for bias add + store.
            y = y + b.astype(jnp.float32)
            if acts[i] == 'lrelu':
                y = jnp.maximum(y, LRELU_SLOPE * y)
            o_ref[...] = y.astype(o_ref.dtype)
        else:
            # bf16 epilogue: repack immediately, bias + lrelu in bf16.
            h = y.astype(jnp.bfloat16) + b
            if acts[i] == 'lrelu':
                h = jnp.maximum(h, LRELU_SLOPE * h)


@functools.partial(
    jax.jit, static_argnames=('acts', 'in_dim', 'out_dim', 'single_buffer'))
def _mlp_forward_impl(x, weights, biases, *, acts, in_dim, out_dim, single_buffer):
    B = x.shape[0]
    xf = x.reshape(B, -1)
    assert xf.shape[1] == in_dim, (xf.shape, in_dim)

    n_layers = len(weights)
    D0p = weights[0].shape[0]
    Np_last = weights[-1].shape[1]

    # Row-tile selection: a single tile for small B; large tiles for big B so
    # the ~0.35us per-grid-step overhead is amortized (perf feedback).
    if B <= 128:
        tm = max(8, _round_up(B, 8))
        Mp = tm
    elif B < 384:
        tm = 256
        Mp = _round_up(B, tm)
    else:
        tm = 512
        Mp = _round_up(B, tm)

    # Keep x in its original dtype; pad only when shapes require it.  The bf16
    # cast happens inside the kernel, avoiding an extra HBM round trip.
    if Mp != B or D0p != in_dim:
        xin = jnp.zeros((Mp, D0p), xf.dtype).at[:B, :in_dim].set(xf)
    else:
        xin = xf

    # Constant index_map -> each weight/bias is fetched exactly once; single
    # buffering halves their VMEM footprint.
    wb_kwargs = dict(pipeline_mode=pl.Buffered(1)) if single_buffer else {}

    in_specs = [pl.BlockSpec((tm, D0p), lambda i: (i, 0))]
    args = [xin]
    for w, b in zip(weights, biases):
        Kp, Npd = w.shape
        in_specs.append(pl.BlockSpec((Kp, Npd), lambda i: (0, 0), **wb_kwargs))
        in_specs.append(pl.BlockSpec((1, Npd), lambda i: (0, 0), **wb_kwargs))
        args.append(w)
        args.append(b)

    out = pl.pallas_call(
        functools.partial(_mlp_kernel, n_layers=n_layers, acts=acts),
        out_shape=jax.ShapeDtypeStruct((Mp, Np_last), jnp.float32),
        grid_spec=pltpu.PrefetchScalarGridSpec(
            num_scalar_prefetch=0,
            grid=(Mp // tm,),
            in_specs=in_specs,
            out_specs=pl.BlockSpec((tm, Np_last), lambda i: (i, 0)),
        ),
        compiler_params=pltpu.CompilerParams(
            dimension_semantics=("parallel",),
            vmem_limit_bytes=32 * 1024 * 1024,
        ),
    )(*args)
    return out[:B, :out_dim]


def mlp_forward(x, weights, biases, *, acts, in_dim, out_dim):
    """Fused MLP forward.  Tries single-buffered weight specs first (perf
    feedback); falls back to default double-buffering if pl.Buffered(1) is
    rejected by the installed JAX/Mosaic version."""
    try:
        out = _mlp_forward_impl(x, weights, biases, acts=acts, in_dim=in_dim,
                                out_dim=out_dim, single_buffer=True)
        return jax.block_until_ready(out)
    except Exception:
        out = _mlp_forward_impl(x, weights, biases, acts=acts, in_dim=in_dim,
                                out_dim=out_dim, single_buffer=False)
        return jax.block_until_ready(out)


# ======================================================================
# Parameter init (PyTorch nn.Linear default init), with one-time
# transpose / pad / bf16-cast of the weights and biases.
# ======================================================================
def init_params(key, mlp_dims, out_dim):
    dims = list(mlp_dims)
    layer_shapes = [(dims[i], dims[i + 1], 'lrelu') for i in range(len(dims) - 1)]
    layer_shapes.append((dims[-1], out_dim, 'none'))

    keys = jax.random.split(key, 2 * len(layer_shapes))
    weights, biases, acts, raw = [], [], [], []
    for li, (din, dout, act) in enumerate(layer_shapes):
        bound = 1.0 / math.sqrt(din)
        w = jax.random.uniform(keys[2 * li], (dout, din), jnp.float32, -bound, bound)
        b = jax.random.uniform(keys[2 * li + 1], (dout,), jnp.float32, -bound, bound)
        raw.append((w, b, act))

        Kp, Np = _round_up(din, 128), _round_up(dout, 128)
        wt = jnp.zeros((Kp, Np), jnp.float32).at[:din, :dout].set(w.T)
        bp = jnp.zeros((1, Np), jnp.float32).at[0, :dout].set(b)
        weights.append(wt.astype(jnp.bfloat16))   # pre-transposed, padded, bf16
        biases.append(bp.astype(jnp.bfloat16))    # bf16 bias (bf16 epilogue)
        acts.append(act)
    return tuple(weights), tuple(biases), tuple(acts), raw


def mlp_reference(x, raw):
    """Pure-JAX reference matching the PyTorch MLP forward (f32)."""
    h = x.reshape(x.shape[0], -1)
    for (w, b, act) in raw:
        h = h @ w.T + b
        if act == 'lrelu':
            h = jnp.where(h > 0, h, LRELU_SLOPE * h)
    return h


if __name__ == "__main__":
    key = jax.random.PRNGKey(0)
    pkey, xkey = jax.random.split(key)

    # x.view(B, -1) must equal mlp_dims[0]: (2, 4, 16, 16) -> (2, 1024)
    x = jax.random.normal(xkey, (2, 4, 16, 16), jnp.float32)

    weights, biases, acts, raw = init_params(pkey, MLP_DIMS, OUT_DIM)

    out = mlp_forward(x, weights, biases,
                      acts=acts, in_dim=MLP_DIMS[0], out_dim=OUT_DIM)
    out = jax.block_until_ready(out)

    assert out.shape == (2, OUT_DIM), out.shape
    assert bool(jnp.all(jnp.isfinite(out)))

    ref = mlp_reference(x, raw)
    max_err = float(jnp.max(jnp.abs(out - ref)))
    assert max_err < 5e-2, f"max abs error vs f32 reference: {max_err}"

    print("KERNEL_OK")
</pallas_src>

<mosaic_0001>
module attributes {stable_mosaic.version = 11 : i64} {
  func.func @_mlp_kernel(%arg0: i32, %arg1: memref<8x1024xf32, #tpu.memory_space<vmem>>, %arg2: memref<1024x512xbf16, #tpu.memory_space<vmem>>, %arg3: memref<1x512xbf16, #tpu.memory_space<vmem>>, %arg4: memref<512x256xbf16, #tpu.memory_space<vmem>>, %arg5: memref<1x256xbf16, #tpu.memory_space<vmem>>, %arg6: memref<256x128xbf16, #tpu.memory_space<vmem>>, %arg7: memref<1x128xbf16, #tpu.memory_space<vmem>>, %arg8: memref<8x128xf32, #tpu.memory_space<vmem>>) attributes {dimension_semantics = [#tpu.dimension_semantics<parallel>], iteration_bounds = array<i64: 1>, scalar_prefetch = 0 : i64, scratch_operands = 0 : i64, tpu.core_type = #tpu.core_type<tc>, window_params = [{transform_indices = @transform_0, window_bounds = array<i64: 8, 1024>}, {pipeline_mode = #tpu.pipeline_mode<synchronous>, transform_indices = @transform_1, window_bounds = array<i64: 1024, 512>}, {pipeline_mode = #tpu.pipeline_mode<synchronous>, transform_indices = @transform_2, window_bounds = array<i64: 1, 512>}, {pipeline_mode = #tpu.pipeline_mode<synchronous>, transform_indices = @transform_3, window_bounds = array<i64: 512, 256>}, {pipeline_mode = #tpu.pipeline_mode<synchronous>, transform_indices = @transform_4, window_bounds = array<i64: 1, 256>}, {pipeline_mode = #tpu.pipeline_mode<synchronous>, transform_indices = @transform_5, window_bounds = array<i64: 256, 128>}, {pipeline_mode = #tpu.pipeline_mode<synchronous>, transform_indices = @transform_6, window_bounds = array<i64: 1, 128>}, {transform_indices = @transform_7, window_bounds = array<i64: 8, 128>}]} {
    %c0 = arith.constant 0 : index
    %c0_0 = arith.constant 0 : index
    %0 = vector.load %arg1[%c0, %c0_0] : memref<8x1024xf32, #tpu.memory_space<vmem>>, vector<8x1024xf32>
    %1 = arith.truncf %0 : vector<8x1024xf32> to vector<8x1024xbf16>
    %c0_1 = arith.constant 0 : index
    %c0_2 = arith.constant 0 : index
    %2 = vector.load %arg2[%c0_1, %c0_2] : memref<1024x512xbf16, #tpu.memory_space<vmem>>, vector<1024x512xbf16>
    %c0_3 = arith.constant 0 : index
    %c0_4 = arith.constant 0 : index
    %3 = vector.load %arg3[%c0_3, %c0_4] : memref<1x512xbf16, #tpu.memory_space<vmem>>, vector<1x512xbf16>
    %cst = arith.constant dense<0.000000e+00> : vector<8x512xf32>
    %4 = tpu.matmul %1, %2, %cst {dimension_numbers = #tpu.dot_dimension_numbers<[1], [0], [0], [1], [0, 0, 1, 1], [], []>} : vector<8x1024xbf16>, vector<1024x512xbf16>, vector<8x512xf32> -> vector<8x512xf32>
    %5 = arith.truncf %4 : vector<8x512xf32> to vector<8x512xbf16>
    %6 = vector.broadcast %3 : vector<1x512xbf16> to vector<8x512xbf16>
    %7 = arith.addf %5, %6 : vector<8x512xbf16>
    %cst_5 = arith.constant 2.001950e-01 : bf16
    %8 = vector.broadcast %cst_5 : bf16 to vector<8x512xbf16>
    %9 = arith.mulf %8, %7 : vector<8x512xbf16>
    %10 = arith.maximumf %7, %9 : vector<8x512xbf16>
    %c0_6 = arith.constant 0 : index
    %c0_7 = arith.constant 0 : index
    %11 = vector.load %arg4[%c0_6, %c0_7] : memref<512x256xbf16, #tpu.memory_space<vmem>>, vector<512x256xbf16>
    %c0_8 = arith.constant 0 : index
    %c0_9 = arith.constant 0 : index
    %12 = vector.load %arg5[%c0_8, %c0_9] : memref<1x256xbf16, #tpu.memory_space<vmem>>, vector<1x256xbf16>
    %cst_10 = arith.constant dense<0.000000e+00> : vector<8x256xf32>
    %13 = tpu.matmul %10, %11, %cst_10 {dimension_numbers = #tpu.dot_dimension_numbers<[1], [0], [0], [1], [0, 0, 1, 1], [], []>} : vector<8x512xbf16>, vector<512x256xbf16>, vector<8x256xf32> -> vector<8x256xf32>
    %14 = arith.truncf %13 : vector<8x256xf32> to vector<8x256xbf16>
    %15 = vector.broadcast %12 : vector<1x256xbf16> to vector<8x256xbf16>
    %16 = arith.addf %14, %15 : vector<8x256xbf16>
    %cst_11 = arith.constant 2.001950e-01 : bf16
    %17 = vector.broadcast %cst_11 : bf16 to vector<8x256xbf16>
    %18 = arith.mulf %17, %16 : vector<8x256xbf16>
    %19 = arith.maximumf %16, %18 : vector<8x256xbf16>
    %c0_12 = arith.constant 0 : index
    %c0_13 = arith.constant 0 : index
    %20 = vector.load %arg6[%c0_12, %c0_13] : memref<256x128xbf16, #tpu.memory_space<vmem>>, vector<256x128xbf16>
    %c0_14 = arith.constant 0 : index
    %c0_15 = arith.constant 0 : index
    %21 = vector.load %arg7[%c0_14, %c0_15] : memref<1x128xbf16, #tpu.memory_space<vmem>>, vector<1x128xbf16>
    %cst_16 = arith.constant dense<0.000000e+00> : vector<8x128xf32>
    %22 = tpu.matmul %19, %20, %cst_16 {dimension_numbers = #tpu.dot_dimension_numbers<[1], [0], [0], [1], [0, 0, 1, 1], [], []>} : vector<8x256xbf16>, vector<256x128xbf16>, vector<8x128xf32> -> vector<8x128xf32>
    %23 = arith.extf %21 : vector<1x128xbf16> to vector<1x128xf32>
    %24 = vector.broadcast %23 : vector<1x128xf32> to vector<8x128xf32>
    %25 = arith.addf %22, %24 : vector<8x128xf32>
    %c0_17 = arith.constant 0 : index
    %c0_18 = arith.constant 0 : index
    %26 = vector.load %arg8[%c0_17, %c0_18] : memref<8x128xf32, #tpu.memory_space<vmem>>, vector<8x128xf32>
    tpu.vector_store %arg8[%c0_17, %c0_18], %25 {strides = array<i32>} : memref<8x128xf32, #tpu.memory_space<vmem>>, vector<8x128xf32>,
    return
  }
  func.func @transform_0(%arg0: i32) -> (i32, i32) {
    %c0_i32 = arith.constant 0 : i32
    %c0_i32_0 = arith.constant 0 : i32
    return %arg0, %c0_i32 : i32, i32
  }
  func.func @transform_1(%arg0: i32) -> (i32, i32) {
    %c0_i32 = arith.constant 0 : i32
    %c0_i32_0 = arith.constant 0 : i32
    %c0_i32_1 = arith.constant 0 : i32
    return %c0_i32, %c0_i32_0 : i32, i32
  }
  func.func @transform_2(%arg0: i32) -> (i32, i32) {
    %c0_i32 = arith.constant 0 : i32
    %c0_i32_0 = arith.constant 0 : i32
    %c0_i32_1 = arith.constant 0 : i32
    return %c0_i32, %c0_i32_0 : i32, i32
  }
  func.func @transform_3(%arg0: i32) -> (i32, i32) {
    %c0_i32 = arith.constant 0 : i32
    %c0_i32_0 = arith.constant 0 : i32
    %c0_i32_1 = arith.constant 0 : i32
    return %c0_i32, %c0_i32_0 : i32, i32
  }
  func.func @transform_4(%arg0: i32) -> (i32, i32) {
    %c0_i32 = arith.constant 0 : i32
    %c0_i32_0 = arith.constant 0 : i32
    %c0_i32_1 = arith.constant 0 : i32
    return %c0_i32, %c0_i32_0 : i32, i32
  }
  func.func @transform_5(%arg0: i32) -> (i32, i32) {
    %c0_i32 = arith.constant 0 : i32
    %c0_i32_0 = arith.constant 0 : i32
    %c0_i32_1 = arith.constant 0 : i32
    return %c0_i32, %c0_i32_0 : i32, i32
  }
  func.func @transform_6(%arg0: i32) -> (i32, i32) {
    %c0_i32 = arith.constant 0 : i32
    %c0_i32_0 = arith.constant 0 : i32
    %c0_i32_1 = arith.constant 0 : i32
    return %c0_i32, %c0_i32_0 : i32, i32
  }
  func.func @transform_7(%arg0: i32) -> (i32, i32) {
    %c0_i32 = arith.constant 0 : i32
    %c0_i32_0 = arith.constant 0 : i32
    return %arg0, %c0_i32 : i32, i32
  }
}

module attributes {stable_mosaic.version = 11 : i64} {
  func.func @_mlp_kernel(%arg0: i32, %arg1: memref<8x1024xf32, #tpu.memory_space<vmem>>, %arg2: memref<1024x512xbf16, #tpu.memory_space<vmem>>, %arg3: memref<1x512xbf16, #tpu.memory_space<vmem>>, %arg4: memref<512x256xbf16, #tpu.memory_space<vmem>>, %arg5: memref<1x256xbf16, #tpu.memory_space<vmem>>, %arg6: memref<256x128xbf16, #tpu.memory_space<vmem>>, %arg7: memref<1x128xbf16, #tpu.memory_space<vmem>>, %arg8: memref<8x128xf32, #tpu.memory_space<vmem>>) attributes {dimension_semantics = [#tpu.dimension_semantics<parallel>], iteration_bounds = array<i64: 1>, scalar_prefetch = 0 : i64, scratch_operands = 0 : i64, tpu.core_type = #tpu.core_type<tc>, window_params = [{transform_indices = @transform_0, window_bounds = array<i64: 8, 1024>}, {pipeline_mode = #tpu.pipeline_mode<synchronous>, transform_indices = @transform_1, window_bounds = array<i64: 1024, 512>}, {pipeline_mode = #tpu.pipeline_mode<synchronous>, transform_indices = @transform_2, window_bounds = array<i64: 1, 512>}, {pipeline_mode = #tpu.pipeline_mode<synchronous>, transform_indices = @transform_3, window_bounds = array<i64: 512, 256>}, {pipeline_mode = #tpu.pipeline_mode<synchronous>, transform_indices = @transform_4, window_bounds = array<i64: 1, 256>}, {pipeline_mode = #tpu.pipeline_mode<synchronous>, transform_indices = @transform_5, window_bounds = array<i64: 256, 128>}, {pipeline_mode = #tpu.pipeline_mode<synchronous>, transform_indices = @transform_6, window_bounds = array<i64: 1, 128>}, {transform_indices = @transform_7, window_bounds = array<i64: 8, 128>}]} {
    %c0 = arith.constant 0 : index
    %c0_0 = arith.constant 0 : index
    %0 = vector.load %arg1[%c0, %c0_0] : memref<8x1024xf32, #tpu.memory_space<vmem>>, vector<8x1024xf32>
    %1 = arith.truncf %0 : vector<8x1024xf32> to vector<8x1024xbf16>
    %c0_1 = arith.constant 0 : index
    %c0_2 = arith.constant 0 : index
    %2 = vector.load %arg2[%c0_1, %c0_2] : memref<1024x512xbf16, #tpu.memory_space<vmem>>, vector<1024x512xbf16>
    %c0_3 = arith.constant 0 : index
    %c0_4 = arith.constant 0 : index
    %3 = vector.load %arg3[%c0_3, %c0_4] : memref<1x512xbf16, #tpu.memory_space<vmem>>, vector<1x512xbf16>
    %cst = arith.constant dense<0.000000e+00> : vector<8x512xf32>
    %4 = tpu.matmul %1, %2, %cst {dimension_numbers = #tpu.dot_dimension_numbers<[1], [0], [0], [1], [0, 0, 1, 1], [], []>} : vector<8x1024xbf16>, vector<1024x512xbf16>, vector<8x512xf32> -> vector<8x512xf32>
    %5 = arith.truncf %4 : vector<8x512xf32> to vector<8x512xbf16>
    %6 = vector.broadcast %3 : vector<1x512xbf16> to vector<8x512xbf16>
    %7 = arith.addf %5, %6 : vector<8x512xbf16>
    %cst_5 = arith.constant 2.001950e-01 : bf16
    %8 = vector.broadcast %cst_5 : bf16 to vector<8x512xbf16>
    %9 = arith.mulf %8, %7 : vector<8x512xbf16>
    %10 = arith.maximumf %7, %9 : vector<8x512xbf16>
    %c0_6 = arith.constant 0 : index
    %c0_7 = arith.constant 0 : index
    %11 = vector.load %arg4[%c0_6, %c0_7] : memref<512x256xbf16, #tpu.memory_space<vmem>>, vector<512x256xbf16>
    %c0_8 = arith.constant 0 : index
    %c0_9 = arith.constant 0 : index
    %12 = vector.load %arg5[%c0_8, %c0_9] : memref<1x256xbf16, #tpu.memory_space<vmem>>, vector<1x256xbf16>
    %cst_10 = arith.constant dense<0.000000e+00> : vector<8x256xf32>
    %13 = tpu.matmul %10, %11, %cst_10 {dimension_numbers = #tpu.dot_dimension_numbers<[1], [0], [0], [1], [0, 0, 1, 1], [], []>} : vector<8x512xbf16>, vector<512x256xbf16>, vector<8x256xf32> -> vector<8x256xf32>
    %14 = arith.truncf %13 : vector<8x256xf32> to vector<8x256xbf16>
    %15 = vector.broadcast %12 : vector<1x256xbf16> to vector<8x256xbf16>
    %16 = arith.addf %14, %15 : vector<8x256xbf16>
    %cst_11 = arith.constant 2.001950e-01 : bf16
    %17 = vector.broadcast %cst_11 : bf16 to vector<8x256xbf16>
    %18 = arith.mulf %17, %16 : vector<8x256xbf16>
    %19 = arith.maximumf %16, %18 : vector<8x256xbf16>
    %c0_12 = arith.constant 0 : index
    %c0_13 = arith.constant 0 : index
    %20 = vector.load %arg6[%c0_12, %c0_13] : memref<256x128xbf16, #tpu.memory_space<vmem>>, vector<256x128xbf16>
    %c0_14 = arith.constant 0 : index
    %c0_15 = arith.constant 0 : index
    %21 = vector.load %arg7[%c0_14, %c0_15] : memref<1x128xbf16, #tpu.memory_space<vmem>>, vector<1x128xbf16>
    %cst_16 = arith.constant dense<0.000000e+00> : vector<8x128xf32>
    %22 = tpu.matmul %19, %20, %cst_16 {dimension_numbers = #tpu.dot_dimension_numbers<[1], [0], [0], [1], [0, 0, 1, 1], [], []>} : vector<8x256xbf16>, vector<256x128xbf16>, vector<8x128xf32> -> vector<8x128xf32>
    %23 = arith.extf %21 : vector<1x128xbf16> to vector<1x128xf32>
    %24 = vector.broadcast %23 : vector<1x128xf32> to vector<8x128xf32>
    %25 = arith.addf %22, %24 : vector<8x128xf32>
    %c0_17 = arith.constant 0 : index
    %c0_18 = arith.constant 0 : index
    %26 = vector.load %arg8[%c0_17, %c0_18] : memref<8x128xf32, #tpu.memory_space<vmem>>, vector<8x128xf32>
    tpu.vector_store %arg8[%c0_17, %c0_18], %25 {strides = array<i32>} : memref<8x128xf32, #tpu.memory_space<vmem>>, vector<8x128xf32>,
    return
  }
  func.func @transform_0(%arg0: i32) -> (i32, i32) {
    %c0_i32 = arith.constant 0 : i32
    %c0_i32_0 = arith.constant 0 : i32
    return %arg0, %c0_i32 : i32, i32
  }
  func.func @transform_1(%arg0: i32) -> (i32, i32) {
    %c0_i32 = arith.constant 0 : i32
    %c0_i32_0 = arith.constant 0 : i32
    %c0_i32_1 = arith.constant 0 : i32
    return %c0_i32, %c0_i32_0 : i32, i32
  }
  func.func @transform_2(%arg0: i32) -> (i32, i32) {
    %c0_i32 = arith.constant 0 : i32
    %c0_i32_0 = arith.constant 0 : i32
    %c0_i32_1 = arith.constant 0 : i32
    return %c0_i32, %c0_i32_0 : i32, i32
  }
  func.func @transform_3(%arg0: i32) -> (i32, i32) {
    %c0_i32 = arith.constant 0 : i32
    %c0_i32_0 = arith.constant 0 : i32
    %c0_i32_1 = arith.constant 0 : i32
    return %c0_i32, %c0_i32_0 : i32, i32
  }
  func.func @transform_4(%arg0: i32) -> (i32, i32) {
    %c0_i32 = arith.constant 0 : i32
    %c0_i32_0 = arith.constant 0 : i32
    %c0_i32_1 = arith.constant 0 : i32
    return %c0_i32, %c0_i32_0 : i32, i32
  }
  func.func @transform_5(%arg0: i32) -> (i32, i32) {
    %c0_i32 = arith.constant 0 : i32
    %c0_i32_0 = arith.constant 0 : i32
    %c0_i32_1 = arith.constant 0 : i32
    return %c0_i32, %c0_i32_0 : i32, i32
  }
  func.func @transform_6(%arg0: i32) -> (i32, i32) {
    %c0_i32 = arith.constant 0 : i32
    %c0_i32_0 = arith.constant 0 : i32
    %c0_i32_1 = arith.constant 0 : i32
    return %c0_i32, %c0_i32_0 : i32, i32
  }
  func.func @transform_7(%arg0: i32) -> (i32, i32) {
    %c0_i32 = arith.constant 0 : i32
    %c0_i32_0 = arith.constant 0 : i32
    return %arg0, %c0_i32 : i32, i32
  }
}

</mosaic_0001>

<bundles_post_ra>
// kernel: _mlp_forward_impl.1
= control target key start
LH: loop header
LB: loop body
LE: loop exit
PB: predicated region body
PF: predicated region fallthrough
CT: control target
= control target key end

     0   :  { %12 = vsyncpa [#allocation3], 0  ;;  %s4740_s0 = inlined_call_operand.vmem [shape: f32[8,1024], index: 0, kind: input, shape index: {}]   ;;  %s4741_s1 = inlined_call_operand.hbm [shape: bf16[1024,512], index: 1, kind: input, shape index: {}]   ;;  %s4742_s2 = inlined_call_operand.vmem [shape: bf16[1,512], index: 2, kind: input, shape index: {}]   ;;  %s4743_s3 = inlined_call_operand.hbm [shape: bf16[512,256], index: 3, kind: input, shape index: {}]   ;;  %s4744_s4 = inlined_call_operand.vmem [shape: bf16[1,256], index: 4, kind: input, shape index: {}]   ;;  %s4745_s5 = inlined_call_operand.vmem [shape: bf16[256,128], index: 5, kind: input, shape index: {}]   ;;  %s4746_s6 = inlined_call_operand.vmem [shape: bf16[1,128], index: 6, kind: input, shape index: {}]   ;;  %s4747_s7 = inlined_call_operand.vmem [shape: f32[8,128], index: 7, kind: output, shape index: {}]  }
   0x1   :  { %s20_s26 = sshll.u32 %s4741_s1, 4  ;;  %s21_s26 = int_to_ptr.hbm [resolvable:$true] %s20_s26 }
   0x2   :  { %13 = vsyncpa [#allocation5], 0  ;;  %s4503_s27 = smov [#allocation2]   ;;  %s35_s8 = sshll.u32 %s4743_s3, 4  ;;  %s36_s8 = int_to_ptr.hbm [resolvable:$true] %s35_s8 }
   0x3   :  { %s22_s28 = sshll.u32 %s4503_s27, 4  ;;  %s4504_s9 = smov 256   ;;  %s23_s28 = int_to_ptr.vmem [resolvable:$true] %s22_s28 }
   0x4   :  { %s4505_s10 = smov 16   ;;  %s4506_s11 = smov [#allocation4]  }
   0x5   :  { %28 = dma.hbm_to_vmem [thread:$0]  %s21_s26, 32768, %s23_s28, [#allocation3], %s4504_s9, %s4504_s9, %s4505_s10  }
   0x6   :  { %s37_s12 = sshll.u32 %s4506_s11, 4  ;;  %s4507_s13 = smov 128   ;;  %s38_s12 = int_to_ptr.vmem [resolvable:$true] %s37_s12 }
   0x7   :  { %s4508_s14 = smov 8  }
   0x8   :  { %43 = dma.hbm_to_vmem [thread:$0]  %s36_s8, 8192, %s38_s12, [#allocation5], %s4507_s13, %s4507_s13, %s4508_s14  }
   0x9   :  { %4499 = dma.done.wait [#allocation3], 32768  }
   0xa   :  { %4500 = vsyncadd [#allocation3], 4294934528 }
   0xb   :  { %4501 = dma.done.wait [#allocation5], 8192  }
   0xc   :  { %4502 = vsyncadd [#allocation5], 4294959104  ;;  %v2879_v0 = vld [vmem:[#allocation2 + $0xe0] sm:$0xf]  ;;  %v4139_v1 = vld [vmem:[#allocation2 + $0xec] sm:$0xf0] }
   0xd   :  { %v3007_v2 = vld [vmem:[#allocation2 + $0x1e0] sm:$0xf]  ;;  %v2880_v3 = vor.u32 %v4139_v1, %v2879_v0  ;;  %v4171_v4 = vld [vmem:[#allocation2 + $0x1ec] sm:$0xf0] }
   0xe   :  { %v3135_v5 = vld [vmem:[#allocation2 + $0x2e0] sm:$0xf]  ;;  %v4203_v6 = vld [vmem:[#allocation2 + $0x2ec] sm:$0xf0]  ;;  %v3008_v7 = vor.u32 %v4171_v4, %v3007_v2 }
   0xf   :  { %v3136_v8 = vor.u32 %v4203_v6, %v3135_v5  ;;  %v3263_v9 = vld [vmem:[#allocation2 + $0x3e0] sm:$0xf]  ;;  %v4235_v10 = vld [vmem:[#allocation2 + $0x3ec] sm:$0xf0]  ;;  %1611 = vmatpush.bf16.msra.mxu0 %v2880_v3 }
  0x10   :  { %v2863_v11 = vld [vmem:[#allocation2 + $0xc0] sm:$0xf]  ;;  %v3264_v12 = vor.u32 %v4235_v10, %v3263_v9  ;;  %v4135_v13 = vld [vmem:[#allocation2 + $0xcc] sm:$0xf0]  ;;  %1624 = vmatpush.bf16.msra.mxu1 %v3008_v7 }
  0x11   :  { %v2991_v14 = vld [vmem:[#allocation2 + $0x1c0] sm:$0xf]  ;;  %v4167_v15 = vld [vmem:[#allocation2 + $0x1cc] sm:$0xf0]  ;;  %1637 = vmatpush.bf16.msra.mxu2 %v3136_v8  ;;  %v2864_v16 = vor.u32 %v4135_v13, %v2863_v11 }
  0x12   :  { %v2992_v17 = vor.u32 %v4167_v15, %v2991_v14  ;;  %v3119_v18 = vld [vmem:[#allocation2 + $0x2c0] sm:$0xf]  ;;  %v4199_v19 = vld [vmem:[#allocation2 + $0x2cc] sm:$0xf0]  ;;  %1650 = vmatpush.bf16.msra.mxu3 %v3264_v12 }
  0x13   :  { %v3247_v20 = vld [vmem:[#allocation2 + $0x3c0] sm:$0xf]  ;;  %v3120_v21 = vor.u32 %v4199_v19, %v3119_v18  ;;  %v4231_v22 = vld [vmem:[#allocation2 + $0x3cc] sm:$0xf0]  ;;  %1612 = vmatpush.bf16.msra.mxu0 %v2864_v16 }
  0x14   :  { %v2847_v23 = vld [vmem:[#allocation2 + $0xa0] sm:$0xf]  ;;  %v4131_v24 = vld [vmem:[#allocation2 + $0xac] sm:$0xf0]  ;;  %v3248_v25 = vor.u32 %v4231_v22, %v3247_v20  ;;  %1625 = vmatpush.bf16.msra.mxu1 %v2992_v17 }
  0x15   :  { %v2975_v26 = vld [vmem:[#allocation2 + $0x1a0] sm:$0xf]  ;;  %v4163_v27 = vld [vmem:[#allocation2 + $0x1ac] sm:$0xf0]  ;;  %v2848_v29 = vor.u32 %v4131_v24, %v2847_v23  ;;  %1638 = vmatpush.bf16.msra.mxu2 %v3120_v21 }
  0x16   :  { %v3103_v28 = vld [vmem:[#allocation2 + $0x2a0] sm:$0xf]  ;;  %v4195_v30 = vld [vmem:[#allocation2 + $0x2ac] sm:$0xf0]  ;;  %v2976_v33 = vor.u32 %v4163_v27, %v2975_v26  ;;  %1651 = vmatpush.bf16.msra.mxu3 %v3248_v25 }
  0x17   :  { %v3231_v31 = vld [vmem:[#allocation2 + $0x3a0] sm:$0xf]  ;;  %v4227_v32 = vld [vmem:[#allocation2 + $0x3ac] sm:$0xf0]  ;;  %v3104_v34 = vor.u32 %v4195_v30, %v3103_v28  ;;  %1613 = vmatpush.bf16.msra.mxu0 %v2848_v29 }
  0x18   :  { %v2831_v35 = vld [vmem:[#allocation2 + $0x80] sm:$0xf]  ;;  %v4127_v36 = vld [vmem:[#allocation2 + $0x8c] sm:$0xf0]  ;;  %v3232_v38 = vor.u32 %v4227_v32, %v3231_v31  ;;  %1626 = vmatpush.bf16.msra.mxu1 %v2976_v33 }
  0x19   :  { %v2959_v37 = vld [vmem:[#allocation2 + $0x180] sm:$0xf]  ;;  %v4159_v39 = vld [vmem:[#allocation2 + $0x18c] sm:$0xf0]  ;;  %v2832_v44 = vor.u32 %v4127_v36, %v2831_v35  ;;  %1639 = vmatpush.bf16.msra.mxu2 %v3104_v34 }
  0x1a   :  { %v3087_v40 = vld [vmem:[#allocation2 + $0x280] sm:$0xf]  ;;  %v4191_v41 = vld [vmem:[#allocation2 + $0x28c] sm:$0xf0]  ;;  %v2960_v45 = vor.u32 %v4159_v39, %v2959_v37  ;;  %1652 = vmatpush.bf16.msra.mxu3 %v3232_v38 }
  0x1b   :  { %v3215_v42 = vld [vmem:[#allocation2 + $0x380] sm:$0xf]  ;;  %v4223_v43 = vld [vmem:[#allocation2 + $0x38c] sm:$0xf0]  ;;  %v3088_v46 = vor.u32 %v4191_v41, %v3087_v40  ;;  %1614 = vmatpush.bf16.msra.mxu0 %v2832_v44 }
  0x1c   :  { %v2815_v47 = vld [vmem:[#allocation2 + $0x60] sm:$0xf]  ;;  %v4123_v48 = vld [vmem:[#allocation2 + $0x6c] sm:$0xf0]  ;;  %v3216_v50 = vor.u32 %v4223_v43, %v3215_v42  ;;  %1627 = vmatpush.bf16.msra.mxu1 %v2960_v45 }
  0x1d   :  { %v2943_v49 = vld [vmem:[#allocation2 + $0x160] sm:$0xf]  ;;  %v4155_v51 = vld [vmem:[#allocation2 + $0x16c] sm:$0xf0]  ;;  %v2816_v56 = vor.u32 %v4123_v48, %v2815_v47  ;;  %1640 = vmatpush.bf16.msra.mxu2 %v3088_v46 }
  0x1e   :  { %v3071_v52 = vld [vmem:[#allocation2 + $0x260] sm:$0xf]  ;;  %v4187_v53 = vld [vmem:[#allocation2 + $0x26c] sm:$0xf0]  ;;  %v2944_v57 = vor.u32 %v4155_v51, %v2943_v49  ;;  %1653 = vmatpush.bf16.msra.mxu3 %v3216_v50 }
  0x1f   :  { %v3199_v54 = vld [vmem:[#allocation2 + $0x360] sm:$0xf]  ;;  %v4219_v55 = vld [vmem:[#allocation2 + $0x36c] sm:$0xf0]  ;;  %v3072_v58 = vor.u32 %v4187_v53, %v3071_v52  ;;  %1615 = vmatpush.bf16.msra.mxu0 %v2816_v56 }
  0x20   :  { %v2799_v59 = vld [vmem:[#allocation2 + $0x40] sm:$0xf]  ;;  %v4119_v60 = vld [vmem:[#allocation2 + $0x4c] sm:$0xf0]  ;;  %v3200_v62 = vor.u32 %v4219_v55, %v3199_v54  ;;  %1628 = vmatpush.bf16.msra.mxu1 %v2944_v57 }
  0x21   :  { %v2927_v61 = vld [vmem:[#allocation2 + $0x140] sm:$0xf]  ;;  %v4151_v63 = vld [vmem:[#allocation2 + $0x14c] sm:$0xf0]  ;;  %v2800_v4 = vor.u32 %v4119_v60, %v2799_v59  ;;  %1641 = vmatpush.bf16.msra.mxu2 %v3072_v58  ;;  %v60_v58 = vld [vmem:[%s4740_s0 + $0x10] sm:$0xff] }
  0x22   :  { %v3055_v0 = vld [vmem:[#allocation2 + $0x240] sm:$0xf]  ;;  %v4183_v1 = vld [vmem:[#allocation2 + $0x24c] sm:$0xf0]  ;;  %v2928_v5 = vor.u32 %v4151_v63, %v2927_v61  ;;  %1654 = vmatpush.bf16.msra.mxu3 %v3200_v62  ;;  %v4558_v63 = vpack.c.bf16 %v60_v58, %v60_v58 }
  0x23   :  { %v3183_v2 = vld [vmem:[#allocation2 + $0x340] sm:$0xf]  ;;  %v4215_v3 = vld [vmem:[#allocation2 + $0x34c] sm:$0xf0]  ;;  %v3056_v6 = vor.u32 %v4183_v1, %v3055_v0  ;;  %1616 = vmatpush.bf16.msra.mxu0 %v2800_v4 }
  0x24   :  { %v2783_v7 = vld [vmem:[#allocation2 + $0x20] sm:$0xf]  ;;  %v4115_v8 = vld [vmem:[#allocation2 + $0x2c] sm:$0xf0]  ;;  %v3184_v10 = vor.u32 %v4215_v3, %v3183_v2  ;;  %1629 = vmatpush.bf16.msra.mxu1 %v2928_v5  ;;  %v58_v5 = vld [vmem:[%s4740_s0] sm:$0xff] }
  0x25   :  { %v2911_v9 = vld [vmem:[#allocation2 + $0x120] sm:$0xf]  ;;  %v4147_v11 = vld [vmem:[#allocation2 + $0x12c] sm:$0xf0]  ;;  %v2784_v16 = vor.u32 %v4115_v8, %v2783_v7  ;;  %1642 = vmatpush.bf16.msra.mxu2 %v3056_v6 }
  0x26   :  { %v3039_v12 = vld [vmem:[#allocation2 + $0x220] sm:$0xf]  ;;  %v4179_v13 = vld [vmem:[#allocation2 + $0x22c] sm:$0xf0]  ;;  %v2912_v19 = vor.u32 %v4147_v11, %v2911_v9  ;;  %1655 = vmatpush.bf16.msra.mxu3 %v3184_v10  ;;  %v4564_v9 = vpack.c.bf16 %v58_v5, %v58_v5  ;;  %v4137_v5 = vld [vmem:[#allocation2 + $0xe4] sm:$0xf] }
  0x27   :  { %v3167_v14 = vld [vmem:[#allocation2 + $0x320] sm:$0xf]  ;;  %v4211_v15 = vld [vmem:[#allocation2 + $0x32c] sm:$0xf0]  ;;  %v3040_v20 = vor.u32 %v4179_v13, %v3039_v12  ;;  %1617 = vmatpush.bf16.msra.mxu0 %v2784_v16 }
  0x28   :  { %v2767_v17 = vld [vmem:[#allocation2] sm:$0xf]  ;;  %v4111_v18 = vld [vmem:[#allocation2 + $0xc] sm:$0xf0]  ;;  %v3168_v24 = vor.u32 %v4211_v15, %v3167_v14  ;;  %1630 = vmatpush.bf16.msra.mxu1 %v2912_v19 }
  0x29   :  { %v2895_v21 = vld [vmem:[#allocation2 + $0x100] sm:$0xf]  ;;  %v4143_v22 = vld [vmem:[#allocation2 + $0x10c] sm:$0xf0]  ;;  %v2768_v31 = vor.u32 %v4111_v18, %v2767_v17  ;;  %1643 = vmatpush.bf16.msra.mxu2 %v3040_v20 }
  0x2a   :  { %v3023_v23 = vld [vmem:[#allocation2 + $0x200] sm:$0xf]  ;;  %v4175_v25 = vld [vmem:[#allocation2 + $0x20c] sm:$0xf0]  ;;  %v2896_v35 = vor.u32 %v4143_v22, %v2895_v21  ;;  %1656 = vmatpush.bf16.msra.mxu3 %v3168_v24 }
  0x2b   :  { %v3151_v26 = vld [vmem:[#allocation2 + $0x300] sm:$0xf]  ;;  %v4207_v27 = vld [vmem:[#allocation2 + $0x30c] sm:$0xf0]  ;;  %v3024_v36 = vor.u32 %v4175_v25, %v3023_v23  ;;  %1618 = vmatpush.bf16.msra.mxu0 %v2768_v31 }
  0x2c   :  { %v3391_v28 = vld [vmem:[#allocation2 + $0x4e0] sm:$0xf]  ;;  %v4267_v29 = vld [vmem:[#allocation2 + $0x4ec] sm:$0xf0]  ;;  %v3152_v39 = vor.u32 %v4207_v27, %v3151_v26  ;;  %1631 = vmatpush.bf16.msra.mxu1 %v2896_v35 }
  0x2d   :  { %v3519_v30 = vld [vmem:[#allocation2 + $0x5e0] sm:$0xf]  ;;  %v4299_v32 = vld [vmem:[#allocation2 + $0x5ec] sm:$0xf0]  ;;  %v3392_v40 = vor.u32 %v4267_v29, %v3391_v28  ;;  %1644 = vmatpush.bf16.msra.mxu2 %v3024_v36 }
  0x2e   :  { %v3647_v33 = vld [vmem:[#allocation2 + $0x6e0] sm:$0xf]  ;;  %v4331_v34 = vld [vmem:[#allocation2 + $0x6ec] sm:$0xf0]  ;;  %v3520_v41 = vor.u32 %v4299_v32, %v3519_v30  ;;  %1657 = vmatpush.bf16.msra.mxu3 %v3152_v39  ;;  %1619 = vmatmul.bf16.vlgmr.msra.gmra.mxu0 %v4564_v9 }
  0x2f   :  { %v3775_v37 = vld [vmem:[#allocation2 + $0x7e0] sm:$0xf]  ;;  %v4363_v38 = vld [vmem:[#allocation2 + $0x7ec] sm:$0xf0]  ;;  %v3648_v42 = vor.u32 %v4331_v34, %v3647_v33  ;;  %1663 = vmatpush.bf16.msrb.mxu0 %v3392_v40 }
  0x30   :  { %v3375_v43 = vld [vmem:[#allocation2 + $0x4c0] sm:$0xf]  ;;  %v4263_v44 = vld [vmem:[#allocation2 + $0x4cc] sm:$0xf0]  ;;  %v3776_v46 = vor.u32 %v4363_v38, %v3775_v37  ;;  %1676 = vmatpush.bf16.msrb.mxu1 %v3520_v41  ;;  %1645 = vmatmul.bf16.vlgmr.msra.gmra.mxu2 %v4558_v63 }
  0x31   :  { %v3503_v45 = vld [vmem:[#allocation2 + $0x5c0] sm:$0xf]  ;;  %v4295_v47 = vld [vmem:[#allocation2 + $0x5cc] sm:$0xf0]  ;;  %v3376_v52 = vor.u32 %v4263_v44, %v3375_v43  ;;  %1689 = vmatpush.bf16.msrb.mxu2 %v3648_v42 }
  0x32   :  { %v3631_v48 = vld [vmem:[#allocation2 + $0x6c0] sm:$0xf]  ;;  %v4327_v49 = vld [vmem:[#allocation2 + $0x6cc] sm:$0xf0]  ;;  %v3504_v54 = vor.u32 %v4295_v47, %v3503_v45  ;;  %1702 = vmatpush.bf16.msrb.mxu3 %v3776_v46 }
  0x33   :  { %v3759_v50 = vld [vmem:[#allocation2 + $0x7c0] sm:$0xf]  ;;  %v4359_v51 = vld [vmem:[#allocation2 + $0x7cc] sm:$0xf0]  ;;  %v3632_v55 = vor.u32 %v4327_v49, %v3631_v48  ;;  %1664 = vmatpush.bf16.msrb.mxu0 %v3376_v52 }
  0x34   :  { %v3359_v53 = vld [vmem:[#allocation2 + $0x4a0] sm:$0xf]  ;;  %v4259_v56 = vld [vmem:[#allocation2 + $0x4ac] sm:$0xf0]  ;;  %v3760_v59 = vor.u32 %v4359_v51, %v3759_v50  ;;  %1677 = vmatpush.bf16.msrb.mxu1 %v3504_v54 }
  0x35   :  { %v3487_v57 = vld [vmem:[#allocation2 + $0x5a0] sm:$0xf]  ;;  %v4291_v60 = vld [vmem:[#allocation2 + $0x5ac] sm:$0xf0]  ;;  %v3360_v2 = vor.u32 %v4259_v56, %v3359_v53  ;;  %1690 = vmatpush.bf16.msrb.mxu2 %v3632_v55 }
  0x36   :  { %v3615_v61 = vld [vmem:[#allocation2 + $0x6a0] sm:$0xf]  ;;  %v4323_v62 = vld [vmem:[#allocation2 + $0x6ac] sm:$0xf0]  ;;  %v3488_v6 = vor.u32 %v4291_v60, %v3487_v57  ;;  %1703 = vmatpush.bf16.msrb.mxu3 %v3760_v59 }
  0x37   :  { %v3743_v0 = vld [vmem:[#allocation2 + $0x7a0] sm:$0xf]  ;;  %v4355_v1 = vld [vmem:[#allocation2 + $0x7ac] sm:$0xf0]  ;;  %v3616_v7 = vor.u32 %v4323_v62, %v3615_v61  ;;  %1665 = vmatpush.bf16.msrb.mxu0 %v3360_v2 }
  0x38   :  { %v3343_v3 = vld [vmem:[#allocation2 + $0x480] sm:$0xf]  ;;  %v4255_v4 = vld [vmem:[#allocation2 + $0x48c] sm:$0xf0]  ;;  %v3744_v12 = vor.u32 %v4355_v1, %v3743_v0  ;;  %1678 = vmatpush.bf16.msrb.mxu1 %v3488_v6  ;;  %v2881_v6 = vld [vmem:[#allocation2 + $0xf0] sm:$0xf0] }
  0x39   :  { %v3471_v8 = vld [vmem:[#allocation2 + $0x580] sm:$0xf]  ;;  %v61_v10 = vld [vmem:[%s4740_s0 + $0x18] sm:$0xff]  ;;  %v3344_v20 = vor.u32 %v4255_v4, %v3343_v3  ;;  %1691 = vmatpush.bf16.msrb.mxu2 %v3616_v7  ;;  %v4169_v7 = vld [vmem:[#allocation2 + $0x1e4] sm:$0xf] }
  0x3a   :  { %v59_v11 = vld [vmem:[%s4740_s0 + $0x8] sm:$0xff]  ;;  %v4287_v13 = vld [vmem:[#allocation2 + $0x58c] sm:$0xf0]  ;;  %v4572_v16 = vpack.c.bf16 %v61_v10, %v61_v10  ;;  %1704 = vmatpush.bf16.msrb.mxu3 %v3744_v12  ;;  %v3009_v10 = vld [vmem:[#allocation2 + $0x1f0] sm:$0xf0] }
  0x3b   :  { %v3599_v14 = vld [vmem:[#allocation2 + $0x680] sm:$0xf]  ;;  %v4319_v15 = vld [vmem:[#allocation2 + $0x68c] sm:$0xf0]  ;;  %v4574_v17 = vpack.c.bf16 %v59_v11, %v59_v11  ;;  %v3472_v21 = vor.u32 %v4287_v13, %v3471_v8  ;;  %1666 = vmatpush.bf16.msrb.mxu0 %v3344_v20  ;;  %v4201_v11 = vld [vmem:[#allocation2 + $0x2e4] sm:$0xf] }
  0x3c   :  { %v3727_v18 = vld [vmem:[#allocation2 + $0x780] sm:$0xf]  ;;  %v4351_v19 = vld [vmem:[#allocation2 + $0x78c] sm:$0xf0]  ;;  %1658 = vmatmul.bf16.vlgmr.msra.gmra.mxu3 %v4572_v16  ;;  %v3600_v22 = vor.u32 %v4319_v15, %v3599_v14  ;;  %v3137_v12 = vld [vmem:[#allocation2 + $0x2f0] sm:$0xf0] }
  0x3d   :  { %v3327_v23 = vld [vmem:[#allocation2 + $0x460] sm:$0xf]  ;;  %v4251_v24 = vld [vmem:[#allocation2 + $0x46c] sm:$0xf0]  ;;  %v3728_v26 = vor.u32 %v4351_v19, %v3727_v18  ;;  %1632 = vmatmul.bf16.vlgmr.msra.gmra.mxu1 %v4574_v17  ;;  %v4233_v15 = vld [vmem:[#allocation2 + $0x3e4] sm:$0xf] }
  0x3e   :  { %v3455_v25 = vld [vmem:[#allocation2 + $0x560] sm:$0xf]  ;;  %v4283_v27 = vld [vmem:[#allocation2 + $0x56c] sm:$0xf0]  ;;  %v3328_v32 = vor.u32 %v4251_v24, %v3327_v23  ;;  %1679 = vmatpush.bf16.msrb.mxu1 %v3472_v21  ;;  %1692 = vmatpush.bf16.msrb.mxu2 %v3600_v22  ;;  %v3265_v18 = vld [vmem:[#allocation2 + $0x3f0] sm:$0xf0]  ;;  %v2884_v21 = vor.u32 %v4137_v5, %v2881_v6 }
  0x3f   :  { %v3583_v28 = vld [vmem:[#allocation2 + $0x660] sm:$0xf]  ;;  %v4315_v29 = vld [vmem:[#allocation2 + $0x66c] sm:$0xf0]  ;;  %v3456_v33 = vor.u32 %v4283_v27, %v3455_v25  ;;  %1705 = vmatpush.bf16.msrb.mxu3 %v3728_v26  ;;  %v64_v19 = vld [vmem:[%s4740_s0 + $0x30] sm:$0xff]  ;;  %v3012_v25 = vor.u32 %v4169_v7, %v3009_v10  ;;  %v3140_v26 = vor.u32 %v4201_v11, %v3137_v12 }
  0x40   :  { %v3711_v30 = vld [vmem:[#allocation2 + $0x760] sm:$0xf]  ;;  %v4347_v31 = vld [vmem:[#allocation2 + $0x76c] sm:$0xf0]  ;;  %v3584_v34 = vor.u32 %v4315_v29, %v3583_v28  ;;  %1667 = vmatpush.bf16.msrb.mxu0 %v3328_v32  ;;  %v4133_v22 = vld [vmem:[#allocation2 + $0xc4] sm:$0xf] }
  0x41   :  { %v3311_v35 = vld [vmem:[#allocation2 + $0x440] sm:$0xf]  ;;  %v4247_v36 = vld [vmem:[#allocation2 + $0x44c] sm:$0xf0]  ;;  %v3712_v38 = vor.u32 %v4347_v31, %v3711_v30  ;;  %v62_v23 = vld [vmem:[%s4740_s0 + $0x20] sm:$0xff]  ;;  %v3268_v30 = vor.u32 %v4233_v15, %v3265_v18 }
  0x42   :  { %v3439_v37 = vld [vmem:[#allocation2 + $0x540] sm:$0xf]  ;;  %v4279_v39 = vld [vmem:[#allocation2 + $0x54c] sm:$0xf0]  ;;  %v3312_v44 = vor.u32 %v4247_v36, %v3311_v35  ;;  %1680 = vmatpush.bf16.msrb.mxu1 %v3456_v33  ;;  %1693 = vmatpush.bf16.msrb.mxu2 %v3584_v34  ;;  %v2865_v27 = vld [vmem:[#allocation2 + $0xd0] sm:$0xf0]  ;;  %v4591_v34 = vpack.c.bf16 %v64_v19, %v64_v19 }
  0x43   :  { %v3567_v40 = vld [vmem:[#allocation2 + $0x640] sm:$0xf]  ;;  %v4311_v41 = vld [vmem:[#allocation2 + $0x64c] sm:$0xf0]  ;;  %v3440_v45 = vor.u32 %v4279_v39, %v3439_v37  ;;  %1706 = vmatpush.bf16.msrb.mxu3 %v3712_v38  ;;  %v4165_v28 = vld [vmem:[#allocation2 + $0x1c4] sm:$0xf]  ;;  %v4593_v37 = vpack.c.bf16 %v62_v23, %v62_v23  ;;  %v2868_v39 = vor.u32 %v4133_v22, %v2865_v27 }
  0x44   :  { %v3695_v42 = vld [vmem:[#allocation2 + $0x740] sm:$0xf]  ;;  %v4343_v43 = vld [vmem:[#allocation2 + $0x74c] sm:$0xf0]  ;;  %v3568_v46 = vor.u32 %v4311_v41, %v3567_v40  ;;  %1668 = vmatpush.bf16.msrb.mxu0 %v3312_v44  ;;  %v2993_v31 = vld [vmem:[#allocation2 + $0x1d0] sm:$0xf0] }
  0x45   :  { %v3295_v47 = vld [vmem:[#allocation2 + $0x420] sm:$0xf]  ;;  %v4243_v48 = vld [vmem:[#allocation2 + $0x42c] sm:$0xf0]  ;;  %v3696_v50 = vor.u32 %v4343_v43, %v3695_v42  ;;  %v4197_v32 = vld [vmem:[#allocation2 + $0x2c4] sm:$0xf]  ;;  %v2996_v41 = vor.u32 %v4165_v28, %v2993_v31 }
  0x46   :  { %v3423_v49 = vld [vmem:[#allocation2 + $0x520] sm:$0xf]  ;;  %v4275_v51 = vld [vmem:[#allocation2 + $0x52c] sm:$0xf0]  ;;  %v3296_v56 = vor.u32 %v4243_v48, %v3295_v47  ;;  %1681 = vmatpush.bf16.msrb.mxu1 %v3440_v45  ;;  %1694 = vmatpush.bf16.msrb.mxu2 %v3568_v46  ;;  %v3121_v33 = vld [vmem:[#allocation2 + $0x2d0] sm:$0xf0] }
  0x47   :  { %v3551_v52 = vld [vmem:[#allocation2 + $0x620] sm:$0xf]  ;;  %v4307_v53 = vld [vmem:[#allocation2 + $0x62c] sm:$0xf0]  ;;  %v3424_v59 = vor.u32 %v4275_v51, %v3423_v49  ;;  %1707 = vmatpush.bf16.msrb.mxu3 %v3696_v50  ;;  %v4229_v35 = vld [vmem:[#allocation2 + $0x3c4] sm:$0xf]  ;;  %v3124_v42 = vor.u32 %v4197_v32, %v3121_v33 }
  0x48   :  { %v3679_v54 = vld [vmem:[#allocation2 + $0x720] sm:$0xf]  ;;  %v4339_v55 = vld [vmem:[#allocation2 + $0x72c] sm:$0xf0]  ;;  %v3552_v60 = vor.u32 %v4307_v53, %v3551_v52  ;;  %1669 = vmatpush.bf16.msrb.mxu0 %v3296_v56  ;;  %v3249_v36 = vld [vmem:[#allocation2 + $0x3d0] sm:$0xf0] }
  0x49   :  { %v3279_v57 = vld [vmem:[#allocation2 + $0x400] sm:$0xf]  ;;  %v4239_v58 = vld [vmem:[#allocation2 + $0x40c] sm:$0xf0]  ;;  %v3680_v1 = vor.u32 %v4339_v55, %v3679_v54  ;;  %v4129_v43 = vld [vmem:[#allocation2 + $0xa4] sm:$0xf]  ;;  %v3252_v46 = vor.u32 %v4229_v35, %v3249_v36 }
  0x4a   :  { %v3407_v61 = vld [vmem:[#allocation2 + $0x500] sm:$0xf]  ;;  %v4271_v62 = vld [vmem:[#allocation2 + $0x50c] sm:$0xf0]  ;;  %v3280_v8 = vor.u32 %v4239_v58, %v3279_v57  ;;  %1682 = vmatpush.bf16.msrb.mxu1 %v3424_v59  ;;  %1695 = vmatpush.bf16.msrb.mxu2 %v3552_v60  ;;  %v2849_v44 = vld [vmem:[#allocation2 + $0xb0] sm:$0xf0] }
  0x4b   :  { %v3535_v0 = vld [vmem:[#allocation2 + $0x600] sm:$0xf]  ;;  %v4303_v2 = vld [vmem:[#allocation2 + $0x60c] sm:$0xf0]  ;;  %v3408_v13 = vor.u32 %v4271_v62, %v3407_v61  ;;  %1708 = vmatpush.bf16.msrb.mxu3 %v3680_v1  ;;  %v4161_v45 = vld [vmem:[#allocation2 + $0x1a4] sm:$0xf]  ;;  %v2852_v52 = vor.u32 %v4129_v43, %v2849_v44 }
  0x4c   :  { %v3663_v3 = vld [vmem:[#allocation2 + $0x700] sm:$0xf]  ;;  %v4335_v4 = vld [vmem:[#allocation2 + $0x70c] sm:$0xf0]  ;;  %v3536_v14 = vor.u32 %v4303_v2, %v3535_v0  ;;  %1670 = vmatpush.bf16.msrb.mxu0 %v3280_v8  ;;  %v2977_v47 = vld [vmem:[#allocation2 + $0x1b0] sm:$0xf0] }
  0x4d   :  { %v3664_v20 = vor.u32 %v4335_v4, %v3663_v3  ;;  %v65_v24 = vld [vmem:[%s4740_s0 + $0x38] sm:$0xff]  ;;  %v63_v29 = vld [vmem:[%s4740_s0 + $0x28] sm:$0xff]  ;;  %v2980_v53 = vor.u32 %v4161_v45, %v2977_v47 }
  0x4e   :  { %1683 = vmatpush.bf16.msrb.mxu1 %v3408_v13  ;;  %1696 = vmatpush.bf16.msrb.mxu2 %v3536_v14  ;;  %v4595_v38 = vpack.c.bf16 %v65_v24, %v65_v24  ;;  %v4597_v40 = vpack.c.bf16 %v63_v29, %v63_v29  ;;  %v4193_v48 = vld [vmem:[#allocation2 + $0x2a4] sm:$0xf]  ;;  %v3105_v49 = vld [vmem:[#allocation2 + $0x2b0] sm:$0xf0] }
  0x4f   :  { %1709 = vmatpush.bf16.msrb.mxu3 %v3664_v20  ;;  %1671 = vmatmul.bf16.vlgmr.msrb.gmra.mxu0 %v4593_v37  ;;  %v4225_v50 = vld [vmem:[#allocation2 + $0x3a4] sm:$0xf]  ;;  %v3233_v51 = vld [vmem:[#allocation2 + $0x3b0] sm:$0xf0]  ;;  %v3108_v54 = vor.u32 %v4193_v48, %v3105_v49 }
  0x50   :  { %1715 = vmatpush.bf16.msra.mxu0 %v2884_v21  ;;  %v4125_v55 = vld [vmem:[#allocation2 + $0x84] sm:$0xf]  ;;  %v2833_v56 = vld [vmem:[#allocation2 + $0x90] sm:$0xf0]  ;;  %v3236_v58 = vor.u32 %v4225_v50, %v3233_v51 }
  0x51   :  { %1697 = vmatmul.bf16.vlgmr.msrb.gmra.mxu2 %v4591_v34  ;;  %1684 = vmatmul.bf16.vlgmr.msrb.gmra.mxu1 %v4597_v40  ;;  %v4157_v57 = vld [vmem:[#allocation2 + $0x184] sm:$0xf]  ;;  %v2961_v59 = vld [vmem:[#allocation2 + $0x190] sm:$0xf0]  ;;  %v2836_v1 = vor.u32 %v4125_v55, %v2833_v56 }
  0x52   :  { %1728 = vmatpush.bf16.msra.mxu1 %v3012_v25  ;;  %1741 = vmatpush.bf16.msra.mxu2 %v3140_v26  ;;  %v4189_v60 = vld [vmem:[#allocation2 + $0x284] sm:$0xf]  ;;  %v3089_v61 = vld [vmem:[#allocation2 + $0x290] sm:$0xf0]  ;;  %v2964_v2 = vor.u32 %v4157_v57, %v2961_v59 }
  0x53   :  { %1754 = vmatpush.bf16.msra.mxu3 %v3268_v30  ;;  %v4221_v62 = vld [vmem:[#allocation2 + $0x384] sm:$0xf]  ;;  %v3217_v0 = vld [vmem:[#allocation2 + $0x390] sm:$0xf0]  ;;  %v3092_v3 = vor.u32 %v4189_v60, %v3089_v61 }
  0x54   :  { %1710 = vmatmul.bf16.vlgmr.msrb.gmra.mxu3 %v4595_v38  ;;  %1716 = vmatpush.bf16.msra.mxu0 %v2868_v39  ;;  %v4121_v4 = vld [vmem:[#allocation2 + $0x64] sm:$0xf]  ;;  %v2817_v5 = vld [vmem:[#allocation2 + $0x70] sm:$0xf0]  ;;  %v3220_v7 = vor.u32 %v4221_v62, %v3217_v0 }
  0x55   :  { %v4153_v6 = vld [vmem:[#allocation2 + $0x164] sm:$0xf]  ;;  %v2945_v8 = vld [vmem:[#allocation2 + $0x170] sm:$0xf0]  ;;  %v2820_v14 = vor.u32 %v4121_v4, %v2817_v5 }
  0x56   :  { %1729 = vmatpush.bf16.msra.mxu1 %v2996_v41  ;;  %1742 = vmatpush.bf16.msra.mxu2 %v3124_v42  ;;  %v4185_v10 = vld [vmem:[#allocation2 + $0x264] sm:$0xf]  ;;  %v3073_v11 = vld [vmem:[#allocation2 + $0x270] sm:$0xf0]  ;;  %v2948_v15 = vor.u32 %v4153_v6, %v2945_v8 }
  0x57   :  { %1755 = vmatpush.bf16.msra.mxu3 %v3252_v46  ;;  %v4217_v12 = vld [vmem:[#allocation2 + $0x364] sm:$0xf]  ;;  %v3201_v13 = vld [vmem:[#allocation2 + $0x370] sm:$0xf0]  ;;  %v3076_v18 = vor.u32 %v4185_v10, %v3073_v11 }
  0x58   :  { %1717 = vmatpush.bf16.msra.mxu0 %v2852_v52  ;;  %v4117_v19 = vld [vmem:[#allocation2 + $0x44] sm:$0xf]  ;;  %v2801_v20 = vld [vmem:[#allocation2 + $0x50] sm:$0xf0]  ;;  %v3204_v22 = vor.u32 %v4217_v12, %v3201_v13 }
  0x59   :  { %v4149_v21 = vld [vmem:[#allocation2 + $0x144] sm:$0xf]  ;;  %v2929_v23 = vld [vmem:[#allocation2 + $0x150] sm:$0xf0]  ;;  %v2804_v28 = vor.u32 %v4117_v19, %v2801_v20 }
  0x5a   :  { %1730 = vmatpush.bf16.msra.mxu1 %v2980_v53  ;;  %1743 = vmatpush.bf16.msra.mxu2 %v3108_v54  ;;  %v4181_v24 = vld [vmem:[#allocation2 + $0x244] sm:$0xf]  ;;  %v3057_v25 = vld [vmem:[#allocation2 + $0x250] sm:$0xf0]  ;;  %v2932_v29 = vor.u32 %v4149_v21, %v2929_v23 }
  0x5b   :  { %1756 = vmatpush.bf16.msra.mxu3 %v3236_v58  ;;  %v4213_v26 = vld [vmem:[#allocation2 + $0x344] sm:$0xf]  ;;  %v3185_v27 = vld [vmem:[#allocation2 + $0x350] sm:$0xf0]  ;;  %v3060_v30 = vor.u32 %v4181_v24, %v3057_v25 }
  0x5c   :  { %1718 = vmatpush.bf16.msra.mxu0 %v2836_v1  ;;  %v4113_v31 = vld [vmem:[#allocation2 + $0x24] sm:$0xf]  ;;  %v2785_v32 = vld [vmem:[#allocation2 + $0x30] sm:$0xf0]  ;;  %v3188_v35 = vor.u32 %v4213_v26, %v3185_v27 }
  0x5d   :  { %v4145_v33 = vld [vmem:[#allocation2 + $0x124] sm:$0xf]  ;;  %v2913_v36 = vld [vmem:[#allocation2 + $0x130] sm:$0xf0]  ;;  %v2788_v44 = vor.u32 %v4113_v31, %v2785_v32 }
  0x5e   :  { %1731 = vmatpush.bf16.msra.mxu1 %v2964_v2  ;;  %1744 = vmatpush.bf16.msra.mxu2 %v3092_v3  ;;  %v4177_v39 = vld [vmem:[#allocation2 + $0x224] sm:$0xf]  ;;  %v3041_v41 = vld [vmem:[#allocation2 + $0x230] sm:$0xf0]  ;;  %v2916_v47 = vor.u32 %v4145_v33, %v2913_v36 }
  0x5f   :  { %1757 = vmatpush.bf16.msra.mxu3 %v3220_v7  ;;  %v4209_v42 = vld [vmem:[#allocation2 + $0x324] sm:$0xf]  ;;  %v3169_v43 = vld [vmem:[#allocation2 + $0x330] sm:$0xf0]  ;;  %v3044_v48 = vor.u32 %v4177_v39, %v3041_v41 }
  0x60   :  { %1719 = vmatpush.bf16.msra.mxu0 %v2820_v14  ;;  %v4109_v45 = vld [vmem:[#allocation2 + $0x4] sm:$0xf]  ;;  %v2769_v46 = vld [vmem:[#allocation2 + $0x10] sm:$0xf0]  ;;  %v3172_v52 = vor.u32 %v4209_v42, %v3169_v43 }
  0x61   :  { %v4141_v49 = vld [vmem:[#allocation2 + $0x104] sm:$0xf]  ;;  %v2897_v50 = vld [vmem:[#allocation2 + $0x110] sm:$0xf0]  ;;  %v2772_v59 = vor.u32 %v4109_v45, %v2769_v46 }
  0x62   :  { %1732 = vmatpush.bf16.msra.mxu1 %v2948_v15  ;;  %1745 = vmatpush.bf16.msra.mxu2 %v3076_v18  ;;  %v4173_v51 = vld [vmem:[#allocation2 + $0x204] sm:$0xf]  ;;  %v3025_v53 = vld [vmem:[#allocation2 + $0x210] sm:$0xf0]  ;;  %v2900_v0 = vor.u32 %v4141_v49, %v2897_v50 }
  0x63   :  { %1758 = vmatpush.bf16.msra.mxu3 %v3204_v22  ;;  %v4205_v54 = vld [vmem:[#allocation2 + $0x304] sm:$0xf]  ;;  %v3153_v55 = vld [vmem:[#allocation2 + $0x310] sm:$0xf0]  ;;  %v3028_v1 = vor.u32 %v4173_v51, %v3025_v53 }
  0x64   :  { %1720 = vmatpush.bf16.msra.mxu0 %v2804_v28  ;;  %v4265_v56 = vld [vmem:[#allocation2 + $0x4e4] sm:$0xf]  ;;  %v3393_v57 = vld [vmem:[#allocation2 + $0x4f0] sm:$0xf0]  ;;  %v3156_v4 = vor.u32 %v4205_v54, %v3153_v55 }
  0x65   :  { %v4297_v58 = vld [vmem:[#allocation2 + $0x5e4] sm:$0xf]  ;;  %v3521_v60 = vld [vmem:[#allocation2 + $0x5f0] sm:$0xf0]  ;;  %v3396_v5 = vor.u32 %v4265_v56, %v3393_v57 }
  0x66   :  { %1733 = vmatpush.bf16.msra.mxu1 %v2932_v29  ;;  %1746 = vmatpush.bf16.msra.mxu2 %v3060_v30  ;;  %v4329_v61 = vld [vmem:[#allocation2 + $0x6e4] sm:$0xf]  ;;  %v3649_v62 = vld [vmem:[#allocation2 + $0x6f0] sm:$0xf0]  ;;  %v3524_v6 = vor.u32 %v4297_v58, %v3521_v60 }
  0x67   :  { %1759 = vmatpush.bf16.msra.mxu3 %v3188_v35  ;;  %v4361_v2 = vld [vmem:[#allocation2 + $0x7e4] sm:$0xf]  ;;  %v3777_v3 = vld [vmem:[#allocation2 + $0x7f0] sm:$0xf0]  ;;  %v3652_v7 = vor.u32 %v4329_v61, %v3649_v62 }
  0x68   :  { %1721 = vmatpush.bf16.msra.mxu0 %v2788_v44  ;;  %v4261_v8 = vld [vmem:[#allocation2 + $0x4c4] sm:$0xf]  ;;  %v3377_v10 = vld [vmem:[#allocation2 + $0x4d0] sm:$0xf0]  ;;  %v3780_v12 = vor.u32 %v4361_v2, %v3777_v3 }
  0x69   :  { %v4293_v11 = vld [vmem:[#allocation2 + $0x5c4] sm:$0xf]  ;;  %v3505_v13 = vld [vmem:[#allocation2 + $0x5d0] sm:$0xf0]  ;;  %v3380_v20 = vor.u32 %v4261_v8, %v3377_v10 }
  0x6a   :  { %1734 = vmatpush.bf16.msra.mxu1 %v2916_v47  ;;  %1747 = vmatpush.bf16.msra.mxu2 %v3044_v48  ;;  %v4325_v14 = vld [vmem:[#allocation2 + $0x6c4] sm:$0xf]  ;;  %v3633_v15 = vld [vmem:[#allocation2 + $0x6d0] sm:$0xf0]  ;;  %v3508_v21 = vor.u32 %v4293_v11, %v3505_v13 }
  0x6b   :  { %1760 = vmatpush.bf16.msra.mxu3 %v3172_v52  ;;  %v4357_v18 = vld [vmem:[#allocation2 + $0x7c4] sm:$0xf]  ;;  %v3761_v19 = vld [vmem:[#allocation2 + $0x7d0] sm:$0xf0]  ;;  %v3636_v22 = vor.u32 %v4325_v14, %v3633_v15 }
  0x6c   :  { %1722 = vmatpush.bf16.msra.mxu0 %v2772_v59  ;;  %v4257_v23 = vld [vmem:[#allocation2 + $0x4a4] sm:$0xf]  ;;  %v3361_v24 = vld [vmem:[#allocation2 + $0x4b0] sm:$0xf0]  ;;  %v3764_v26 = vor.u32 %v4357_v18, %v3761_v19 }
  0x6d   :  { %v4289_v25 = vld [vmem:[#allocation2 + $0x5a4] sm:$0xf]  ;;  %v3489_v27 = vld [vmem:[#allocation2 + $0x5b0] sm:$0xf0]  ;;  %v3364_v32 = vor.u32 %v4257_v23, %v3361_v24 }
  0x6e   :  { %1735 = vmatpush.bf16.msra.mxu1 %v2900_v0  ;;  %1748 = vmatpush.bf16.msra.mxu2 %v3028_v1  ;;  %v4321_v28 = vld [vmem:[#allocation2 + $0x6a4] sm:$0xf]  ;;  %v3617_v29 = vld [vmem:[#allocation2 + $0x6b0] sm:$0xf0]  ;;  %v3492_v33 = vor.u32 %v4289_v25, %v3489_v27 }
  0x6f   :  { %1761 = vmatpush.bf16.msra.mxu3 %v3156_v4  ;;  %v4353_v30 = vld [vmem:[#allocation2 + $0x7a4] sm:$0xf]  ;;  %v3745_v31 = vld [vmem:[#allocation2 + $0x7b0] sm:$0xf0]  ;;  %1723 = vmatmul.bf16.vlgmr.msra.gmra.mxu0 %v4564_v9  ;;  %v3620_v35 = vor.u32 %v4321_v28, %v3617_v29 }
  0x70   :  { %1767 = vmatpush.bf16.msrb.mxu0 %v3396_v5  ;;  %v4253_v36 = vld [vmem:[#allocation2 + $0x484] sm:$0xf]  ;;  %v3345_v39 = vld [vmem:[#allocation2 + $0x490] sm:$0xf0]  ;;  %v3748_v42 = vor.u32 %v4353_v30, %v3745_v31 }
  0x71   :  { %1749 = vmatmul.bf16.vlgmr.msra.gmra.mxu2 %v4558_v63  ;;  %1736 = vmatmul.bf16.vlgmr.msra.gmra.mxu1 %v4574_v17  ;;  %v4285_v41 = vld [vmem:[#allocation2 + $0x584] sm:$0xf]  ;;  %v3473_v43 = vld [vmem:[#allocation2 + $0x590] sm:$0xf0]  ;;  %v3348_v48 = vor.u32 %v4253_v36, %v3345_v39  ;;  %v2887_v39 = vld [vmem:[#allocation2 + $0xe8] sm:$0xf] }
  0x72   :  { %1780 = vmatpush.bf16.msrb.mxu1 %v3524_v6  ;;  %1793 = vmatpush.bf16.msrb.mxu2 %v3652_v7  ;;  %v4317_v44 = vld [vmem:[#allocation2 + $0x684] sm:$0xf]  ;;  %v3601_v45 = vld [vmem:[#allocation2 + $0x690] sm:$0xf0]  ;;  %v3476_v49 = vor.u32 %v4285_v41, %v3473_v43  ;;  %v4140_v41 = vld [vmem:[#allocation2 + $0xf4] sm:$0xf0] }
  0x73   :  { %1806 = vmatpush.bf16.msrb.mxu3 %v3780_v12  ;;  %v4349_v46 = vld [vmem:[#allocation2 + $0x784] sm:$0xf]  ;;  %v3729_v47 = vld [vmem:[#allocation2 + $0x790] sm:$0xf0]  ;;  %v3604_v50 = vor.u32 %v4317_v44, %v3601_v45  ;;  %v4172_v44 = vld [vmem:[#allocation2 + $0x1f4] sm:$0xf0] }
  0x74   :  { %1762 = vmatmul.bf16.vlgmr.msra.gmra.mxu3 %v4572_v16  ;;  %1768 = vmatpush.bf16.msrb.mxu0 %v3380_v20  ;;  %v4249_v51 = vld [vmem:[#allocation2 + $0x464] sm:$0xf]  ;;  %v3329_v52 = vld [vmem:[#allocation2 + $0x470] sm:$0xf0]  ;;  %v3732_v54 = vor.u32 %v4349_v46, %v3729_v47  ;;  %v3143_v45 = vld [vmem:[#allocation2 + $0x2e8] sm:$0xf] }
  0x75   :  { %v4281_v53 = vld [vmem:[#allocation2 + $0x564] sm:$0xf]  ;;  %v3457_v55 = vld [vmem:[#allocation2 + $0x570] sm:$0xf0]  ;;  %v3332_v60 = vor.u32 %v4249_v51, %v3329_v52  ;;  %v4204_v46 = vld [vmem:[#allocation2 + $0x2f4] sm:$0xf0]  ;;  %v2888_v52 = vor.u32 %v4140_v41, %v2887_v39 }
  0x76   :  { %1781 = vmatpush.bf16.msrb.mxu1 %v3508_v21  ;;  %1794 = vmatpush.bf16.msrb.mxu2 %v3636_v22  ;;  %v4313_v56 = vld [vmem:[#allocation2 + $0x664] sm:$0xf]  ;;  %v3585_v57 = vld [vmem:[#allocation2 + $0x670] sm:$0xf0]  ;;  %v3460_v61 = vor.u32 %v4281_v53, %v3457_v55  ;;  %v2871_v55 = vld [vmem:[#allocation2 + $0xc8] sm:$0xf] }
  0x77   :  { %1807 = vmatpush.bf16.msrb.mxu3 %v3764_v26  ;;  %v4345_v58 = vld [vmem:[#allocation2 + $0x764] sm:$0xf]  ;;  %v3713_v59 = vld [vmem:[#allocation2 + $0x770] sm:$0xf0]  ;;  %v3588_v62 = vor.u32 %v4313_v56, %v3585_v57  ;;  %v4136_v56 = vld [vmem:[#allocation2 + $0xd4] sm:$0xf0] }
  0x78   :  { %1769 = vmatpush.bf16.msrb.mxu0 %v3364_v32  ;;  %v4245_v0 = vld [vmem:[#allocation2 + $0x444] sm:$0xf]  ;;  %v3313_v1 = vld [vmem:[#allocation2 + $0x450] sm:$0xf0]  ;;  %v3716_v3 = vor.u32 %v4345_v58, %v3713_v59  ;;  %v2999_v57 = vld [vmem:[#allocation2 + $0x1c8] sm:$0xf] }
  0x79   :  { %v4277_v2 = vld [vmem:[#allocation2 + $0x544] sm:$0xf]  ;;  %v3441_v4 = vld [vmem:[#allocation2 + $0x550] sm:$0xf0]  ;;  %v3316_v10 = vor.u32 %v4245_v0, %v3313_v1  ;;  %v4168_v59 = vld [vmem:[#allocation2 + $0x1d4] sm:$0xf0]  ;;  %v2872_v1 = vor.u32 %v4136_v56, %v2871_v55 }
  0x7a   :  { %1782 = vmatpush.bf16.msrb.mxu1 %v3492_v33  ;;  %1795 = vmatpush.bf16.msrb.mxu2 %v3620_v35  ;;  %v4309_v5 = vld [vmem:[#allocation2 + $0x644] sm:$0xf]  ;;  %v3569_v6 = vld [vmem:[#allocation2 + $0x650] sm:$0xf0]  ;;  %v3444_v11 = vor.u32 %v4277_v2, %v3441_v4  ;;  %v4232_v0 = vld [vmem:[#allocation2 + $0x3d4] sm:$0xf0]  ;;  %v3000_v2 = vor.u32 %v4168_v59, %v2999_v57 }
  0x7b   :  { %1808 = vmatpush.bf16.msrb.mxu3 %v3748_v42  ;;  %v4341_v7 = vld [vmem:[#allocation2 + $0x744] sm:$0xf]  ;;  %v3697_v8 = vld [vmem:[#allocation2 + $0x750] sm:$0xf0]  ;;  %v3572_v12 = vor.u32 %v4309_v5, %v3569_v6  ;;  %v3015_v42 = vld [vmem:[#allocation2 + $0x1e8] sm:$0xf] }
  0x7c   :  { %1770 = vmatpush.bf16.msrb.mxu0 %v3348_v48  ;;  %v4241_v13 = vld [vmem:[#allocation2 + $0x424] sm:$0xf]  ;;  %v3297_v14 = vld [vmem:[#allocation2 + $0x430] sm:$0xf0]  ;;  %v3700_v18 = vor.u32 %v4341_v7, %v3697_v8  ;;  %v3016_v53 = vor.u32 %v4172_v44, %v3015_v42  ;;  %v2855_v4 = vld [vmem:[#allocation2 + $0xa8] sm:$0xf] }
  0x7d   :  { %v4273_v15 = vld [vmem:[#allocation2 + $0x524] sm:$0xf]  ;;  %v3425_v19 = vld [vmem:[#allocation2 + $0x530] sm:$0xf0]  ;;  %v3300_v24 = vor.u32 %v4241_v13, %v3297_v14  ;;  %v4132_v5 = vld [vmem:[#allocation2 + $0xb4] sm:$0xf0] }
  0x7e   :  { %1783 = vmatpush.bf16.msrb.mxu1 %v3476_v49  ;;  %1796 = vmatpush.bf16.msrb.mxu2 %v3604_v50  ;;  %v4305_v20 = vld [vmem:[#allocation2 + $0x624] sm:$0xf]  ;;  %v3553_v21 = vld [vmem:[#allocation2 + $0x630] sm:$0xf0]  ;;  %v3428_v27 = vor.u32 %v4273_v15, %v3425_v19  ;;  %v3271_v49 = vld [vmem:[#allocation2 + $0x3e8] sm:$0xf]  ;;  %v2856_v14 = vor.u32 %v4132_v5, %v2855_v4 }
  0x7f   :  { %1809 = vmatpush.bf16.msrb.mxu3 %v3732_v54  ;;  %v4337_v22 = vld [vmem:[#allocation2 + $0x724] sm:$0xf]  ;;  %v3681_v23 = vld [vmem:[#allocation2 + $0x730] sm:$0xf0]  ;;  %v3556_v28 = vor.u32 %v4305_v20, %v3553_v21  ;;  %v4236_v50 = vld [vmem:[#allocation2 + $0x3f4] sm:$0xf0]  ;;  %v3144_v54 = vor.u32 %v4204_v46, %v3143_v45 }
  0x80   :  { %1771 = vmatpush.bf16.msrb.mxu0 %v3332_v60  ;;  %v4237_v25 = vld [vmem:[#allocation2 + $0x404] sm:$0xf]  ;;  %v3281_v26 = vld [vmem:[#allocation2 + $0x410] sm:$0xf0]  ;;  %v3684_v32 = vor.u32 %v4337_v22, %v3681_v23  ;;  %v3272_v58 = vor.u32 %v4236_v50, %v3271_v49  ;;  %v3127_v60 = vld [vmem:[#allocation2 + $0x2c8] sm:$0xf] }
  0x81   :  { %v4269_v29 = vld [vmem:[#allocation2 + $0x504] sm:$0xf]  ;;  %v3409_v30 = vld [vmem:[#allocation2 + $0x510] sm:$0xf0]  ;;  %v3284_v43 = vor.u32 %v4237_v25, %v3281_v26  ;;  %v2983_v6 = vld [vmem:[#allocation2 + $0x1a8] sm:$0xf] }
  0x82   :  { %1784 = vmatpush.bf16.msrb.mxu1 %v3460_v61  ;;  %1797 = vmatpush.bf16.msrb.mxu2 %v3588_v62  ;;  %v4301_v31 = vld [vmem:[#allocation2 + $0x604] sm:$0xf]  ;;  %v3537_v33 = vld [vmem:[#allocation2 + $0x610] sm:$0xf0]  ;;  %v3412_v47 = vor.u32 %v4269_v29, %v3409_v30  ;;  %v4200_v61 = vld [vmem:[#allocation2 + $0x2d4] sm:$0xf0] }
  0x83   :  { %1810 = vmatpush.bf16.msrb.mxu3 %v3716_v3  ;;  %v4333_v35 = vld [vmem:[#allocation2 + $0x704] sm:$0xf]  ;;  %v3665_v36 = vld [vmem:[#allocation2 + $0x710] sm:$0xf0]  ;;  %v3540_v48 = vor.u32 %v4301_v31, %v3537_v33  ;;  %v3255_v62 = vld [vmem:[#allocation2 + $0x3c8] sm:$0xf]  ;;  %v3128_v3 = vor.u32 %v4200_v61, %v3127_v60 }
  0x84   :  { %1772 = vmatpush.bf16.msrb.mxu0 %v3316_v10  ;;  %v3668_v51 = vor.u32 %v4333_v35, %v3665_v36  ;;  %v3256_v7 = vor.u32 %v4232_v0, %v3255_v62  ;;  %v4164_v8 = vld [vmem:[#allocation2 + $0x1b4] sm:$0xf0]  ;;  %v3111_v10 = vld [vmem:[#allocation2 + $0x2a8] sm:$0xf] }
  0x85   :  { %v4228_v13 = vld [vmem:[#allocation2 + $0x3b4] sm:$0xf0]  ;;  %v2984_v15 = vor.u32 %v4164_v8, %v2983_v6  ;;  %v2839_v19 = vld [vmem:[#allocation2 + $0x88] sm:$0xf] }
  0x86   :  { %1785 = vmatpush.bf16.msrb.mxu1 %v3444_v11  ;;  %1798 = vmatpush.bf16.msrb.mxu2 %v3572_v12  ;;  %v4196_v11 = vld [vmem:[#allocation2 + $0x2b4] sm:$0xf0]  ;;  %v3239_v12 = vld [vmem:[#allocation2 + $0x3a8] sm:$0xf] }
  0x87   :  { %1811 = vmatpush.bf16.msrb.mxu3 %v3700_v18  ;;  %v3112_v18 = vor.u32 %v4196_v11, %v3111_v10  ;;  %v4128_v20 = vld [vmem:[#allocation2 + $0x94] sm:$0xf0]  ;;  %v2967_v21 = vld [vmem:[#allocation2 + $0x188] sm:$0xf]  ;;  %v3240_v22 = vor.u32 %v4228_v13, %v3239_v12 }
  0x88   :  { %1773 = vmatpush.bf16.msrb.mxu0 %v3300_v24  ;;  %v4160_v23 = vld [vmem:[#allocation2 + $0x194] sm:$0xf0]  ;;  %v3095_v24 = vld [vmem:[#allocation2 + $0x288] sm:$0xf] }
  0x89   :  { %v4192_v25 = vld [vmem:[#allocation2 + $0x294] sm:$0xf0]  ;;  %v3223_v26 = vld [vmem:[#allocation2 + $0x388] sm:$0xf]  ;;  %v2968_v29 = vor.u32 %v4160_v23, %v2967_v21 }
  0x8a   :  { %1786 = vmatpush.bf16.msrb.mxu1 %v3428_v27  ;;  %1799 = vmatpush.bf16.msrb.mxu2 %v3556_v28  ;;  %v4224_v27 = vld [vmem:[#allocation2 + $0x394] sm:$0xf0]  ;;  %v2840_v28 = vor.u32 %v4128_v20, %v2839_v19  ;;  %v3096_v30 = vor.u32 %v4192_v25, %v3095_v24  ;;  %v2823_v31 = vld [vmem:[#allocation2 + $0x68] sm:$0xf] }
  0x8b   :  { %1812 = vmatpush.bf16.msrb.mxu3 %v3684_v32  ;;  %v4124_v32 = vld [vmem:[#allocation2 + $0x74] sm:$0xf0]  ;;  %v2951_v33 = vld [vmem:[#allocation2 + $0x168] sm:$0xf]  ;;  %v3224_v35 = vor.u32 %v4224_v27, %v3223_v26 }
  0x8c   :  { %1774 = vmatpush.bf16.msrb.mxu0 %v3284_v43  ;;  %v4156_v36 = vld [vmem:[#allocation2 + $0x174] sm:$0xf0]  ;;  %v3079_v39 = vld [vmem:[#allocation2 + $0x268] sm:$0xf]  ;;  %v2824_v44 = vor.u32 %v4124_v32, %v2823_v31 }
  0x8d   :  { %v4188_v41 = vld [vmem:[#allocation2 + $0x274] sm:$0xf0]  ;;  %v3207_v42 = vld [vmem:[#allocation2 + $0x368] sm:$0xf]  ;;  %v2952_v45 = vor.u32 %v4156_v36, %v2951_v33 }
  0x8e   :  { %1787 = vmatpush.bf16.msrb.mxu1 %v3412_v47  ;;  %1800 = vmatpush.bf16.msrb.mxu2 %v3540_v48  ;;  %v4220_v43 = vld [vmem:[#allocation2 + $0x374] sm:$0xf0]  ;;  %v3080_v46 = vor.u32 %v4188_v41, %v3079_v39  ;;  %v2807_v47 = vld [vmem:[#allocation2 + $0x48] sm:$0xf] }
  0x8f   :  { %1813 = vmatpush.bf16.msrb.mxu3 %v3668_v51  ;;  %1775 = vmatmul.bf16.vlgmr.msrb.gmra.mxu0 %v4593_v37  ;;  %v4120_v48 = vld [vmem:[#allocation2 + $0x54] sm:$0xf0]  ;;  %v2935_v49 = vld [vmem:[#allocation2 + $0x148] sm:$0xf]  ;;  %v3208_v50 = vor.u32 %v4220_v43, %v3207_v42 }
  0x90   :  { %1819 = vmatpush.bf16.msra.mxu0 %v2888_v52  ;;  %v4152_v51 = vld [vmem:[#allocation2 + $0x154] sm:$0xf0]  ;;  %v3063_v52 = vld [vmem:[#allocation2 + $0x248] sm:$0xf]  ;;  %v2808_v56 = vor.u32 %v4120_v48, %v2807_v47 }
  0x91   :  { %1801 = vmatmul.bf16.vlgmr.msrb.gmra.mxu2 %v4591_v34  ;;  %1788 = vmatmul.bf16.vlgmr.msrb.gmra.mxu1 %v4597_v40  ;;  %v4216_v55 = vld [vmem:[#allocation2 + $0x354] sm:$0xf0]  ;;  %v2936_v57 = vor.u32 %v4152_v51, %v2935_v49  ;;  %v2791_v59 = vld [vmem:[#allocation2 + $0x28] sm:$0xf] }
  0x92   :  { %1832 = vmatpush.bf16.msra.mxu1 %v3016_v53  ;;  %1845 = vmatpush.bf16.msra.mxu2 %v3144_v54  ;;  %v4184_v53 = vld [vmem:[#allocation2 + $0x254] sm:$0xf0]  ;;  %v3191_v54 = vld [vmem:[#allocation2 + $0x348] sm:$0xf] }
  0x93   :  { %1858 = vmatpush.bf16.msra.mxu3 %v3272_v58  ;;  %v3064_v58 = vor.u32 %v4184_v53, %v3063_v52  ;;  %v4116_v60 = vld [vmem:[#allocation2 + $0x34] sm:$0xf0]  ;;  %v2919_v61 = vld [vmem:[#allocation2 + $0x128] sm:$0xf]  ;;  %v3192_v62 = vor.u32 %v4216_v55, %v3191_v54 }
  0x94   :  { %1814 = vmatmul.bf16.vlgmr.msrb.gmra.mxu3 %v4595_v38  ;;  %1820 = vmatpush.bf16.msra.mxu0 %v2872_v1  ;;  %v4148_v0 = vld [vmem:[#allocation2 + $0x134] sm:$0xf0]  ;;  %v3047_v1 = vld [vmem:[#allocation2 + $0x228] sm:$0xf]  ;;  %v2792_v5 = vor.u32 %v4116_v60, %v2791_v59 }
  0x95   :  { %v4212_v4 = vld [vmem:[#allocation2 + $0x334] sm:$0xf0]  ;;  %v2775_v6 = vld [vmem:[#allocation2 + $0x8] sm:$0xf]  ;;  %v2920_v8 = vor.u32 %v4148_v0, %v2919_v61 }
  0x96   :  { %1833 = vmatpush.bf16.msra.mxu1 %v3000_v2  ;;  %1846 = vmatpush.bf16.msra.mxu2 %v3128_v3  ;;  %v4180_v2 = vld [vmem:[#allocation2 + $0x234] sm:$0xf0]  ;;  %v3175_v3 = vld [vmem:[#allocation2 + $0x328] sm:$0xf] }
  0x97   :  { %1859 = vmatpush.bf16.msra.mxu3 %v3256_v7  ;;  %v4112_v7 = vld [vmem:[#allocation2 + $0x14] sm:$0xf0]  ;;  %v3048_v10 = vor.u32 %v4180_v2, %v3047_v1  ;;  %v2903_v11 = vld [vmem:[#allocation2 + $0x108] sm:$0xf] }
  0x98   :  { %1821 = vmatpush.bf16.msra.mxu0 %v2856_v14  ;;  %v4144_v12 = vld [vmem:[#allocation2 + $0x114] sm:$0xf0]  ;;  %v3031_v13 = vld [vmem:[#allocation2 + $0x208] sm:$0xf]  ;;  %v3176_v14 = vor.u32 %v4212_v4, %v3175_v3  ;;  %v2776_v23 = vor.u32 %v4112_v7, %v2775_v6 }
  0x99   :  { %v4208_v19 = vld [vmem:[#allocation2 + $0x314] sm:$0xf0]  ;;  %v3399_v20 = vld [vmem:[#allocation2 + $0x4e8] sm:$0xf]  ;;  %v2904_v27 = vor.u32 %v4144_v12, %v2903_v11 }
  0x9a   :  { %1834 = vmatpush.bf16.msra.mxu1 %v2984_v15  ;;  %1847 = vmatpush.bf16.msra.mxu2 %v3112_v18  ;;  %v4176_v15 = vld [vmem:[#allocation2 + $0x214] sm:$0xf0]  ;;  %v3159_v18 = vld [vmem:[#allocation2 + $0x308] sm:$0xf] }
  0x9b   :  { %1860 = vmatpush.bf16.msra.mxu3 %v3240_v22  ;;  %v4268_v21 = vld [vmem:[#allocation2 + $0x4f4] sm:$0xf0]  ;;  %v3527_v22 = vld [vmem:[#allocation2 + $0x5e8] sm:$0xf]  ;;  %v3160_v31 = vor.u32 %v4208_v19, %v3159_v18 }
  0x9c   :  { %1822 = vmatpush.bf16.msra.mxu0 %v2840_v28  ;;  %v4300_v24 = vld [vmem:[#allocation2 + $0x5f4] sm:$0xf0]  ;;  %v3655_v25 = vld [vmem:[#allocation2 + $0x6e8] sm:$0xf]  ;;  %v3032_v28 = vor.u32 %v4176_v15, %v3031_v13  ;;  %v3400_v32 = vor.u32 %v4268_v21, %v3399_v20 }
  0x9d   :  { %v4332_v26 = vld [vmem:[#allocation2 + $0x6f4] sm:$0xf0]  ;;  %v3528_v33 = vor.u32 %v4300_v24, %v3527_v22  ;;  %v3383_v36 = vld [vmem:[#allocation2 + $0x4c8] sm:$0xf] }
  0x9e   :  { %1835 = vmatpush.bf16.msra.mxu1 %v2968_v29  ;;  %1848 = vmatpush.bf16.msra.mxu2 %v3096_v30  ;;  %v3783_v29 = vld [vmem:[#allocation2 + $0x7e8] sm:$0xf]  ;;  %v4364_v30 = vld [vmem:[#allocation2 + $0x7f4] sm:$0xf0] }
  0x9f   :  { %1861 = vmatpush.bf16.msra.mxu3 %v3224_v35  ;;  %v3656_v35 = vor.u32 %v4332_v26, %v3655_v25  ;;  %v4264_v39 = vld [vmem:[#allocation2 + $0x4d4] sm:$0xf0]  ;;  %v3511_v41 = vld [vmem:[#allocation2 + $0x5c8] sm:$0xf]  ;;  %v3784_v42 = vor.u32 %v4364_v30, %v3783_v29 }
  0xa0   :  { %1823 = vmatpush.bf16.msra.mxu0 %v2824_v44  ;;  %v4296_v43 = vld [vmem:[#allocation2 + $0x5d4] sm:$0xf0]  ;;  %v3639_v44 = vld [vmem:[#allocation2 + $0x6c8] sm:$0xf]  ;;  %v3384_v48 = vor.u32 %v4264_v39, %v3383_v36 }
  0xa1   :  { %v4360_v47 = vld [vmem:[#allocation2 + $0x7d4] sm:$0xf0]  ;;  %v3512_v49 = vor.u32 %v4296_v43, %v3511_v41  ;;  %v3367_v51 = vld [vmem:[#allocation2 + $0x4a8] sm:$0xf] }
  0xa2   :  { %1836 = vmatpush.bf16.msra.mxu1 %v2952_v45  ;;  %1849 = vmatpush.bf16.msra.mxu2 %v3080_v46  ;;  %v4328_v45 = vld [vmem:[#allocation2 + $0x6d4] sm:$0xf0]  ;;  %v3767_v46 = vld [vmem:[#allocation2 + $0x7c8] sm:$0xf] }
  0xa3   :  { %1862 = vmatpush.bf16.msra.mxu3 %v3208_v50  ;;  %v3640_v50 = vor.u32 %v4328_v45, %v3639_v44  ;;  %v4260_v52 = vld [vmem:[#allocation2 + $0x4b4] sm:$0xf0]  ;;  %v3495_v53 = vld [vmem:[#allocation2 + $0x5a8] sm:$0xf]  ;;  %v3768_v54 = vor.u32 %v4360_v47, %v3767_v46 }
  0xa4   :  { %1824 = vmatpush.bf16.msra.mxu0 %v2808_v56  ;;  %v4292_v55 = vld [vmem:[#allocation2 + $0x5b4] sm:$0xf0]  ;;  %v3623_v56 = vld [vmem:[#allocation2 + $0x6a8] sm:$0xf]  ;;  %v3368_v60 = vor.u32 %v4260_v52, %v3367_v51 }
  0xa5   :  { %v4356_v59 = vld [vmem:[#allocation2 + $0x7b4] sm:$0xf0]  ;;  %v3496_v61 = vor.u32 %v4292_v55, %v3495_v53  ;;  %v3351_v0 = vld [vmem:[#allocation2 + $0x488] sm:$0xf] }
  0xa6   :  { %1837 = vmatpush.bf16.msra.mxu1 %v2936_v57  ;;  %1850 = vmatpush.bf16.msra.mxu2 %v3064_v58  ;;  %v4324_v57 = vld [vmem:[#allocation2 + $0x6b4] sm:$0xf0]  ;;  %v3751_v58 = vld [vmem:[#allocation2 + $0x7a8] sm:$0xf] }
  0xa7   :  { %1863 = vmatpush.bf16.msra.mxu3 %v3192_v62  ;;  %v3624_v62 = vor.u32 %v4324_v57, %v3623_v56  ;;  %v4256_v1 = vld [vmem:[#allocation2 + $0x494] sm:$0xf0]  ;;  %v3479_v2 = vld [vmem:[#allocation2 + $0x588] sm:$0xf]  ;;  %v3752_v3 = vor.u32 %v4356_v59, %v3751_v58 }
  0xa8   :  { %1825 = vmatpush.bf16.msra.mxu0 %v2792_v5  ;;  %v4288_v4 = vld [vmem:[#allocation2 + $0x594] sm:$0xf0]  ;;  %v3607_v5 = vld [vmem:[#allocation2 + $0x688] sm:$0xf] }
  0xa9   :  { %v4320_v6 = vld [vmem:[#allocation2 + $0x694] sm:$0xf0]  ;;  %v3735_v7 = vld [vmem:[#allocation2 + $0x788] sm:$0xf]  ;;  %v3480_v11 = vor.u32 %v4288_v4, %v3479_v2 }
  0xaa   :  { %1838 = vmatpush.bf16.msra.mxu1 %v2920_v8  ;;  %1851 = vmatpush.bf16.msra.mxu2 %v3048_v10  ;;  %v4352_v8 = vld [vmem:[#allocation2 + $0x794] sm:$0xf0]  ;;  %v3352_v10 = vor.u32 %v4256_v1, %v3351_v0  ;;  %v3608_v12 = vor.u32 %v4320_v6, %v3607_v5  ;;  %v3335_v13 = vld [vmem:[#allocation2 + $0x468] sm:$0xf] }
  0xab   :  { %1864 = vmatpush.bf16.msra.mxu3 %v3176_v14  ;;  %v4252_v14 = vld [vmem:[#allocation2 + $0x474] sm:$0xf0]  ;;  %v3463_v15 = vld [vmem:[#allocation2 + $0x568] sm:$0xf]  ;;  %v3736_v18 = vor.u32 %v4352_v8, %v3735_v7  ;;  %v1620_v25 = vpop.f32.mrf.mxu0 }
  0xac   :  { %1826 = vmatpush.bf16.msra.mxu0 %v2776_v23  ;;  %v4284_v19 = vld [vmem:[#allocation2 + $0x574] sm:$0xf0]  ;;  %v3591_v20 = vld [vmem:[#allocation2 + $0x668] sm:$0xf]  ;;  %v3336_v24 = vor.u32 %v4252_v14, %v3335_v13 }
  0xad   :  { %v4316_v21 = vld [vmem:[#allocation2 + $0x674] sm:$0xf0]  ;;  %v3719_v22 = vld [vmem:[#allocation2 + $0x768] sm:$0xf]  ;;  %v3464_v26 = vor.u32 %v4284_v19, %v3463_v15  ;;  %v4202_v19 = vld [vmem:[#allocation2 + $0x2ec] sm:$0xf] }
  0xae   :  { %1839 = vmatpush.bf16.msra.mxu1 %v2904_v27  ;;  %1852 = vmatpush.bf16.msra.mxu2 %v3032_v28  ;;  %v4348_v23 = vld [vmem:[#allocation2 + $0x774] sm:$0xf0]  ;;  %v3592_v27 = vor.u32 %v4316_v21, %v3591_v20  ;;  %v3319_v28 = vld [vmem:[#allocation2 + $0x448] sm:$0xf]  ;;  %v3145_v20 = vld [vmem:[#allocation2 + $0x2f8] sm:$0xf0] }
  0xaf   :  { %1865 = vmatpush.bf16.msra.mxu3 %v3160_v31  ;;  %1827 = vmatmul.bf16.vlgmr.msra.gmra.mxu0 %v4564_v9  ;;  %v4248_v29 = vld [vmem:[#allocation2 + $0x454] sm:$0xf0]  ;;  %v3447_v30 = vld [vmem:[#allocation2 + $0x548] sm:$0xf]  ;;  %v3720_v31 = vor.u32 %v4348_v23, %v3719_v22  ;;  %v4234_v23 = vld [vmem:[#allocation2 + $0x3ec] sm:$0xf] }
  0xb0   :  { %1871 = vmatpush.bf16.msrb.mxu0 %v3400_v32  ;;  %v4280_v32 = vld [vmem:[#allocation2 + $0x554] sm:$0xf0]  ;;  %v3703_v36 = vld [vmem:[#allocation2 + $0x748] sm:$0xf]  ;;  %v3320_v43 = vor.u32 %v4248_v29, %v3319_v28  ;;  %v3148_v28 = vor.u32 %v4202_v19, %v3145_v20  ;;  %v4134_v29 = vld [vmem:[#allocation2 + $0xcc] sm:$0xf] }
  0xb1   :  { %1853 = vmatmul.bf16.vlgmr.msra.gmra.mxu2 %v4558_v63  ;;  %1840 = vmatmul.bf16.vlgmr.msra.gmra.mxu1 %v4574_v17  ;;  %v4344_v39 = vld [vmem:[#allocation2 + $0x754] sm:$0xf0]  ;;  %v3448_v45 = vor.u32 %v4280_v32, %v3447_v30  ;;  %v3303_v47 = vld [vmem:[#allocation2 + $0x428] sm:$0xf]  ;;  %v2873_v30 = vld [vmem:[#allocation2 + $0xd8] sm:$0xf0] }
  0xb2   :  { %1884 = vmatpush.bf16.msrb.mxu1 %v3528_v33  ;;  %1897 = vmatpush.bf16.msrb.mxu2 %v3656_v35  ;;  %v3575_v33 = vld [vmem:[#allocation2 + $0x648] sm:$0xf]  ;;  %v4312_v35 = vld [vmem:[#allocation2 + $0x654] sm:$0xf0]  ;;  %v3081_v19 = vld [vmem:[#allocation2 + $0x278] sm:$0xf0] }
  0xb3   :  { %1910 = vmatpush.bf16.msrb.mxu3 %v3784_v42  ;;  %v1646_v42 = vpop.f32.mrf.mxu2  ;;  %v3576_v46 = vor.u32 %v4312_v35, %v3575_v33  ;;  %v4276_v51 = vld [vmem:[#allocation2 + $0x534] sm:$0xf0]  ;;  %v3559_v52 = vld [vmem:[#allocation2 + $0x628] sm:$0xf]  ;;  %v3001_v35 = vld [vmem:[#allocation2 + $0x1d8] sm:$0xf0] }
  0xb4   :  { %1866 = vmatmul.bf16.vlgmr.msra.gmra.mxu3 %v4572_v16  ;;  %1872 = vmatpush.bf16.msrb.mxu0 %v3384_v48  ;;  %v4244_v48 = vld [vmem:[#allocation2 + $0x434] sm:$0xf0]  ;;  %v3687_v55 = vld [vmem:[#allocation2 + $0x728] sm:$0xf]  ;;  %v4218_v20 = vld [vmem:[#allocation2 + $0x36c] sm:$0xf] }
  0xb5   :  { %v4308_v53 = vld [vmem:[#allocation2 + $0x634] sm:$0xf0]  ;;  %v3304_v58 = vor.u32 %v4244_v48, %v3303_v47  ;;  %v3287_v59 = vld [vmem:[#allocation2 + $0x408] sm:$0xf]  ;;  %v2857_v47 = vld [vmem:[#allocation2 + $0xb8] sm:$0xf0] }
  0xb6   :  { %1885 = vmatpush.bf16.msrb.mxu1 %v3512_v49  ;;  %1898 = vmatpush.bf16.msrb.mxu2 %v3640_v50  ;;  %v3431_v49 = vld [vmem:[#allocation2 + $0x528] sm:$0xf]  ;;  %v3704_v50 = vor.u32 %v4344_v39, %v3703_v36  ;;  %v4340_v56 = vld [vmem:[#allocation2 + $0x734] sm:$0xf0]  ;;  %v3560_v1 = vor.u32 %v4308_v53, %v3559_v52  ;;  %v4198_v36 = vld [vmem:[#allocation2 + $0x2cc] sm:$0xf] }
  0xb7   :  { %1911 = vmatpush.bf16.msrb.mxu3 %v3768_v54  ;;  %v3432_v0 = vor.u32 %v4276_v51, %v3431_v49  ;;  %v3415_v2 = vld [vmem:[#allocation2 + $0x508] sm:$0xf]  ;;  %v3688_v5 = vor.u32 %v4340_v56, %v3687_v55  ;;  %v4304_v6 = vld [vmem:[#allocation2 + $0x614] sm:$0xf0]  ;;  %v3129_v39 = vld [vmem:[#allocation2 + $0x2d8] sm:$0xf0] }
  0xb8   :  { %1873 = vmatpush.bf16.msrb.mxu0 %v3368_v60  ;;  %v4240_v60 = vld [vmem:[#allocation2 + $0x414] sm:$0xf0]  ;;  %v3543_v4 = vld [vmem:[#allocation2 + $0x608] sm:$0xf]  ;;  %v4162_v48 = vld [vmem:[#allocation2 + $0x1ac] sm:$0xf] }
  0xb9   :  { %v3671_v7 = vld [vmem:[#allocation2 + $0x708] sm:$0xf]  ;;  %v4336_v8 = vld [vmem:[#allocation2 + $0x714] sm:$0xf0]  ;;  %v3288_v15 = vor.u32 %v4240_v60, %v3287_v59  ;;  %v3544_v22 = vor.u32 %v4304_v6, %v3543_v4  ;;  %v4194_v51 = vld [vmem:[#allocation2 + $0x2ac] sm:$0xf] }
  0xba   :  { %1886 = vmatpush.bf16.msrb.mxu1 %v3496_v61  ;;  %1899 = vmatpush.bf16.msrb.mxu2 %v3624_v62  ;;  %v1633_v41 = vpop.f32.mrf.mxu1  ;;  %v1622_v62 = vpop.f32.mrf.mxu0  ;;  %v3113_v52 = vld [vmem:[#allocation2 + $0x2b8] sm:$0xf0]  ;;  %v4226_v53 = vld [vmem:[#allocation2 + $0x3ac] sm:$0xf] }
  0xbb   :  { %1912 = vmatpush.bf16.msrb.mxu3 %v3752_v3  ;;  %v1634_v44 = vadd.f32 %v1633_v41, %v1620_v25  ;;  %v4272_v3 = vld [vmem:[#allocation2 + $0x514] sm:$0xf0]  ;;  %v1648_v14 = vpop.f32.mrf.mxu2  ;;  %v3672_v25 = vor.u32 %v4336_v8, %v3671_v7  ;;  %v4230_v41 = vld [vmem:[#allocation2 + $0x3cc] sm:$0xf]  ;;  %v2841_v59 = vld [vmem:[#allocation2 + $0x98] sm:$0xf0] }
  0xbc   :  { %1874 = vmatpush.bf16.msrb.mxu0 %v3352_v10  ;;  %v4138_v10 = vld [vmem:[#allocation2 + $0xec] sm:$0xf]  ;;  %v3416_v21 = vor.u32 %v4272_v3, %v3415_v2  ;;  %v3097_v2 = vld [vmem:[#allocation2 + $0x298] sm:$0xf0] }
  0xbd   :  { %v1647_v54 = vadd.f32 %v1646_v42, %v1634_v44  ;;  %v3257_v42 = vld [vmem:[#allocation2 + $0x3d8] sm:$0xf0]  ;;  %v4158_v60 = vld [vmem:[#allocation2 + $0x18c] sm:$0xf] }
  0xbe   :  { %1887 = vmatpush.bf16.msrb.mxu1 %v3480_v11  ;;  %1900 = vmatpush.bf16.msrb.mxu2 %v3608_v12  ;;  %v2889_v11 = vld [vmem:[#allocation2 + $0xf8] sm:$0xf0]  ;;  %v4170_v12 = vld [vmem:[#allocation2 + $0x1ec] sm:$0xf]  ;;  %v3260_v49 = vor.u32 %v4230_v41, %v3257_v42 }
  0xbf   :  { %1913 = vmatpush.bf16.msrb.mxu3 %v3736_v18  ;;  %v1659_v57 = vpop.f32.mrf.mxu3  ;;  %v3017_v18 = vld [vmem:[#allocation2 + $0x1f8] sm:$0xf0]  ;;  %v4222_v3 = vld [vmem:[#allocation2 + $0x38c] sm:$0xf] }
  0xc0   :  { %1875 = vmatpush.bf16.msrb.mxu0 %v3336_v24  ;;  %v4615_v61 = vadd.f32 %v1659_v57, %v1647_v54  ;;  %v3273_v24 = vld [vmem:[#allocation2 + $0x3f8] sm:$0xf0]  ;;  %v3116_v57 = vor.u32 %v4194_v51, %v3113_v52  ;;  %v4210_v52 = vld [vmem:[#allocation2 + $0x32c] sm:$0xf] }
  0xc1   :  { %v3276_v33 = vor.u32 %v4234_v23, %v3273_v24  ;;  %v3241_v54 = vld [vmem:[#allocation2 + $0x3b8] sm:$0xf0] }
  0xc2   :  { %1888 = vmatpush.bf16.msrb.mxu1 %v3464_v26  ;;  %1901 = vmatpush.bf16.msrb.mxu2 %v3592_v27  ;;  %v1635_v13 = vpop.f32.mrf.mxu1  ;;  %v2892_v26 = vor.u32 %v4138_v10, %v2889_v11  ;;  %v3020_v27 = vor.u32 %v4170_v12, %v3017_v18  ;;  %v3244_v62 = vor.u32 %v4226_v53, %v3241_v54  ;;  %v3225_v4 = vld [vmem:[#allocation2 + $0x398] sm:$0xf0]  ;;  %v4122_v10 = vld [vmem:[#allocation2 + $0x6c] sm:$0xf] }
  0xc3   :  { %1914 = vmatpush.bf16.msrb.mxu3 %v3720_v31  ;;  %v4166_v31 = vld [vmem:[#allocation2 + $0x1cc] sm:$0xf]  ;;  %v2825_v11 = vld [vmem:[#allocation2 + $0x78] sm:$0xf0]  ;;  %v3228_v14 = vor.u32 %v4222_v3, %v3225_v4 }
  0xc4   :  { %1876 = vmatpush.bf16.msrb.mxu0 %v3320_v43  ;;  %v2876_v43 = vor.u32 %v4134_v29, %v2873_v30  ;;  %v3004_v44 = vor.u32 %v4166_v31, %v3001_v35  ;;  %v4154_v12 = vld [vmem:[#allocation2 + $0x16c] sm:$0xf]  ;;  %v2937_v30 = vld [vmem:[#allocation2 + $0x158] sm:$0xf0] }
  0xc5   :  { %v4186_v18 = vld [vmem:[#allocation2 + $0x26c] sm:$0xf]  ;;  %v3049_v51 = vld [vmem:[#allocation2 + $0x238] sm:$0xf0] }
  0xc6   :  { %1889 = vmatpush.bf16.msrb.mxu1 %v3448_v45  ;;  %1902 = vmatpush.bf16.msrb.mxu2 %v3576_v46  ;;  %v3132_v45 = vor.u32 %v4198_v36, %v3129_v39  ;;  %v4130_v46 = vld [vmem:[#allocation2 + $0xac] sm:$0xf]  ;;  %v3084_v24 = vor.u32 %v4186_v18, %v3081_v19  ;;  %v3193_v36 = vld [vmem:[#allocation2 + $0x358] sm:$0xf0] }
  0xc7   :  { %1915 = vmatpush.bf16.msrb.mxu3 %v3704_v50  ;;  %v1661_v32 = vpop.f32.mrf.mxu3  ;;  %v2985_v50 = vld [vmem:[#allocation2 + $0x1b8] sm:$0xf0]  ;;  %v2860_v55 = vor.u32 %v4130_v46, %v2857_v47  ;;  %v4182_v31 = vld [vmem:[#allocation2 + $0x24c] sm:$0xf] }
  0xc8   :  { %1877 = vmatpush.bf16.msrb.mxu0 %v3304_v58  ;;  %v2988_v56 = vor.u32 %v4162_v48, %v2985_v50  ;;  %v4126_v58 = vld [vmem:[#allocation2 + $0x8c] sm:$0xf]  ;;  %v3065_v32 = vld [vmem:[#allocation2 + $0x258] sm:$0xf0] }
  0xc9   :  { %v4214_v35 = vld [vmem:[#allocation2 + $0x34c] sm:$0xf]  ;;  %v3177_v53 = vld [vmem:[#allocation2 + $0x338] sm:$0xf0] }
  0xca   :  { %1890 = vmatpush.bf16.msrb.mxu1 %v3432_v0  ;;  %1903 = vmatpush.bf16.msrb.mxu2 %v3560_v1  ;;  %v2969_v0 = vld [vmem:[#allocation2 + $0x198] sm:$0xf0]  ;;  %v4190_v1 = vld [vmem:[#allocation2 + $0x28c] sm:$0xf]  ;;  %v3196_v48 = vor.u32 %v4214_v35, %v3193_v36 }
  0xcb   :  { %1916 = vmatpush.bf16.msrb.mxu3 %v3688_v5  ;;  %v2844_v5 = vor.u32 %v4126_v58, %v2841_v59  ;;  %v2972_v7 = vor.u32 %v4158_v60, %v2969_v0  ;;  %v3100_v8 = vor.u32 %v4190_v1, %v3097_v2  ;;  %v4146_v46 = vld [vmem:[#allocation2 + $0x12c] sm:$0xf]  ;;  %v2905_v60 = vld [vmem:[#allocation2 + $0x118] sm:$0xf0]  ;;  %v3180_v1 = vor.u32 %v4210_v52, %v3177_v53 }
  0xcc   :  { %1878 = vmatpush.bf16.msrb.mxu0 %v3288_v15  ;;  %v4621_v6 = vpop.f32.mrf.mxu0  ;;  %v2953_v15 = vld [vmem:[#allocation2 + $0x178] sm:$0xf0]  ;;  %v4178_v50 = vld [vmem:[#allocation2 + $0x22c] sm:$0xf] }
  0xcd   :  { %v2956_v23 = vor.u32 %v4154_v12, %v2953_v15  ;;  %v3052_v58 = vor.u32 %v4178_v50, %v3049_v51  ;;  %v4142_v59 = vld [vmem:[#allocation2 + $0x10c] sm:$0xf]  ;;  %v3033_v2 = vld [vmem:[#allocation2 + $0x218] sm:$0xf0] }
  0xce   :  { %1891 = vmatpush.bf16.msrb.mxu1 %v3416_v21  ;;  %1904 = vmatpush.bf16.msrb.mxu2 %v3544_v22  ;;  %v4623_v13 = vpop.f32.mrf.mxu1  ;;  %v3209_v21 = vld [vmem:[#allocation2 + $0x378] sm:$0xf0]  ;;  %v2828_v22 = vor.u32 %v4122_v10, %v2825_v11  ;;  %v4206_v3 = vld [vmem:[#allocation2 + $0x30c] sm:$0xf]  ;;  %v2908_v18 = vor.u32 %v4142_v59, %v2905_v60 }
  0xcf   :  { %1917 = vmatpush.bf16.msrb.mxu3 %v3672_v25  ;;  %1879 = vmatmul.bf16.vlgmr.msrb.gmra.mxu0 %v4593_v37  ;;  %v4118_v25 = vld [vmem:[#allocation2 + $0x4c] sm:$0xf]  ;;  %v3212_v29 = vor.u32 %v4218_v20, %v3209_v21  ;;  %v3161_v4 = vld [vmem:[#allocation2 + $0x318] sm:$0xf0] }
  0xd0   :  { %1923 = vmatpush.bf16.msra.mxu0 %v2892_v26  ;;  %v2809_v26 = vld [vmem:[#allocation2 + $0x58] sm:$0xf0]  ;;  %v4298_v10 = vld [vmem:[#allocation2 + $0x5ec] sm:$0xf] }
  0xd1   :  { %1905 = vmatmul.bf16.vlgmr.msrb.gmra.mxu2 %v4591_v34  ;;  %1892 = vmatmul.bf16.vlgmr.msrb.gmra.mxu1 %v4597_v40  ;;  %v2812_v39 = vor.u32 %v4118_v25, %v2809_v26  ;;  %v3529_v12 = vld [vmem:[#allocation2 + $0x5f8] sm:$0xf0]  ;;  %v4362_v20 = vld [vmem:[#allocation2 + $0x7ec] sm:$0xf] }
  0xd2   :  { %1936 = vmatpush.bf16.msra.mxu1 %v3020_v27  ;;  %1949 = vmatpush.bf16.msra.mxu2 %v3148_v28  ;;  %v4150_v27 = vld [vmem:[#allocation2 + $0x14c] sm:$0xf]  ;;  %v3657_v15 = vld [vmem:[#allocation2 + $0x6f8] sm:$0xf0] }
  0xd3   :  { %1962 = vmatpush.bf16.msra.mxu3 %v3276_v33  ;;  %v2940_v42 = vor.u32 %v4150_v27, %v2937_v30  ;;  %v3785_v21 = vld [vmem:[#allocation2 + $0x7f8] sm:$0xf0]  ;;  %v4262_v26 = vld [vmem:[#allocation2 + $0x4cc] sm:$0xf] }
  0xd4   :  { %1918 = vmatmul.bf16.vlgmr.msrb.gmra.mxu3 %v4595_v38  ;;  %1924 = vmatpush.bf16.msra.mxu0 %v2876_v43  ;;  %v4625_v28 = vpop.f32.mrf.mxu2  ;;  %v1674_v41 = vpop.f32.mrf.mxu0  ;;  %v3068_v43 = vor.u32 %v4182_v31, %v3065_v32  ;;  %v3385_v27 = vld [vmem:[#allocation2 + $0x4d8] sm:$0xf0]  ;;  %v3788_v30 = vor.u32 %v4362_v20, %v3785_v21  ;;  %v4326_v32 = vld [vmem:[#allocation2 + $0x6cc] sm:$0xf] }
  0xd5   :  { %v3513_v31 = vld [vmem:[#allocation2 + $0x5d8] sm:$0xf0]  ;;  %v4358_v36 = vld [vmem:[#allocation2 + $0x7cc] sm:$0xf]  ;;  %v3388_v41 = vor.u32 %v4262_v26, %v3385_v27 }
  0xd6   :  { %1937 = vmatpush.bf16.msra.mxu1 %v3004_v44  ;;  %1950 = vmatpush.bf16.msra.mxu2 %v3132_v45  ;;  %v4114_v44 = vld [vmem:[#allocation2 + $0x2c] sm:$0xf]  ;;  %v2793_v45 = vld [vmem:[#allocation2 + $0x38] sm:$0xf0]  ;;  %v1687_v47 = vpop.f32.mrf.mxu1 }
  0xd7   :  { %1963 = vmatpush.bf16.msra.mxu3 %v3260_v49  ;;  %v4627_v33 = vpop.f32.mrf.mxu3  ;;  %v2921_v49 = vld [vmem:[#allocation2 + $0x138] sm:$0xf0]  ;;  %v2796_v54 = vor.u32 %v4114_v44, %v2793_v45  ;;  %v4258_v44 = vld [vmem:[#allocation2 + $0x4ac] sm:$0xf] }
  0xd8   :  { %1925 = vmatpush.bf16.msra.mxu0 %v2860_v55  ;;  %v4110_v55 = vld [vmem:[#allocation2 + $0xc] sm:$0xf]  ;;  %v3641_v35 = vld [vmem:[#allocation2 + $0x6d8] sm:$0xf0] }
  0xd9   :  { %v3369_v45 = vld [vmem:[#allocation2 + $0x4b8] sm:$0xf0]  ;;  %v4354_v51 = vld [vmem:[#allocation2 + $0x7ac] sm:$0xf] }
  0xda   :  { %1938 = vmatpush.bf16.msra.mxu1 %v2988_v56  ;;  %1951 = vmatpush.bf16.msra.mxu2 %v3116_v57  ;;  %v2777_v56 = vld [vmem:[#allocation2 + $0x18] sm:$0xf0]  ;;  %v2924_v57 = vor.u32 %v4146_v46, %v2921_v49  ;;  %v4290_v46 = vld [vmem:[#allocation2 + $0x5ac] sm:$0xf]  ;;  %v3372_v53 = vor.u32 %v4258_v44, %v3369_v45 }
  0xdb   :  { %1964 = vmatpush.bf16.msra.mxu3 %v3244_v62  ;;  %v4174_v62 = vld [vmem:[#allocation2 + $0x20c] sm:$0xf]  ;;  %v2780_v11 = vor.u32 %v4110_v55, %v2777_v56  ;;  %v3625_v50 = vld [vmem:[#allocation2 + $0x6b8] sm:$0xf0] }
  0xdc   :  { %1926 = vmatpush.bf16.msra.mxu0 %v2844_v5  ;;  %v1700_v0 = vpop.f32.mrf.mxu2  ;;  %v3036_v19 = vor.u32 %v4174_v62, %v3033_v2  ;;  %v4322_v49 = vld [vmem:[#allocation2 + $0x6ac] sm:$0xf]  ;;  %v3753_v52 = vld [vmem:[#allocation2 + $0x7b8] sm:$0xf0] }
  0xdd   :  { %v3628_v55 = vor.u32 %v4322_v49, %v3625_v50  ;;  %v4254_v56 = vld [vmem:[#allocation2 + $0x48c] sm:$0xf]  ;;  %v3481_v59 = vld [vmem:[#allocation2 + $0x598] sm:$0xf0] }
  0xde   :  { %1939 = vmatpush.bf16.msra.mxu1 %v2972_v7  ;;  %1952 = vmatpush.bf16.msra.mxu2 %v3100_v8  ;;  %v4266_v7 = vld [vmem:[#allocation2 + $0x4ec] sm:$0xf]  ;;  %v3401_v8 = vld [vmem:[#allocation2 + $0x4f8] sm:$0xf0] }
  0xdf   :  { %1965 = vmatpush.bf16.msra.mxu3 %v3228_v14  ;;  %v1713_v5 = vpop.f32.mrf.mxu3  ;;  %v4330_v14 = vld [vmem:[#allocation2 + $0x6ec] sm:$0xf]  ;;  %v3609_v62 = vld [vmem:[#allocation2 + $0x698] sm:$0xf0] }
  0xe0   :  { %1927 = vmatpush.bf16.msra.mxu0 %v2828_v22  ;;  %v3164_v22 = vor.u32 %v4206_v3, %v3161_v4  ;;  %v3660_v25 = vor.u32 %v4330_v14, %v3657_v15  ;;  %v4318_v60 = vld [vmem:[#allocation2 + $0x68c] sm:$0xf]  ;;  %v3337_v4 = vld [vmem:[#allocation2 + $0x478] sm:$0xf0]  ;;  %v330_v14 = vld [vmem:[%s4742_s2] sm:$0xf] }
  0xe1   :  { %v4350_v0 = vld [vmem:[#allocation2 + $0x78c] sm:$0xf]  ;;  %v3612_v3 = vor.u32 %v4318_v60, %v3609_v62  ;;  %2030 = vst [vmem:[#allocation1] ss:$9 sm:$0xff] %v330_v14  ;;  %v3449_v27 = vld [vmem:[#allocation2 + $0x558] sm:$0xf0] }
  0xe2   :  { %1940 = vmatpush.bf16.msra.mxu1 %v2956_v23  ;;  %1953 = vmatpush.bf16.msra.mxu2 %v3084_v24  ;;  %v3404_v23 = vor.u32 %v4266_v7, %v3401_v8  ;;  %v3532_v24 = vor.u32 %v4298_v10, %v3529_v12  ;;  %v4282_v5 = vld [vmem:[#allocation2 + $0x56c] sm:$0xf]  ;;  %v3465_v7 = vld [vmem:[#allocation2 + $0x578] sm:$0xf0] }
  0xe3   :  { %1966 = vmatpush.bf16.msra.mxu3 %v3212_v29  ;;  %v4294_v29 = vld [vmem:[#allocation2 + $0x5cc] sm:$0xf]  ;;  %v3593_v12 = vld [vmem:[#allocation2 + $0x678] sm:$0xf0]  ;;  %v3468_v20 = vor.u32 %v4282_v5, %v3465_v7  ;;  %v3911_v5 = vld [vmem:[#allocation4 + $0xf0] sm:$0xf] }
  0xe4   :  { %1928 = vmatpush.bf16.msra.mxu0 %v2812_v39  ;;  %v3769_v39 = vld [vmem:[#allocation2 + $0x7d8] sm:$0xf0]  ;;  %v4346_v15 = vld [vmem:[#allocation2 + $0x76c] sm:$0xf]  ;;  %v4396_v7 = vld [vmem:[#allocation4 + $0xf4] sm:$0xf0] }
  0xe5   :  { %v3772_v47 = vor.u32 %v4358_v36, %v3769_v39  ;;  %v3305_v44 = vld [vmem:[#allocation2 + $0x438] sm:$0xf0]  ;;  %v4274_v45 = vld [vmem:[#allocation2 + $0x52c] sm:$0xf] }
  0xe6   :  { %1941 = vmatpush.bf16.msra.mxu1 %v2940_v42  ;;  %1954 = vmatpush.bf16.msra.mxu2 %v3068_v43  ;;  %v3516_v42 = vor.u32 %v4294_v29, %v3513_v31  ;;  %v3644_v43 = vor.u32 %v4326_v32, %v3641_v35  ;;  %v4310_v29 = vld [vmem:[#allocation2 + $0x64c] sm:$0xf]  ;;  %v3705_v35 = vld [vmem:[#allocation2 + $0x758] sm:$0xf0] }
  0xe7   :  { %1967 = vmatpush.bf16.msra.mxu3 %v3196_v48  ;;  %v3497_v48 = vld [vmem:[#allocation2 + $0x5b8] sm:$0xf0]  ;;  %v4342_v32 = vld [vmem:[#allocation2 + $0x74c] sm:$0xf] }
  0xe8   :  { %1929 = vmatpush.bf16.msra.mxu0 %v2796_v54  ;;  %v3500_v54 = vor.u32 %v4290_v46, %v3497_v48  ;;  %v3433_v48 = vld [vmem:[#allocation2 + $0x538] sm:$0xf0]  ;;  %v4306_v49 = vld [vmem:[#allocation2 + $0x62c] sm:$0xf] }
  0xe9   :  { %v3561_v50 = vld [vmem:[#allocation2 + $0x638] sm:$0xf0]  ;;  %v4302_v62 = vld [vmem:[#allocation2 + $0x60c] sm:$0xf] }
  0xea   :  { %1942 = vmatpush.bf16.msra.mxu1 %v2924_v57  ;;  %1955 = vmatpush.bf16.msra.mxu2 %v3052_v58  ;;  %v3353_v57 = vld [vmem:[#allocation2 + $0x498] sm:$0xf0]  ;;  %v3756_v58 = vor.u32 %v4354_v51, %v3753_v52  ;;  %v4338_v51 = vld [vmem:[#allocation2 + $0x72c] sm:$0xf] }
  0xeb   :  { %1968 = vmatpush.bf16.msra.mxu3 %v3180_v1  ;;  %v4250_v1 = vld [vmem:[#allocation2 + $0x46c] sm:$0xf]  ;;  %v3689_v52 = vld [vmem:[#allocation2 + $0x738] sm:$0xf0] }
  0xec   :  { %1930 = vmatpush.bf16.msra.mxu0 %v2780_v11  ;;  %v4633_v2 = vpop.f32.mrf.mxu0  ;;  %v4314_v11 = vld [vmem:[#allocation2 + $0x66c] sm:$0xf]  ;;  %v3692_v60 = vor.u32 %v4338_v51, %v3689_v52 }
  0xed   :  { %v3596_v21 = vor.u32 %v4314_v11, %v3593_v12 }
  0xee   :  { %1943 = vmatpush.bf16.msra.mxu1 %v2908_v18  ;;  %1956 = vmatpush.bf16.msra.mxu2 %v3036_v19  ;;  %v4635_v8 = vpop.f32.mrf.mxu1  ;;  %v3721_v18 = vld [vmem:[#allocation2 + $0x778] sm:$0xf0]  ;;  %v3340_v19 = vor.u32 %v4250_v1, %v3337_v4 }
  0xef   :  { %1969 = vmatpush.bf16.msra.mxu3 %v3164_v22  ;;  %1931 = vmatmul.bf16.vlgmr.msra.gmra.mxu0 %v4564_v9  ;;  %v3737_v9 = vld [vmem:[#allocation2 + $0x798] sm:$0xf0]  ;;  %v4246_v22 = vld [vmem:[#allocation2 + $0x44c] sm:$0xf]  ;;  %v3724_v26 = vor.u32 %v4346_v15, %v3721_v18  ;;  %v1738_v15 = vadd.f32 %v4635_v8, %v4633_v2  ;;  %v3912_v18 = vor.u32 %v4396_v7, %v3911_v5  ;;  %v3895_v2 = vld [vmem:[#allocation4 + $0xd0] sm:$0xf] }
  0xf0   :  { %1975 = vmatpush.bf16.msrb.mxu0 %v3404_v23  ;;  %v3740_v10 = vor.u32 %v4350_v0, %v3737_v9  ;;  %v3321_v23 = vld [vmem:[#allocation2 + $0x458] sm:$0xf0]  ;;  %v4334_v9 = vld [vmem:[#allocation2 + $0x70c] sm:$0xf]  ;;  %v4392_v8 = vld [vmem:[#allocation4 + $0xd4] sm:$0xf0] }
  0xf1   :  { %1957 = vmatmul.bf16.vlgmr.msra.gmra.mxu2 %v4558_v63  ;;  %1944 = vmatmul.bf16.vlgmr.msra.gmra.mxu1 %v4574_v17  ;;  %v4286_v63 = vld [vmem:[#allocation2 + $0x58c] sm:$0xf]  ;;  %v3324_v36 = vor.u32 %v4246_v22, %v3321_v23  ;;  %v3545_v0 = vld [vmem:[#allocation2 + $0x618] sm:$0xf0]  ;;  %v4394_v22 = vld [vmem:[#allocation4 + $0xe4] sm:$0xf0] }
  0xf2   :  { %1988 = vmatpush.bf16.msrb.mxu1 %v3532_v24  ;;  %2001 = vmatpush.bf16.msrb.mxu2 %v3660_v25  ;;  %v3484_v17 = vor.u32 %v4286_v63, %v3481_v59  ;;  %v4278_v24 = vld [vmem:[#allocation2 + $0x54c] sm:$0xf]  ;;  %v3673_v1 = vld [vmem:[#allocation2 + $0x718] sm:$0xf0]  ;;  %v3548_v11 = vor.u32 %v4302_v62, %v3545_v0 }
  0xf3   :  { %2014 = vmatpush.bf16.msrb.mxu3 %v3788_v30  ;;  %v3577_v30 = vld [vmem:[#allocation2 + $0x658] sm:$0xf0]  ;;  %v4270_v63 = vld [vmem:[#allocation2 + $0x50c] sm:$0xf]  ;;  %v3676_v12 = vor.u32 %v4334_v9, %v3673_v1  ;;  %v3799_v1 = vld [vmem:[#allocation4 + $0x10] sm:$0xf] }
  0xf4   :  { %1970 = vmatmul.bf16.vlgmr.msra.gmra.mxu3 %v4572_v16  ;;  %1976 = vmatpush.bf16.msrb.mxu0 %v3388_v41  ;;  %v3356_v16 = vor.u32 %v4254_v56, %v3353_v57  ;;  %v4640_v25 = vpop.f32.mrf.mxu2  ;;  %v1726_v39 = vpop.f32.mrf.mxu0  ;;  %v3452_v41 = vor.u32 %v4278_v24, %v3449_v27  ;;  %v3564_v56 = vor.u32 %v4306_v49, %v3561_v50  ;;  %v3289_v57 = vld [vmem:[#allocation2 + $0x418] sm:$0xf0]  ;;  %v3831_v27 = vld [vmem:[#allocation4 + $0x50] sm:$0xf] }
  0xf5   :  { %v1751_v24 = vadd.f32 %v4640_v25, %v1738_v15  ;;  %v3887_v39 = vld [vmem:[#allocation4 + $0xc0] sm:$0xf] }
  0xf6   :  { %1989 = vmatpush.bf16.msrb.mxu1 %v3516_v42  ;;  %2002 = vmatpush.bf16.msrb.mxu2 %v3644_v43  ;;  %v3580_v42 = vor.u32 %v4310_v29, %v3577_v30  ;;  %v4242_v43 = vld [vmem:[#allocation2 + $0x42c] sm:$0xf]  ;;  %v1739_v46 = vpop.f32.mrf.mxu1  ;;  %v4376_v29 = vld [vmem:[#allocation4 + $0x54] sm:$0xf0]  ;;  %v1673_v30 = vadd.f32 %v4621_v6, %v4615_v61 }
  0xf7   :  { %2015 = vmatpush.bf16.msrb.mxu3 %v3772_v47  ;;  %v4642_v31 = vpop.f32.mrf.mxu3  ;;  %v3708_v47 = vor.u32 %v4342_v32, %v3705_v35  ;;  %v3832_v32 = vor.u32 %v4376_v29, %v3831_v27  ;;  %v3823_v35 = vld [vmem:[#allocation4 + $0x40] sm:$0xf]  ;;  %v4372_v46 = vld [vmem:[#allocation4 + $0x34] sm:$0xf0]  ;;  %v3849_v27 = vld [vmem:[#allocation4 + $0x78] sm:$0xf0] }
  0xf8   :  { %1977 = vmatpush.bf16.msrb.mxu0 %v3372_v53  ;;  %v3308_v53 = vor.u32 %v4242_v43, %v3305_v44  ;;  %v1764_v25 = vadd.f32 %v4642_v31, %v1751_v24  ;;  %v3879_v31 = vld [vmem:[#allocation4 + $0xb0] sm:$0xf]  ;;  %v4382_v24 = vld [vmem:[#allocation4 + $0x84] sm:$0xf0] }
  0xfa   :  { %1990 = vmatpush.bf16.msrb.mxu1 %v3500_v54  ;;  %2003 = vmatpush.bf16.msrb.mxu2 %v3628_v55  ;;  %v4238_v54 = vld [vmem:[#allocation2 + $0x40c] sm:$0xf]  ;;  %v3436_v55 = vor.u32 %v4274_v45, %v3433_v48  ;;  %v3815_v45 = vld [vmem:[#allocation4 + $0x30] sm:$0xf] }
  0xfb   :  { %2016 = vmatpush.bf16.msrb.mxu3 %v3756_v58  ;;  %v3417_v58 = vld [vmem:[#allocation2 + $0x518] sm:$0xf0]  ;;  %v3292_v4 = vor.u32 %v4238_v54, %v3289_v57  ;;  %v3816_v52 = vor.u32 %v4372_v46, %v3815_v45  ;;  %v3807_v54 = vld [vmem:[#allocation4 + $0x20] sm:$0xf] }
  0xfc   :  { %1978 = vmatpush.bf16.msrb.mxu0 %v3356_v16  ;;  %v1752_v59 = vpop.f32.mrf.mxu2  ;;  %v3833_v45 = vld [vmem:[#allocation4 + $0x58] sm:$0xf0] }
  0xfd   :  { %v3871_v59 = vld [vmem:[#allocation4 + $0xa0] sm:$0xf] }
  0xfe   :  { %1991 = vmatpush.bf16.msrb.mxu1 %v3484_v17  ;;  %2004 = vmatpush.bf16.msrb.mxu2 %v3612_v3  ;;  %v3847_v17 = vld [vmem:[#allocation4 + $0x70] sm:$0xf]  ;;  %v4380_v3 = vld [vmem:[#allocation4 + $0x74] sm:$0xf0] }
  0xff   :  { %2017 = vmatpush.bf16.msrb.mxu3 %v3740_v10  ;;  %v1765_v16 = vpop.f32.mrf.mxu3  ;;  %v3420_v10 = vor.u32 %v4270_v63, %v3417_v58  ;;  %v3848_v14 = vor.u32 %v4380_v3, %v3847_v17  ;;  %v4368_v17 = vld [vmem:[#allocation4 + $0x14] sm:$0xf0] }
 0x100   :  { %1979 = vmatpush.bf16.msrb.mxu0 %v3340_v19  ;;  %v3839_v19 = vld [vmem:[#allocation4 + $0x60] sm:$0xf]  ;;  %v3800_v15 = vor.u32 %v4368_v17, %v3799_v1  ;;  %v4369_v1 = vld [vmem:[#allocation4 + $0x24] sm:$0xf]  ;;  %v3809_v17 = vld [vmem:[#allocation4 + $0x28] sm:$0xf0] }
 0x102   :  { %1992 = vmatpush.bf16.msrb.mxu1 %v3468_v20  ;;  %2005 = vmatpush.bf16.msrb.mxu2 %v3596_v21  ;;  %v4378_v20 = vld [vmem:[#allocation4 + $0x64] sm:$0xf0]  ;;  %v3903_v21 = vld [vmem:[#allocation4 + $0xe0] sm:$0xf] }
 0x103   :  { %2018 = vmatpush.bf16.msrb.mxu3 %v3724_v26  ;;  %v3840_v23 = vor.u32 %v4378_v20, %v3839_v19  ;;  %v3904_v26 = vor.u32 %v4394_v22, %v3903_v21  ;;  %v4366_v19 = vld [vmem:[#allocation4 + $0x4] sm:$0xf0]  ;;  %v3855_v20 = vld [vmem:[#allocation4 + $0x80] sm:$0xf] }
 0x104   :  { %1980 = vmatpush.bf16.msrb.mxu0 %v3324_v36  ;;  %v4374_v36 = vld [vmem:[#allocation4 + $0x44] sm:$0xf0] }
 0x105   :  { %v3824_v43 = vor.u32 %v4374_v36, %v3823_v35  ;;  %v4377_v36 = vld [vmem:[#allocation4 + $0x64] sm:$0xf] }
 0x106   :  { %1993 = vmatpush.bf16.msrb.mxu1 %v3452_v41  ;;  %2006 = vmatpush.bf16.msrb.mxu2 %v3580_v42  ;;  %v4390_v41 = vld [vmem:[#allocation4 + $0xc4] sm:$0xf0] }
 0x107   :  { %2019 = vmatpush.bf16.msrb.mxu3 %v3708_v47  ;;  %v2032_v42 = vld [vmem:[#allocation1 + $0x9] sm:$0xff]  ;;  %v3888_v44 = vor.u32 %v4390_v41, %v3887_v39  ;;  %v4388_v47 = vld [vmem:[#allocation4 + $0xb4] sm:$0xf0]  ;;  %v3841_v39 = vld [vmem:[#allocation4 + $0x68] sm:$0xf0] }
 0x108   :  { %1981 = vmatpush.bf16.msrb.mxu0 %v3308_v53  ;;  %v2038_v49 = vpack.i.b16 %v2032_v42, %v2032_v42  ;;  %v4393_v42 = vld [vmem:[#allocation4 + $0xe4] sm:$0xf] }
 0x10a   :  { %1994 = vmatpush.bf16.msrb.mxu1 %v3436_v55  ;;  %2007 = vmatpush.bf16.msrb.mxu2 %v3564_v56  ;;  %v4370_v55 = vld [vmem:[#allocation4 + $0x24] sm:$0xf0]  ;;  %v2040_v58 = vperm.slane %v2038_v49, 0 }
 0x10b   :  { %2020 = vmatpush.bf16.msrb.mxu3 %v3692_v60  ;;  %v4386_v60 = vld [vmem:[#allocation4 + $0xa4] sm:$0xf0]  ;;  %v3808_v9 = vor.u32 %v4370_v55, %v3807_v54  ;;  %v4389_v54 = vld [vmem:[#allocation4 + $0xc4] sm:$0xf]  ;;  %v3889_v55 = vld [vmem:[#allocation4 + $0xc8] sm:$0xf0] }
 0x10c   :  { %1982 = vmatpush.bf16.msrb.mxu0 %v3292_v4  ;;  %v2052_v7 = vunpack.c.l.bf16 %v2040_v58  ;;  %v3817_v58 = vld [vmem:[#allocation4 + $0x38] sm:$0xf0] }
 0x10e   :  { %1995 = vmatpush.bf16.msrb.mxu1 %v3420_v10  ;;  %2008 = vmatpush.bf16.msrb.mxu2 %v3548_v11  ;;  %v1789_v6 = vpop.f32.mrf.mxu1  ;;  %v3863_v10 = vld [vmem:[#allocation4 + $0x90] sm:$0xf]  ;;  %v4384_v11 = vld [vmem:[#allocation4 + $0x94] sm:$0xf0] }
 0x10f   :  { %2021 = vmatpush.bf16.msrb.mxu3 %v3676_v12  ;;  %1983 = vmatmul.bf16.vlgmr.msrb.gmra.mxu0 %v4593_v37  ;;  %v3896_v37 = vor.u32 %v4392_v8, %v3895_v2  ;;  %v4395_v2 = vld [vmem:[#allocation4 + $0xf4] sm:$0xf]  ;;  %v3913_v8 = vld [vmem:[#allocation4 + $0xf8] sm:$0xf0] }
 0x110   :  { %2468 = vmatpush.bf16.msra.mxu0 %v3848_v14  ;;  %v3916_v35 = vor.u32 %v4395_v2, %v3913_v8 }
 0x111   :  { %1996 = vmatmul.bf16.vlgmr.msrb.gmra.mxu1 %v4597_v40  ;;  %2009 = vmatmul.bf16.vlgmr.msrb.gmra.mxu2 %v4591_v34  ;;  %v2031_v40 = vld [vmem:[#allocation1] sm:$0xff]  ;;  %v1686_v34 = vadd.f32 %v4623_v13, %v1673_v30  ;;  %v3880_v13 = vor.u32 %v4388_v47, %v3879_v31  ;;  %v4391_v47 = vld [vmem:[#allocation4 + $0xd4] sm:$0xf] }
 0x112   :  { %2481 = vmatpush.bf16.msra.mxu1 %v3912_v18  ;;  %2022 = vmatmul.bf16.vlgmr.msrb.gmra.mxu3 %v4595_v38  ;;  %v1776_v38 = vpop.f32.mrf.mxu0  ;;  %v2035_v48 = vpack.i.b16 %v2031_v40, %v2031_v40  ;;  %v3791_v18 = vld [vmem:[#allocation4] sm:$0xf] }
 0x113   :  { %v1777_v61 = vadd.f32 %v1776_v38, %v1764_v25  ;;  %v1699_v51 = vadd.f32 %v4625_v28, %v1686_v34  ;;  %v3872_v28 = vor.u32 %v4386_v60, %v3871_v59  ;;  %v3856_v25 = vor.u32 %v4382_v24, %v3855_v20  ;;  %v3905_v34 = vld [vmem:[#allocation4 + $0xe8] sm:$0xf0]  ;;  %v4387_v60 = vld [vmem:[#allocation4 + $0xb4] sm:$0xf]  ;;  %v3865_v20 = vld [vmem:[#allocation4 + $0x98] sm:$0xf0] }
 0x114   :  { %2469 = vmatpush.bf16.msra.mxu0 %v3840_v23  ;;  %v1802_v53 = vpop.f32.mrf.mxu2  ;;  %v2037_v63 = vperm.slane %v2035_v48, 0  ;;  %v3897_v48 = vld [vmem:[#allocation4 + $0xd8] sm:$0xf0]  ;;  %v4365_v24 = vld [vmem:[#allocation4 + $0x4] sm:$0xf] }
 0x115   :  { %v1790_v50 = vadd.f32 %v1789_v6, %v1777_v61  ;;  %v1712_v62 = vadd.f32 %v4627_v33, %v1699_v51  ;;  %v3864_v33 = vor.u32 %v4384_v11, %v3863_v10  ;;  %v3908_v61 = vor.u32 %v4393_v42, %v3905_v34  ;;  %v4375_v6 = vld [vmem:[#allocation4 + $0x54] sm:$0xf]  ;;  %v4428_v42 = vld [vmem:[#allocation4 + $0x1f4] sm:$0xf0] }
 0x116   :  { %2482 = vmatpush.bf16.msra.mxu1 %v3904_v26  ;;  %v1791_v3 = vpop.f32.mrf.mxu1  ;;  %v2051_v5 = vunpack.c.l.bf16 %v2037_v63  ;;  %v4379_v26 = vld [vmem:[#allocation4 + $0x74] sm:$0xf]  ;;  %v3836_v51 = vor.u32 %v4375_v6, %v3833_v45  ;;  %v3812_v11 = vor.u32 %v4369_v1, %v3809_v17  ;;  %v4426_v45 = vld [vmem:[#allocation4 + $0x1e4] sm:$0xf0]  ;;  %v3935_v1 = vld [vmem:[#allocation4 + $0x120] sm:$0xf] }
 0x117   :  { %v1803_v56 = vadd.f32 %v1802_v53, %v1790_v50  ;;  %v1815_v57 = vpop.f32.mrf.mxu3  ;;  %v3825_v53 = vld [vmem:[#allocation4 + $0x48] sm:$0xf0]  ;;  %v4371_v63 = vld [vmem:[#allocation4 + $0x34] sm:$0xf]  ;;  %v4385_v3 = vld [vmem:[#allocation4 + $0xa4] sm:$0xf] }
 0x118   :  { %2470 = vmatpush.bf16.msra.mxu0 %v3832_v32  ;;  %v3792_v32 = vor.u32 %v4366_v19, %v3791_v18  ;;  %v4383_v19 = vld [vmem:[#allocation4 + $0x94] sm:$0xf]  ;;  %v4402_v17 = vld [vmem:[#allocation4 + $0x124] sm:$0xf0] }
 0x119   :  { %v1816_v0 = vadd.f32 %v1815_v57, %v1803_v56  ;;  %v3892_v57 = vor.u32 %v4389_v54, %v3889_v55 }
 0x11a   :  { %2483 = vmatpush.bf16.msra.mxu1 %v3896_v37  ;;  %v1778_v16 = vpop.f32.mrf.mxu0  ;;  %v3852_v37 = vor.u32 %v4379_v26, %v3849_v27  ;;  %v3793_v26 = vld [vmem:[#allocation4 + $0x8] sm:$0xf0]  ;;  %v4381_v27 = vld [vmem:[#allocation4 + $0x84] sm:$0xf] }
 0x11b   :  { %v2027_v4 = vpack.c.bf16 %v1816_v0, %v1712_v62  ;;  %v3881_v62 = vld [vmem:[#allocation4 + $0xb8] sm:$0xf0]  ;;  %v3820_v16 = vor.u32 %v4371_v63, %v3817_v58 }
 0x11c   :  { %2471 = vmatpush.bf16.msra.mxu0 %v3824_v43  ;;  %v1804_v21 = vpop.f32.mrf.mxu2 }
 0x11d   :  { %v2047_v12 = vunpack.c.l.bf16 %v2027_v4  ;;  %v2048_v14 = vunpack.c.h.bf16 %v2027_v4  ;;  %v3873_v4 = vld [vmem:[#allocation4 + $0xa8] sm:$0xf0] }
 0x11e   :  { %2484 = vmatpush.bf16.msra.mxu1 %v3888_v44  ;;  %v3844_v44 = vor.u32 %v4377_v36, %v3841_v39  ;;  %v4412_v36 = vld [vmem:[#allocation4 + $0x174] sm:$0xf0]  ;;  %v4039_v39 = vld [vmem:[#allocation4 + $0x1f0] sm:$0xf] }
 0x11f   :  { %v2055_v22 = vadd.f32 %v2051_v5, %v2047_v12  ;;  %v2056_v23 = vadd.f32 %v2052_v7, %v2048_v14  ;;  %v1817_v29 = vpop.f32.mrf.mxu3  ;;  %v3876_v12 = vor.u32 %v4385_v3, %v3873_v4  ;;  %v4367_v14 = vld [vmem:[#allocation4 + $0x14] sm:$0xf]  ;;  %v3999_v3 = vld [vmem:[#allocation4 + $0x1a0] sm:$0xf]  ;;  %v3936_v4 = vor.u32 %v4402_v17, %v3935_v1  ;;  %v4009_v1 = vld [vmem:[#allocation4 + $0x1b8] sm:$0xf0] }
 0x120   :  { %2472 = vmatpush.bf16.msra.mxu0 %v3816_v52  ;;  %v3900_v52 = vor.u32 %v4391_v47, %v3897_v48  ;;  %v3857_v29 = vld [vmem:[#allocation4 + $0x88] sm:$0xf0]  ;;  %v3959_v48 = vld [vmem:[#allocation4 + $0x150] sm:$0xf]  ;;  %v4401_v17 = vld [vmem:[#allocation4 + $0x124] sm:$0xf] }
 0x121   :  { %v2059_v30 = vpack.c.bf16 %v2056_v23, %v2055_v22  ;;  %v3868_v23 = vor.u32 %v4383_v19, %v3865_v20  ;;  %v4416_v19 = vld [vmem:[#allocation4 + $0x194] sm:$0xf0] }
 0x122   :  { %2485 = vmatpush.bf16.msra.mxu1 %v3880_v13  ;;  %v4373_v13 = vld [vmem:[#allocation4 + $0x44] sm:$0xf] }
 0x123   :  { %v2061_v41 = vunpack.c.l.bf16 %v2059_v30  ;;  %v2062_v40 = vunpack.c.h.bf16 %v2059_v30  ;;  %v3828_v56 = vor.u32 %v4373_v13, %v3825_v53  ;;  %v3796_v30 = vor.u32 %v4365_v24, %v3793_v26  ;;  %v3951_v13 = vld [vmem:[#allocation4 + $0x140] sm:$0xf]  ;;  %v4406_v53 = vld [vmem:[#allocation4 + $0x144] sm:$0xf0] }
 0x124   :  { %2473 = vmatpush.bf16.msra.mxu0 %v3808_v9  ;;  %v3952_v58 = vor.u32 %v4406_v53, %v3951_v13  ;;  %v4398_v24 = vld [vmem:[#allocation4 + $0x104] sm:$0xf0]  ;;  %v3983_v26 = vld [vmem:[#allocation4 + $0x180] sm:$0xf]  ;;  %v4423_v13 = vld [vmem:[#allocation4 + $0x1d4] sm:$0xf] }
 0x125   :  { %v2065_v43 = vmul.f32 0.20019531, %v2061_v41  ;;  %v2066_v38 = vmul.f32 0.20019531, %v2062_v40  ;;  %v4025_v53 = vld [vmem:[#allocation4 + $0x1d8] sm:$0xf0] }
 0x126   :  { %2486 = vmatpush.bf16.msra.mxu1 %v3872_v28  ;;  %v3884_v28 = vor.u32 %v4387_v60, %v3881_v62  ;;  %v3943_v60 = vld [vmem:[#allocation4 + $0x130] sm:$0xf]  ;;  %v4404_v62 = vld [vmem:[#allocation4 + $0x134] sm:$0xf0] }
 0x127   :  { %v2075_v46 = vmax.f32 %v2061_v41, %v2065_v43  ;;  %v2076_v31 = vmax.f32 %v2062_v40, %v2066_v38  ;;  %v4040_v43 = vor.u32 %v4428_v42, %v4039_v39  ;;  %v3967_v38 = vld [vmem:[#allocation4 + $0x160] sm:$0xf] }
 0x128   :  { %2474 = vmatpush.bf16.msra.mxu0 %v3800_v15  ;;  %v3801_v15 = vld [vmem:[#allocation4 + $0x18] sm:$0xf0] }
 0x129   :  { %v2079_v49 = vpack.c.bf16 %v2075_v46, %v2075_v46  ;;  %v2080_v50 = vpack.c.bf16 %v2076_v31, %v2076_v31  ;;  %v3804_v22 = vor.u32 %v4367_v14, %v3801_v15  ;;  %2507 = vmatpush.bf16.msra.mxu3 %v4040_v43  ;;  %v4400_v14 = vld [vmem:[#allocation4 + $0x114] sm:$0xf0]  ;;  %v3991_v15 = vld [vmem:[#allocation4 + $0x190] sm:$0xf]  ;;  %v4409_v43 = vld [vmem:[#allocation4 + $0x164] sm:$0xf] }
 0x12a   :  { %2487 = vmatpush.bf16.msra.mxu1 %v3864_v33  ;;  %v3992_v20 = vor.u32 %v4416_v19, %v3991_v15 }
 0x12c   :  { %2475 = vmatpush.bf16.msra.mxu0 %v3792_v32  ;;  %v1828_v59 = vpop.f32.mrf.mxu0  ;;  %v3860_v32 = vor.u32 %v4381_v27, %v3857_v29  ;;  %v4414_v27 = vld [vmem:[#allocation4 + $0x184] sm:$0xf0] }
 0x12e   :  { %2488 = vmatpush.bf16.msra.mxu1 %v3856_v25  ;;  %v1841_v0 = vpop.f32.mrf.mxu1 }
 0x12f   :  { %2476 = vmatmul.bf16.vlgmr.msra.gmra.mxu0 %v2079_v49  ;;  %v1842_v9 = vadd.f32 %v1841_v0, %v1828_v59  ;;  %v4007_v0 = vld [vmem:[#allocation4 + $0x1b0] sm:$0xf] }
 0x130   :  { %2520 = vmatpush.bf16.msrb.mxu0 %v3852_v37 }
 0x131   :  { %2489 = vmatmul.bf16.vlgmr.msra.gmra.mxu1 %v2080_v50 }
 0x132   :  { %2533 = vmatpush.bf16.msrb.mxu1 %v3916_v35  ;;  %v3975_v35 = vld [vmem:[#allocation4 + $0x170] sm:$0xf] }
 0x133   :  { %v3976_v40 = vor.u32 %v4412_v36, %v3975_v35  ;;  %v4427_v35 = vld [vmem:[#allocation4 + $0x1f4] sm:$0xf] }
 0x134   :  { %2521 = vmatpush.bf16.msrb.mxu0 %v3844_v44  ;;  %v1854_v5 = vpop.f32.mrf.mxu2  ;;  %v1830_v18 = vpop.f32.mrf.mxu0  ;;  %v4410_v44 = vld [vmem:[#allocation4 + $0x164] sm:$0xf0] }
 0x135   :  { %v1855_v7 = vadd.f32 %v1854_v5, %v1842_v9  ;;  %2494 = vmatpush.bf16.msra.mxu2 %v3976_v40  ;;  %v3968_v6 = vor.u32 %v4410_v44, %v3967_v38  ;;  %v4420_v9 = vld [vmem:[#allocation4 + $0x1b4] sm:$0xf0]  ;;  %v4418_v5 = vld [vmem:[#allocation4 + $0x1a4] sm:$0xf0]  ;;  %v4041_v40 = vld [vmem:[#allocation4 + $0x1f8] sm:$0xf0] }
 0x136   :  { %2534 = vmatpush.bf16.msrb.mxu1 %v3908_v61  ;;  %v1843_v21 = vpop.f32.mrf.mxu1  ;;  %v4031_v61 = vld [vmem:[#allocation4 + $0x1e0] sm:$0xf]  ;;  %v4044_v42 = vor.u32 %v4427_v35, %v4041_v40  ;;  %v3969_v38 = vld [vmem:[#allocation4 + $0x168] sm:$0xf0]  ;;  %v4425_v44 = vld [vmem:[#allocation4 + $0x1e4] sm:$0xf] }
 0x137   :  { %v1867_v10 = vpop.f32.mrf.mxu3  ;;  %v4032_v31 = vor.u32 %v4426_v45, %v4031_v61  ;;  %v3972_v61 = vor.u32 %v4409_v43, %v3969_v38 }
 0x138   :  { %2522 = vmatpush.bf16.msrb.mxu0 %v3836_v51  ;;  %v4657_v33 = vadd.f32 %v1867_v10, %v1855_v7  ;;  %v4000_v10 = vor.u32 %v4418_v5, %v3999_v3  ;;  %v3937_v3 = vld [vmem:[#allocation4 + $0x128] sm:$0xf0]  ;;  %v4417_v5 = vld [vmem:[#allocation4 + $0x1a4] sm:$0xf] }
 0x139   :  { %2495 = vmatpush.bf16.msra.mxu2 %v3968_v6  ;;  %2508 = vmatpush.bf16.msra.mxu3 %v4032_v31  ;;  %v4033_v6 = vld [vmem:[#allocation4 + $0x1e8] sm:$0xf0]  ;;  %v4671_v31 = vld [vmem:[#allocation1 + $0x1b] sm:$0xff] }
 0x13a   :  { %2535 = vmatpush.bf16.msrb.mxu1 %v3900_v52  ;;  %v4424_v52 = vld [vmem:[#allocation4 + $0x1d4] sm:$0xf0] }
 0x13c   :  { %2523 = vmatpush.bf16.msrb.mxu0 %v3828_v56  ;;  %v1856_v2 = vpop.f32.mrf.mxu2  ;;  %v4015_v56 = vld [vmem:[#allocation4 + $0x1c0] sm:$0xf] }
 0x13e   :  { %2536 = vmatpush.bf16.msrb.mxu1 %v3892_v57  ;;  %v4422_v57 = vld [vmem:[#allocation4 + $0x1c4] sm:$0xf0] }
 0x13f   :  { %v1869_v8 = vpop.f32.mrf.mxu3  ;;  %v4016_v59 = vor.u32 %v4422_v57, %v4015_v56  ;;  %v3953_v56 = vld [vmem:[#allocation4 + $0x148] sm:$0xf0]  ;;  %v4421_v57 = vld [vmem:[#allocation4 + $0x1c4] sm:$0xf] }
 0x140   :  { %2524 = vmatpush.bf16.msrb.mxu0 %v3820_v16  ;;  %v3944_v16 = vor.u32 %v4404_v62, %v3943_v60  ;;  %v3984_v8 = vor.u32 %v4414_v27, %v3983_v26  ;;  %v4403_v62 = vld [vmem:[#allocation4 + $0x134] sm:$0xf]  ;;  %v4397_v27 = vld [vmem:[#allocation4 + $0x104] sm:$0xf] }
 0x142   :  { %2537 = vmatpush.bf16.msrb.mxu1 %v3884_v28  ;;  %v4008_v28 = vor.u32 %v4420_v9, %v4007_v0  ;;  %v3945_v0 = vld [vmem:[#allocation4 + $0x138] sm:$0xf0]  ;;  %v4419_v9 = vld [vmem:[#allocation4 + $0x1b4] sm:$0xf] }
 0x144   :  { %2525 = vmatpush.bf16.msrb.mxu0 %v3812_v11 }
 0x146   :  { %2538 = vmatpush.bf16.msrb.mxu1 %v3876_v12  ;;  %v3927_v12 = vld [vmem:[#allocation4 + $0x110] sm:$0xf] }
 0x147   :  { %v3928_v18 = vor.u32 %v4400_v14, %v3927_v12 }
 0x148   :  { %2526 = vmatpush.bf16.msrb.mxu0 %v3804_v22 }
 0x14a   :  { %2539 = vmatpush.bf16.msrb.mxu1 %v3868_v23  ;;  %v3919_v23 = vld [vmem:[#allocation4 + $0x100] sm:$0xf] }
 0x14b   :  { %v3920_v2 = vor.u32 %v4398_v24, %v3919_v23  ;;  %v3929_v23 = vld [vmem:[#allocation4 + $0x118] sm:$0xf0]  ;;  %v4415_v24 = vld [vmem:[#allocation4 + $0x194] sm:$0xf] }
 0x14c   :  { %2527 = vmatpush.bf16.msrb.mxu0 %v3796_v30  ;;  %v4659_v25 = vpop.f32.mrf.mxu0  ;;  %v4411_v30 = vld [vmem:[#allocation4 + $0x174] sm:$0xf] }
 0x14d   :  { %v1881_v12 = vadd.f32 %v4659_v25, %v4657_v33  ;;  %v2044_v33 = vpack.i.b16 %v4671_v31, %v4671_v31 }
 0x14e   :  { %2540 = vmatpush.bf16.msrb.mxu1 %v3860_v32  ;;  %v4661_v37 = vpop.f32.mrf.mxu1  ;;  %v3977_v32 = vld [vmem:[#allocation4 + $0x178] sm:$0xf0] }
 0x14f   :  { %2528 = vmatmul.bf16.vlgmr.msrb.gmra.mxu0 %v2079_v49  ;;  %v4408_v49 = vld [vmem:[#allocation4 + $0x154] sm:$0xf0]  ;;  %v3980_v39 = vor.u32 %v4411_v30, %v3977_v32  ;;  %v1894_v19 = vadd.f32 %v4661_v37, %v1881_v12  ;;  %v3985_v30 = vld [vmem:[#allocation4 + $0x188] sm:$0xf0]  ;;  %v2046_v43 = vperm.slane %v2044_v33, 0 }
 0x150   :  { %v3960_v51 = vor.u32 %v4408_v49, %v3959_v48  ;;  %v2147_v49 = vld [vmem:[%s4744_s4] sm:$0x3]  ;;  %v4443_v12 = vld [vmem:[%s4745_s5 + $0x70] sm:$0xff] }
 0x151   :  { %2541 = vmatmul.bf16.vlgmr.msrb.gmra.mxu1 %v2080_v50  ;;  %v4023_v50 = vld [vmem:[#allocation4 + $0x1d0] sm:$0xf]  ;;  %v4437_v33 = vld [vmem:[%s4745_s5 + $0x40] sm:$0xff] }
 0x152   :  { %v4024_v55 = vor.u32 %v4424_v52, %v4023_v50  ;;  %2496 = vmatpush.bf16.msra.mxu2 %v3960_v51  ;;  %v4407_v50 = vld [vmem:[#allocation4 + $0x154] sm:$0xf]  ;;  %v3961_v51 = vld [vmem:[#allocation4 + $0x158] sm:$0xf0] }
 0x153   :  { %v3964_v52 = vor.u32 %v4407_v50, %v3961_v51 }
 0x154   :  { %v4663_v41 = vpop.f32.mrf.mxu2  ;;  %v1882_v46 = vpop.f32.mrf.mxu0  ;;  %2509 = vmatpush.bf16.msra.mxu3 %v4024_v55  ;;  %v4405_v55 = vld [vmem:[#allocation4 + $0x144] sm:$0xf] }
 0x155   :  { %v4669_v46 = vld [vmem:[#allocation1 + $0x12] sm:$0xff]  ;;  %v1907_v37 = vadd.f32 %v4663_v41, %v1894_v19 }
 0x156   :  { %v1895_v47 = vpop.f32.mrf.mxu1  ;;  %2497 = vmatpush.bf16.msra.mxu2 %v3952_v58  ;;  %2574 = vst [vmem:[#allocation1] ss:$9 sm:$0xff] %v2147_v49  ;;  %v3956_v58 = vor.u32 %v4405_v55, %v3953_v56  ;;  %v2041_v26 = vpack.i.b16 %v4669_v46, %v4669_v46  ;;  %v4440_v19 = vld [vmem:[%s4745_s5 + $0x58] sm:$0xff] }
 0x157   :  { %v4665_v34 = vpop.f32.mrf.mxu3  ;;  %v4036_v47 = vor.u32 %v4425_v44, %v4033_v6 }
 0x158   :  { %2510 = vmatpush.bf16.msra.mxu3 %v4016_v59  ;;  %v1920_v6 = vadd.f32 %v4665_v34, %v1907_v37 }
 0x15a   :  { %2498 = vmatpush.bf16.msra.mxu2 %v3944_v16 }
 0x15c   :  { %v1908_v54 = vpop.f32.mrf.mxu2  ;;  %2511 = vmatpush.bf16.msra.mxu3 %v4008_v28  ;;  %v3948_v28 = vor.u32 %v4403_v62, %v3945_v0 }
 0x15d   :  { %v4028_v54 = vor.u32 %v4423_v13, %v4025_v53 }
 0x15e   :  { %2499 = vmatpush.bf16.msra.mxu2 %v3936_v4  ;;  %v4012_v4 = vor.u32 %v4419_v9, %v4009_v1 }
 0x15f   :  { %v1921_v63 = vpop.f32.mrf.mxu3 }
 0x160   :  { %2512 = vmatpush.bf16.msra.mxu3 %v4000_v10  ;;  %v4017_v63 = vld [vmem:[#allocation4 + $0x1c8] sm:$0xf0] }
 0x161   :  { %v4020_v60 = vor.u32 %v4421_v57, %v4017_v63  ;;  %v4001_v10 = vld [vmem:[#allocation4 + $0x1a8] sm:$0xf0] }
 0x162   :  { %2500 = vmatpush.bf16.msra.mxu2 %v3928_v18  ;;  %v4004_v15 = vor.u32 %v4417_v5, %v4001_v10  ;;  %v4444_v5 = vld [vmem:[%s4745_s5 + $0x78] sm:$0xff]  ;;  %v4435_v10 = vld [vmem:[%s4745_s5 + $0x30] sm:$0xff] }
 0x163   :  { %2745 = vmatpush.bf16.msra.mxu1 %v4444_v5 }
 0x164   :  { %2513 = vmatpush.bf16.msra.mxu3 %v3992_v20 }
 0x166   :  { %2501 = vmatpush.bf16.msra.mxu2 %v3920_v2 }
 0x167   :  { %2746 = vmatpush.bf16.msra.mxu1 %v4443_v12 }
 0x168   :  { %2514 = vmatpush.bf16.msra.mxu3 %v3984_v8  ;;  %v4413_v8 = vld [vmem:[#allocation4 + $0x184] sm:$0xf] }
 0x169   :  { %v3988_v44 = vor.u32 %v4413_v8, %v3985_v30  ;;  %v2576_v8 = vld [vmem:[#allocation1 + $0x9] sm:$0xff] }
 0x16a   :  { %2546 = vmatpush.bf16.msrb.mxu2 %v3980_v39  ;;  %v2580_v37 = vpack.i.b16 %v2576_v8, %v2576_v8 }
 0x16c   :  { %v1932_v7 = vpop.f32.mrf.mxu0  ;;  %2559 = vmatpush.bf16.msrb.mxu3 %v4044_v42  ;;  %v2043_v42 = vperm.slane %v2041_v26, 0  ;;  %v4429_v26 = vld [vmem:[%s4745_s5] sm:$0xff] }
 0x16e   :  { %v1945_v11 = vpop.f32.mrf.mxu1  ;;  %2547 = vmatpush.bf16.msrb.mxu2 %v3972_v61  ;;  %v2053_v31 = vunpack.c.l.bf16 %v2043_v42  ;;  %v2582_v42 = vperm.slane %v2580_v37, 0 }
 0x16f   :  { %v1946_v59 = vadd.f32 %v1945_v11, %v1932_v7  ;;  %v3940_v7 = vor.u32 %v4401_v17, %v3937_v3 }
 0x170   :  { %2560 = vmatpush.bf16.msrb.mxu3 %v4036_v47  ;;  %v2054_v47 = vunpack.c.l.bf16 %v2046_v43 }
 0x172   :  { %2548 = vmatpush.bf16.msrb.mxu2 %v3964_v52 }
 0x174   :  { %v1958_v21 = vpop.f32.mrf.mxu2  ;;  %v1934_v29 = vpop.f32.mrf.mxu0  ;;  %2561 = vmatpush.bf16.msrb.mxu3 %v4028_v54 }
 0x175   :  { %v1959_v16 = vadd.f32 %v1958_v21, %v1946_v59  ;;  %v4399_v21 = vld [vmem:[#allocation4 + $0x114] sm:$0xf]  ;;  %v3921_v29 = vld [vmem:[#allocation4 + $0x108] sm:$0xf0] }
 0x176   :  { %v1947_v36 = vpop.f32.mrf.mxu1  ;;  %2549 = vmatpush.bf16.msrb.mxu2 %v3956_v58  ;;  %v3932_v25 = vor.u32 %v4399_v21, %v3929_v23  ;;  %v4439_v21 = vld [vmem:[%s4745_s5 + $0x50] sm:$0xff]  ;;  %v4430_v23 = vld [vmem:[%s4745_s5 + $0x8] sm:$0xff] }
 0x177   :  { %v4667_v22 = vpop.f32.mrf.mxu3  ;;  %v3924_v36 = vor.u32 %v4397_v27, %v3921_v29 }
 0x178   :  { %2562 = vmatpush.bf16.msrb.mxu3 %v4020_v60  ;;  %v1972_v11 = vadd.f32 %v4667_v22, %v1959_v16  ;;  %v3993_v22 = vld [vmem:[#allocation4 + $0x198] sm:$0xf0] }
 0x179   :  { %v3996_v2 = vor.u32 %v4415_v24, %v3993_v22  ;;  %v4438_v24 = vld [vmem:[%s4745_s5 + $0x48] sm:$0xff] }
 0x17a   :  { %2550 = vmatpush.bf16.msrb.mxu2 %v3948_v28 }
 0x17c   :  { %v1960_v45 = vpop.f32.mrf.mxu2  ;;  %2563 = vmatpush.bf16.msrb.mxu3 %v4012_v4  ;;  %v4436_v4 = vld [vmem:[%s4745_s5 + $0x38] sm:$0xff] }
 0x17d   :  { %2732 = vmatpush.bf16.msra.mxu0 %v4436_v4 }
 0x17e   :  { %2551 = vmatpush.bf16.msrb.mxu2 %v3940_v7  ;;  %v4434_v7 = vld [vmem:[%s4745_s5 + $0x28] sm:$0xff] }
 0x17f   :  { %v1973_v48 = vpop.f32.mrf.mxu3 }
 0x180   :  { %2564 = vmatpush.bf16.msrb.mxu3 %v4004_v15  ;;  %v4441_v15 = vld [vmem:[%s4745_s5 + $0x60] sm:$0xff] }
 0x181   :  { %2733 = vmatpush.bf16.msra.mxu0 %v4435_v10 }
 0x182   :  { %2552 = vmatpush.bf16.msrb.mxu2 %v3932_v25 }
 0x184   :  { %2565 = vmatpush.bf16.msrb.mxu3 %v3996_v2  ;;  %v2575_v2 = vld [vmem:[#allocation1] sm:$0xff] }
 0x185   :  { %2734 = vmatpush.bf16.msra.mxu0 %v4434_v7  ;;  %v2577_v30 = vpack.i.b16 %v2575_v2, %v2575_v2 }
 0x186   :  { %2553 = vmatpush.bf16.msrb.mxu2 %v3924_v36 }
 0x188   :  { %2566 = vmatpush.bf16.msrb.mxu3 %v3988_v44 }
 0x18c   :  { %v1984_v14 = vpop.f32.mrf.mxu0 }
 0x18d   :  { %v1985_v20 = vadd.f32 %v1984_v14, %v1972_v11  ;;  %v4442_v11 = vld [vmem:[%s4745_s5 + $0x68] sm:$0xff]  ;;  %v4433_v14 = vld [vmem:[%s4745_s5 + $0x20] sm:$0xff] }
 0x18e   :  { %v1997_v18 = vpop.f32.mrf.mxu1  ;;  %2747 = vmatpush.bf16.msra.mxu1 %v4442_v11  ;;  %2735 = vmatpush.bf16.msra.mxu0 %v4433_v14 }
 0x18f   :  { %v1998_v32 = vadd.f32 %v1997_v18, %v1985_v20  ;;  %v4432_v18 = vld [vmem:[%s4745_s5 + $0x18] sm:$0xff]  ;;  %v4431_v20 = vld [vmem:[%s4745_s5 + $0x10] sm:$0xff] }
 0x192   :  { %2748 = vmatpush.bf16.msra.mxu1 %v4441_v15  ;;  %2736 = vmatpush.bf16.msra.mxu0 %v4432_v18 }
 0x194   :  { %v2010_v35 = vpop.f32.mrf.mxu2  ;;  %v1986_v38 = vpop.f32.mrf.mxu0 }
 0x195   :  { %v2011_v39 = vadd.f32 %v2010_v35, %v1998_v32  ;;  %v2023_v40 = vpop.f32.mrf.mxu3 }
 0x196   :  { %v1999_v61 = vpop.f32.mrf.mxu1  ;;  %2749 = vmatpush.bf16.msra.mxu1 %v4440_v19  ;;  %2737 = vmatpush.bf16.msra.mxu0 %v4431_v20 }
 0x197   :  { %v2024_v45 = vadd.f32 %v2023_v40, %v2011_v39  ;;  %v2579_v40 = vperm.slane %v2577_v30, 0 }
 0x199   :  { %v2028_v46 = vpack.c.bf16 %v2024_v45, %v1920_v6  ;;  %v2585_v61 = vunpack.c.l.bf16 %v2579_v40  ;;  %v2586_v6 = vunpack.c.l.bf16 %v2582_v42 }
 0x19a   :  { %2750 = vmatpush.bf16.msra.mxu1 %v4439_v21  ;;  %2738 = vmatpush.bf16.msra.mxu0 %v4430_v23 }
 0x19b   :  { %v2049_v41 = vunpack.c.l.bf16 %v2028_v46  ;;  %v2050_v48 = vunpack.c.h.bf16 %v2028_v46 }
 0x19c   :  { %v2012_v49 = vpop.f32.mrf.mxu2 }
 0x19d   :  { %v2057_v50 = vadd.f32 %v2053_v31, %v2049_v41  ;;  %v2058_v51 = vadd.f32 %v2054_v47, %v2050_v48  ;;  %v2025_v52 = vpop.f32.mrf.mxu3 }
 0x19e   :  { %2751 = vmatpush.bf16.msra.mxu1 %v4438_v24  ;;  %2739 = vmatpush.bf16.msra.mxu0 %v4429_v26 }
 0x19f   :  { %v2060_v13 = vpack.c.bf16 %v2058_v51, %v2057_v50 }
 0x1a1   :  { %v2063_v53 = vunpack.c.l.bf16 %v2060_v13  ;;  %v2064_v54 = vunpack.c.h.bf16 %v2060_v13 }
 0x1a2   :  { %2752 = vmatpush.bf16.msra.mxu1 %v4437_v33 }
 0x1a3   :  { %v2067_v55 = vmul.f32 0.20019531, %v2063_v53  ;;  %v2068_v56 = vmul.f32 0.20019531, %v2064_v54 }
 0x1a5   :  { %v2077_v57 = vmax.f32 %v2063_v53, %v2067_v55  ;;  %v2078_v63 = vmax.f32 %v2064_v54, %v2068_v56 }
 0x1a7   :  { %v2081_v34 = vpack.c.bf16 %v2077_v57, %v2077_v57  ;;  %v2082_v58 = vpack.c.bf16 %v2078_v63, %v2078_v63  ;;  %v2633_v57 = vld [vmem:[%s4746_s6] sm:$0x1] }
 0x1a8   :  { %v2634_v63 = vunpack.c.l.bf16 %v2633_v57 }
 0x1a9   :  { %2502 = vmatmul.bf16.vlgmr.msra.gmra.mxu2 %v2081_v34  ;;  %2515 = vmatmul.bf16.vlgmr.msra.gmra.mxu3 %v2082_v58 }
 0x1ac   :  { %v2477_v59 = vpop.f32.mrf.mxu0 }
 0x1ae   :  { %v2490_v60 = vpop.f32.mrf.mxu1 }
 0x1af   :  { %v2491_v62 = vadd.f32 %v2490_v60, %v2477_v59 }
 0x1b4   :  { %v2479_v0 = vpop.f32.mrf.mxu0 }
 0x1b6   :  { %v2492_v9 = vpop.f32.mrf.mxu1 }
 0x1b9   :  { %2554 = vmatmul.bf16.vlgmr.msrb.gmra.mxu2 %v2081_v34  ;;  %2567 = vmatmul.bf16.vlgmr.msrb.gmra.mxu3 %v2082_v58  ;;  %v2635_v34 = vperm.slane %v2634_v63, 0 }
 0x1cc   :  { %v2529_v16 = vpop.f32.mrf.mxu0 }
 0x1ce   :  { %v2542_v28 = vpop.f32.mrf.mxu1 }
 0x1cf   :  { %v2543_v1 = vadd.f32 %v2542_v28, %v2529_v16 }
 0x1d4   :  { %v2531_v17 = vpop.f32.mrf.mxu0 }
 0x1d6   :  { %v2544_v3 = vpop.f32.mrf.mxu1 }
 0x22c   :  { %v2503_v25 = vpop.f32.mrf.mxu2  ;;  %v2516_v22 = vpop.f32.mrf.mxu3 }
 0x22d   :  { %v2504_v32 = vadd.f32 %v2503_v25, %v2491_v62 }
 0x22f   :  { %v2517_v43 = vadd.f32 %v2516_v22, %v2504_v32 }
 0x234   :  { %v2505_v27 = vpop.f32.mrf.mxu2  ;;  %v2518_v29 = vpop.f32.mrf.mxu3 }
 0x23c   :  { %v2555_v35 = vpop.f32.mrf.mxu2  ;;  %v2568_v36 = vpop.f32.mrf.mxu3 }
 0x23d   :  { %v2556_v39 = vadd.f32 %v2555_v35, %v2543_v1 }
 0x23f   :  { %v2569_v38 = vadd.f32 %v2568_v36, %v2556_v39 }
 0x241   :  { %v2572_v44 = vpack.c.bf16 %v2569_v38, %v2517_v43 }
 0x243   :  { %v2583_v45 = vunpack.c.l.bf16 %v2572_v44  ;;  %v2584_v46 = vunpack.c.h.bf16 %v2572_v44 }
 0x244   :  { %v2557_v31 = vpop.f32.mrf.mxu2  ;;  %v2570_v47 = vpop.f32.mrf.mxu3 }
 0x245   :  { %v2587_v41 = vadd.f32 %v2585_v61, %v2583_v45  ;;  %v2588_v48 = vadd.f32 %v2586_v6, %v2584_v46 }
 0x247   :  { %v2589_v49 = vpack.c.bf16 %v2588_v48, %v2587_v41 }
 0x249   :  { %v2590_v50 = vunpack.c.l.bf16 %v2589_v49  ;;  %v2591_v51 = vunpack.c.h.bf16 %v2589_v49 }
 0x24b   :  { %v2592_v52 = vmul.f32 0.20019531, %v2590_v50  ;;  %v2593_v13 = vmul.f32 0.20019531, %v2591_v51 }
 0x24d   :  { %v2597_v53 = vmax.f32 %v2590_v50, %v2592_v52  ;;  %v2598_v54 = vmax.f32 %v2591_v51, %v2593_v13 }
 0x24f   :  { %v2599_v55 = vpack.c.bf16 %v2597_v53, %v2597_v53  ;;  %v2600_v56 = vpack.c.bf16 %v2598_v54, %v2598_v54 }
 0x251   :  { %2740 = vmatmul.bf16.vlgmr.msra.gmra.mxu0 %v2599_v55  ;;  %2753 = vmatmul.bf16.vlgmr.msra.gmra.mxu1 %v2600_v56 }
 0x2ce   :  { %v2741_v58 = vpop.f32.mrf.mxu0  ;;  %v2754_v59 = vpop.f32.mrf.mxu1 }
 0x2cf   :  { %v2742_v60 = vadd.f32 %v2741_v58, %v2635_v34 }
 0x2d1   :  { %v2755_v62 = vadd.f32 %v2754_v59, %v2742_v60 }
 0x2d3   :  { %2758 = vst [vmem:[%s4747_s7] sm:$0xff] %v2755_v62 }
 0x2d6   :  { %v2743_v0 = vpop.f32.mrf.mxu0  ;;  %v2756_v9 = vpop.f32.mrf.mxu1 }
 0x2d7   :  { %2763 = vsyncpa [#allocation3], 1 }
 0x2d8   :  { %2764 = vsyncpa [#allocation5], 1 }

// kernel: _mlp_forward_impl.1
= control target key start
LH: loop header
LB: loop body
LE: loop exit
PB: predicated region body
PF: predicated region fallthrough
CT: control target
= control target key end

     0   :  { %12 = vsyncpa [#allocation3], 0  ;;  %s4740_s0 = inlined_call_operand.vmem [shape: f32[8,1024], index: 0, kind: input, shape index: {}]   ;;  %s4741_s1 = inlined_call_operand.hbm [shape: bf16[1024,512], index: 1, kind: input, shape index: {}]   ;;  %s4742_s2 = inlined_call_operand.vmem [shape: bf16[1,512], index: 2, kind: input, shape index: {}]   ;;  %s4743_s3 = inlined_call_operand.hbm [shape: bf16[512,256], index: 3, kind: input, shape index: {}]   ;;  %s4744_s4 = inlined_call_operand.vmem [shape: bf16[1,256], index: 4, kind: input, shape index: {}]   ;;  %s4745_s5 = inlined_call_operand.vmem [shape: bf16[256,128], index: 5, kind: input, shape index: {}]   ;;  %s4746_s6 = inlined_call_operand.vmem [shape: bf16[1,128], index: 6, kind: input, shape index: {}]   ;;  %s4747_s7 = inlined_call_operand.vmem [shape: f32[8,128], index: 7, kind: output, shape index: {}]  }
   0x1   :  { %s20_s26 = sshll.u32 %s4741_s1, 4  ;;  %s21_s26 = int_to_ptr.hbm [resolvable:$true] %s20_s26 }
   0x2   :  { %13 = vsyncpa [#allocation5], 0  ;;  %s4503_s27 = smov [#allocation2]   ;;  %s35_s8 = sshll.u32 %s4743_s3, 4  ;;  %s36_s8 = int_to_ptr.hbm [resolvable:$true] %s35_s8 }
   0x3   :  { %s22_s28 = sshll.u32 %s4503_s27, 4  ;;  %s4504_s9 = smov 256   ;;  %s23_s28 = int_to_ptr.vmem [resolvable:$true] %s22_s28 }
   0x4   :  { %s4505_s10 = smov 16   ;;  %s4506_s11 = smov [#allocation4]  }
   0x5   :  { %28 = dma.hbm_to_vmem [thread:$0]  %s21_s26, 32768, %s23_s28, [#allocation3], %s4504_s9, %s4504_s9, %s4505_s10  }
   0x6   :  { %s37_s12 = sshll.u32 %s4506_s11, 4  ;;  %s4507_s13 = smov 128   ;;  %s38_s12 = int_to_ptr.vmem [resolvable:$true] %s37_s12 }
   0x7   :  { %s4508_s14 = smov 8  }
   0x8   :  { %43 = dma.hbm_to_vmem [thread:$0]  %s36_s8, 8192, %s38_s12, [#allocation5], %s4507_s13, %s4507_s13, %s4508_s14  }
   0x9   :  { %4499 = dma.done.wait [#allocation3], 32768  }
   0xa   :  { %4500 = vsyncadd [#allocation3], 4294934528 }
   0xb   :  { %4501 = dma.done.wait [#allocation5], 8192  }
   0xc   :  { %4502 = vsyncadd [#allocation5], 4294959104  ;;  %v2879_v0 = vld [vmem:[#allocation2 + $0xe0] sm:$0xf]  ;;  %v4139_v1 = vld [vmem:[#allocation2 + $0xec] sm:$0xf0] }
   0xd   :  { %v3007_v2 = vld [vmem:[#allocation2 + $0x1e0] sm:$0xf]  ;;  %v2880_v3 = vor.u32 %v4139_v1, %v2879_v0  ;;  %v4171_v4 = vld [vmem:[#allocation2 + $0x1ec] sm:$0xf0] }
   0xe   :  { %v3135_v5 = vld [vmem:[#allocation2 + $0x2e0] sm:$0xf]  ;;  %v4203_v6 = vld [vmem:[#allocation2 + $0x2ec] sm:$0xf0]  ;;  %v3008_v7 = vor.u32 %v4171_v4, %v3007_v2 }
   0xf   :  { %v3136_v8 = vor.u32 %v4203_v6, %v3135_v5  ;;  %v3263_v9 = vld [vmem:[#allocation2 + $0x3e0] sm:$0xf]  ;;  %v4235_v10 = vld [vmem:[#allocation2 + $0x3ec] sm:$0xf0]  ;;  %1611 = vmatpush.bf16.msra.mxu0 %v2880_v3 }
  0x10   :  { %v2863_v11 = vld [vmem:[#allocation2 + $0xc0] sm:$0xf]  ;;  %v3264_v12 = vor.u32 %v4235_v10, %v3263_v9  ;;  %v4135_v13 = vld [vmem:[#allocation2 + $0xcc] sm:$0xf0]  ;;  %1624 = vmatpush.bf16.msra.mxu1 %v3008_v7 }
  0x11   :  { %v2991_v14 = vld [vmem:[#allocation2 + $0x1c0] sm:$0xf]  ;;  %v4167_v15 = vld [vmem:[#allocation2 + $0x1cc] sm:$0xf0]  ;;  %1637 = vmatpush.bf16.msra.mxu2 %v3136_v8  ;;  %v2864_v16 = vor.u32 %v4135_v13, %v2863_v11 }
  0x12   :  { %v2992_v17 = vor.u32 %v4167_v15, %v2991_v14  ;;  %v3119_v18 = vld [vmem:[#allocation2 + $0x2c0] sm:$0xf]  ;;  %v4199_v19 = vld [vmem:[#allocation2 + $0x2cc] sm:$0xf0]  ;;  %1650 = vmatpush.bf16.msra.mxu3 %v3264_v12 }
  0x13   :  { %v3247_v20 = vld [vmem:[#allocation2 + $0x3c0] sm:$0xf]  ;;  %v3120_v21 = vor.u32 %v4199_v19, %v3119_v18  ;;  %v4231_v22 = vld [vmem:[#allocation2 + $0x3cc] sm:$0xf0]  ;;  %1612 = vmatpush.bf16.msra.mxu0 %v2864_v16 }
  0x14   :  { %v2847_v23 = vld [vmem:[#allocation2 + $0xa0] sm:$0xf]  ;;  %v4131_v24 = vld [vmem:[#allocation2 + $0xac] sm:$0xf0]  ;;  %v3248_v25 = vor.u32 %v4231_v22, %v3247_v20  ;;  %1625 = vmatpush.bf16.msra.mxu1 %v2992_v17 }
  0x15   :  { %v2975_v26 = vld [vmem:[#allocation2 + $0x1a0] sm:$0xf]  ;;  %v4163_v27 = vld [vmem:[#allocation2 + $0x1ac] sm:$0xf0]  ;;  %v2848_v29 = vor.u32 %v4131_v24, %v2847_v23  ;;  %1638 = vmatpush.bf16.msra.mxu2 %v3120_v21 }
  0x16   :  { %v3103_v28 = vld [vmem:[#allocation2 + $0x2a0] sm:$0xf]  ;;  %v4195_v30 = vld [vmem:[#allocation2 + $0x2ac] sm:$0xf0]  ;;  %v2976_v33 = vor.u32 %v4163_v27, %v2975_v26  ;;  %1651 = vmatpush.bf16.msra.mxu3 %v3248_v25 }
  0x17   :  { %v3231_v31 = vld [vmem:[#allocation2 + $0x3a0] sm:$0xf]  ;;  %v4227_v32 = vld [vmem:[#allocation2 + $0x3ac] sm:$0xf0]  ;;  %v3104_v34 = vor.u32 %v4195_v30, %v3103_v28  ;;  %1613 = vmatpush.bf16.msra.mxu0 %v2848_v29 }
  0x18   :  { %v2831_v35 = vld [vmem:[#allocation2 + $0x80] sm:$0xf]  ;;  %v4127_v36 = vld [vmem:[#allocation2 + $0x8c] sm:$0xf0]  ;;  %v3232_v38 = vor.u32 %v4227_v32, %v3231_v31  ;;  %1626 = vmatpush.bf16.msra.mxu1 %v2976_v33 }
  0x19   :  { %v2959_v37 = vld [vmem:[#allocation2 + $0x180] sm:$0xf]  ;;  %v4159_v39 = vld [vmem:[#allocation2 + $0x18c] sm:$0xf0]  ;;  %v2832_v44 = vor.u32 %v4127_v36, %v2831_v35  ;;  %1639 = vmatpush.bf16.msra.mxu2 %v3104_v34 }
  0x1a   :  { %v3087_v40 = vld [vmem:[#allocation2 + $0x280] sm:$0xf]  ;;  %v4191_v41 = vld [vmem:[#allocation2 + $0x28c] sm:$0xf0]  ;;  %v2960_v45 = vor.u32 %v4159_v39, %v2959_v37  ;;  %1652 = vmatpush.bf16.msra.mxu3 %v3232_v38 }
  0x1b   :  { %v3215_v42 = vld [vmem:[#allocation2 + $0x380] sm:$0xf]  ;;  %v4223_v43 = vld [vmem:[#allocation2 + $0x38c] sm:$0xf0]  ;;  %v3088_v46 = vor.u32 %v4191_v41, %v3087_v40  ;;  %1614 = vmatpush.bf16.msra.mxu0 %v2832_v44 }
  0x1c   :  { %v2815_v47 = vld [vmem:[#allocation2 + $0x60] sm:$0xf]  ;;  %v4123_v48 = vld [vmem:[#allocation2 + $0x6c] sm:$0xf0]  ;;  %v3216_v50 = vor.u32 %v4223_v43, %v3215_v42  ;;  %1627 = vmatpush.bf16.msra.mxu1 %v2960_v45 }
  0x1d   :  { %v2943_v49 = vld [vmem:[#allocation2 + $0x160] sm:$0xf]  ;;  %v4155_v51 = vld [vmem:[#allocation2 + $0x16c] sm:$0xf0]  ;;  %v2816_v56 = vor.u32 %v4123_v48, %v2815_v47  ;;  %1640 = vmatpush.bf16.msra.mxu2 %v3088_v46 }
  0x1e   :  { %v3071_v52 = vld [vmem:[#allocation2 + $0x260] sm:$0xf]  ;;  %v4187_v53 = vld [vmem:[#allocation2 + $0x26c] sm:$0xf0]  ;;  %v2944_v57 = vor.u32 %v4155_v51, %v2943_v49  ;;  %1653 = vmatpush.bf16.msra.mxu3 %v3216_v50 }
  0x1f   :  { %v3199_v54 = vld [vmem:[#allocation2 + $0x360] sm:$0xf]  ;;  %v4219_v55 = vld [vmem:[#allocation2 + $0x36c] sm:$0xf0]  ;;  %v3072_v58 = vor.u32 %v4187_v53, %v3071_v52  ;;  %1615 = vmatpush.bf16.msra.mxu0 %v2816_v56 }
  0x20   :  { %v2799_v59 = vld [vmem:[#allocation2 + $0x40] sm:$0xf]  ;;  %v4119_v60 = vld [vmem:[#allocation2 + $0x4c] sm:$0xf0]  ;;  %v3200_v62 = vor.u32 %v4219_v55, %v3199_v54  ;;  %1628 = vmatpush.bf16.msra.mxu1 %v2944_v57 }
  0x21   :  { %v2927_v61 = vld [vmem:[#allocation2 + $0x140] sm:$0xf]  ;;  %v4151_v63 = vld [vmem:[#allocation2 + $0x14c] sm:$0xf0]  ;;  %v2800_v4 = vor.u32 %v4119_v60, %v2799_v59  ;;  %1641 = vmatpush.bf16.msra.mxu2 %v3072_v58  ;;  %v60_v58 = vld [vmem:[%s4740_s0 + $0x10] sm:$0xff] }
  0x22   :  { %v3055_v0 = vld [vmem:[#allocation2 + $0x240] sm:$0xf]  ;;  %v4183_v1 = vld [vmem:[#allocation2 + $0x24c] sm:$0xf0]  ;;  %v2928_v5 = vor.u32 %v4151_v63, %v2927_v61  ;;  %1654 = vmatpush.bf16.msra.mxu3 %v3200_v62  ;;  %v4558_v63 = vpack.c.bf16 %v60_v58, %v60_v58 }
  0x23   :  { %v3183_v2 = vld [vmem:[#allocation2 + $0x340] sm:$0xf]  ;;  %v4215_v3 = vld [vmem:[#allocation2 + $0x34c] sm:$0xf0]  ;;  %v3056_v6 = vor.u32 %v4183_v1, %v3055_v0  ;;  %1616 = vmatpush.bf16.msra.mxu0 %v2800_v4 }
  0x24   :  { %v2783_v7 = vld [vmem:[#allocation2 + $0x20] sm:$0xf]  ;;  %v4115_v8 = vld [vmem:[#allocation2 + $0x2c] sm:$0xf0]  ;;  %v3184_v10 = vor.u32 %v4215_v3, %v3183_v2  ;;  %1629 = vmatpush.bf16.msra.mxu1 %v2928_v5  ;;  %v58_v5 = vld [vmem:[%s4740_s0] sm:$0xff] }
  0x25   :  { %v2911_v9 = vld [vmem:[#allocation2 + $0x120] sm:$0xf]  ;;  %v4147_v11 = vld [vmem:[#allocation2 + $0x12c] sm:$0xf0]  ;;  %v2784_v16 = vor.u32 %v4115_v8, %v2783_v7  ;;  %1642 = vmatpush.bf16.msra.mxu2 %v3056_v6 }
  0x26   :  { %v3039_v12 = vld [vmem:[#allocation2 + $0x220] sm:$0xf]  ;;  %v4179_v13 = vld [vmem:[#allocation2 + $0x22c] sm:$0xf0]  ;;  %v2912_v19 = vor.u32 %v4147_v11, %v2911_v9  ;;  %1655 = vmatpush.bf16.msra.mxu3 %v3184_v10  ;;  %v4564_v9 = vpack.c.bf16 %v58_v5, %v58_v5  ;;  %v4137_v5 = vld [vmem:[#allocation2 + $0xe4] sm:$0xf] }
  0x27   :  { %v3167_v14 = vld [vmem:[#allocation2 + $0x320] sm:$0xf]  ;;  %v4211_v15 = vld [vmem:[#allocation2 + $0x32c] sm:$0xf0]  ;;  %v3040_v20 = vor.u32 %v4179_v13, %v3039_v12  ;;  %1617 = vmatpush.bf16.msra.mxu0 %v2784_v16 }
  0x28   :  { %v2767_v17 = vld [vmem:[#allocation2] sm:$0xf]  ;;  %v4111_v18 = vld [vmem:[#allocation2 + $0xc] sm:$0xf0]  ;;  %v3168_v24 = vor.u32 %v4211_v15, %v3167_v14  ;;  %1630 = vmatpush.bf16.msra.mxu1 %v2912_v19 }
  0x29   :  { %v2895_v21 = vld [vmem:[#allocation2 + $0x100] sm:$0xf]  ;;  %v4143_v22 = vld [vmem:[#allocation2 + $0x10c] sm:$0xf0]  ;;  %v2768_v31 = vor.u32 %v4111_v18, %v2767_v17  ;;  %1643 = vmatpush.bf16.msra.mxu2 %v3040_v20 }
  0x2a   :  { %v3023_v23 = vld [vmem:[#allocation2 + $0x200] sm:$0xf]  ;;  %v4175_v25 = vld [vmem:[#allocation2 + $0x20c] sm:$0xf0]  ;;  %v2896_v35 = vor.u32 %v4143_v22, %v2895_v21  ;;  %1656 = vmatpush.bf16.msra.mxu3 %v3168_v24 }
  0x2b   :  { %v3151_v26 = vld [vmem:[#allocation2 + $0x300] sm:$0xf]  ;;  %v4207_v27 = vld [vmem:[#allocation2 + $0x30c] sm:$0xf0]  ;;  %v3024_v36 = vor.u32 %v4175_v25, %v3023_v23  ;;  %1618 = vmatpush.bf16.msra.mxu0 %v2768_v31 }
  0x2c   :  { %v3391_v28 = vld [vmem:[#allocation2 + $0x4e0] sm:$0xf]  ;;  %v4267_v29 = vld [vmem:[#allocation2 + $0x4ec] sm:$0xf0]  ;;  %v3152_v39 = vor.u32 %v4207_v27, %v3151_v26  ;;  %1631 = vmatpush.bf16.msra.mxu1 %v2896_v35 }
  0x2d   :  { %v3519_v30 = vld [vmem:[#allocation2 + $0x5e0] sm:$0xf]  ;;  %v4299_v32 = vld [vmem:[#allocation2 + $0x5ec] sm:$0xf0]  ;;  %v3392_v40 = vor.u32 %v4267_v29, %v3391_v28  ;;  %1644 = vmatpush.bf16.msra.mxu2 %v3024_v36 }
  0x2e   :  { %v3647_v33 = vld [vmem:[#allocation2 + $0x6e0] sm:$0xf]  ;;  %v4331_v34 = vld [vmem:[#allocation2 + $0x6ec] sm:$0xf0]  ;;  %v3520_v41 = vor.u32 %v4299_v32, %v3519_v30  ;;  %1657 = vmatpush.bf16.msra.mxu3 %v3152_v39  ;;  %1619 = vmatmul.bf16.vlgmr.msra.gmra.mxu0 %v4564_v9 }
  0x2f   :  { %v3775_v37 = vld [vmem:[#allocation2 + $0x7e0] sm:$0xf]  ;;  %v4363_v38 = vld [vmem:[#allocation2 + $0x7ec] sm:$0xf0]  ;;  %v3648_v42 = vor.u32 %v4331_v34, %v3647_v33  ;;  %1663 = vmatpush.bf16.msrb.mxu0 %v3392_v40 }
  0x30   :  { %v3375_v43 = vld [vmem:[#allocation2 + $0x4c0] sm:$0xf]  ;;  %v4263_v44 = vld [vmem:[#allocation2 + $0x4cc] sm:$0xf0]  ;;  %v3776_v46 = vor.u32 %v4363_v38, %v3775_v37  ;;  %1676 = vmatpush.bf16.msrb.mxu1 %v3520_v41  ;;  %1645 = vmatmul.bf16.vlgmr.msra.gmra.mxu2 %v4558_v63 }
  0x31   :  { %v3503_v45 = vld [vmem:[#allocation2 + $0x5c0] sm:$0xf]  ;;  %v4295_v47 = vld [vmem:[#allocation2 + $0x5cc] sm:$0xf0]  ;;  %v3376_v52 = vor.u32 %v4263_v44, %v3375_v43  ;;  %1689 = vmatpush.bf16.msrb.mxu2 %v3648_v42 }
  0x32   :  { %v3631_v48 = vld [vmem:[#allocation2 + $0x6c0] sm:$0xf]  ;;  %v4327_v49 = vld [vmem:[#allocation2 + $0x6cc] sm:$0xf0]  ;;  %v3504_v54 = vor.u32 %v4295_v47, %v3503_v45  ;;  %1702 = vmatpush.bf16.msrb.mxu3 %v3776_v46 }
  0x33   :  { %v3759_v50 = vld [vmem:[#allocation2 + $0x7c0] sm:$0xf]  ;;  %v4359_v51 = vld [vmem:[#allocation2 + $0x7cc] sm:$0xf0]  ;;  %v3632_v55 = vor.u32 %v4327_v49, %v3631_v48  ;;  %1664 = vmatpush.bf16.msrb.mxu0 %v3376_v52 }
  0x34   :  { %v3359_v53 = vld [vmem:[#allocation2 + $0x4a0] sm:$0xf]  ;;  %v4259_v56 = vld [vmem:[#allocation2 + $0x4ac] sm:$0xf0]  ;;  %v3760_v59 = vor.u32 %v4359_v51, %v3759_v50  ;;  %1677 = vmatpush.bf16.msrb.mxu1 %v3504_v54 }
  0x35   :  { %v3487_v57 = vld [vmem:[#allocation2 + $0x5a0] sm:$0xf]  ;;  %v4291_v60 = vld [vmem:[#allocation2 + $0x5ac] sm:$0xf0]  ;;  %v3360_v2 = vor.u32 %v4259_v56, %v3359_v53  ;;  %1690 = vmatpush.bf16.msrb.mxu2 %v3632_v55 }
  0x36   :  { %v3615_v61 = vld [vmem:[#allocation2 + $0x6a0] sm:$0xf]  ;;  %v4323_v62 = vld [vmem:[#allocation2 + $0x6ac] sm:$0xf0]  ;;  %v3488_v6 = vor.u32 %v4291_v60, %v3487_v57  ;;  %1703 = vmatpush.bf16.msrb.mxu3 %v3760_v59 }
  0x37   :  { %v3743_v0 = vld [vmem:[#allocation2 + $0x7a0] sm:$0xf]  ;;  %v4355_v1 = vld [vmem:[#allocation2 + $0x7ac] sm:$0xf0]  ;;  %v3616_v7 = vor.u32 %v4323_v62, %v3615_v61  ;;  %1665 = vmatpush.bf16.msrb.mxu0 %v3360_v2 }
  0x38   :  { %v3343_v3 = vld [vmem:[#allocation2 + $0x480] sm:$0xf]  ;;  %v4255_v4 = vld [vmem:[#allocation2 + $0x48c] sm:$0xf0]  ;;  %v3744_v12 = vor.u32 %v4355_v1, %v3743_v0  ;;  %1678 = vmatpush.bf16.msrb.mxu1 %v3488_v6  ;;  %v2881_v6 = vld [vmem:[#allocation2 + $0xf0] sm:$0xf0] }
  0x39   :  { %v3471_v8 = vld [vmem:[#allocation2 + $0x580] sm:$0xf]  ;;  %v61_v10 = vld [vmem:[%s4740_s0 + $0x18] sm:$0xff]  ;;  %v3344_v20 = vor.u32 %v4255_v4, %v3343_v3  ;;  %1691 = vmatpush.bf16.msrb.mxu2 %v3616_v7  ;;  %v4169_v7 = vld [vmem:[#allocation2 + $0x1e4] sm:$0xf] }
  0x3a   :  { %v59_v11 = vld [vmem:[%s4740_s0 + $0x8] sm:$0xff]  ;;  %v4287_v13 = vld [vmem:[#allocation2 + $0x58c] sm:$0xf0]  ;;  %v4572_v16 = vpack.c.bf16 %v61_v10, %v61_v10  ;;  %1704 = vmatpush.bf16.msrb.mxu3 %v3744_v12  ;;  %v3009_v10 = vld [vmem:[#allocation2 + $0x1f0] sm:$0xf0] }
  0x3b   :  { %v3599_v14 = vld [vmem:[#allocation2 + $0x680] sm:$0xf]  ;;  %v4319_v15 = vld [vmem:[#allocation2 + $0x68c] sm:$0xf0]  ;;  %v4574_v17 = vpack.c.bf16 %v59_v11, %v59_v11  ;;  %v3472_v21 = vor.u32 %v4287_v13, %v3471_v8  ;;  %1666 = vmatpush.bf16.msrb.mxu0 %v3344_v20  ;;  %v4201_v11 = vld [vmem:[#allocation2 + $0x2e4] sm:$0xf] }
  0x3c   :  { %v3727_v18 = vld [vmem:[#allocation2 + $0x780] sm:$0xf]  ;;  %v4351_v19 = vld [vmem:[#allocation2 + $0x78c] sm:$0xf0]  ;;  %1658 = vmatmul.bf16.vlgmr.msra.gmra.mxu3 %v4572_v16  ;;  %v3600_v22 = vor.u32 %v4319_v15, %v3599_v14  ;;  %v3137_v12 = vld [vmem:[#allocation2 + $0x2f0] sm:$0xf0] }
  0x3d   :  { %v3327_v23 = vld [vmem:[#allocation2 + $0x460] sm:$0xf]  ;;  %v4251_v24 = vld [vmem:[#allocation2 + $0x46c] sm:$0xf0]  ;;  %v3728_v26 = vor.u32 %v4351_v19, %v3727_v18  ;;  %1632 = vmatmul.bf16.vlgmr.msra.gmra.mxu1 %v4574_v17  ;;  %v4233_v15 = vld [vmem:[#allocation2 + $0x3e4] sm:$0xf] }
  0x3e   :  { %v3455_v25 = vld [vmem:[#allocation2 + $0x560] sm:$0xf]  ;;  %v4283_v27 = vld [vmem:[#allocation2 + $0x56c] sm:$0xf0]  ;;  %v3328_v32 = vor.u32 %v4251_v24, %v3327_v23  ;;  %1679 = vmatpush.bf16.msrb.mxu1 %v3472_v21  ;;  %1692 = vmatpush.bf16.msrb.mxu2 %v3600_v22  ;;  %v3265_v18 = vld [vmem:[#allocation2 + $0x3f0] sm:$0xf0]  ;;  %v2884_v21 = vor.u32 %v4137_v5, %v2881_v6 }
  0x3f   :  { %v3583_v28 = vld [vmem:[#allocation2 + $0x660] sm:$0xf]  ;;  %v4315_v29 = vld [vmem:[#allocation2 + $0x66c] sm:$0xf0]  ;;  %v3456_v33 = vor.u32 %v4283_v27, %v3455_v25  ;;  %1705 = vmatpush.bf16.msrb.mxu3 %v3728_v26  ;;  %v64_v19 = vld [vmem:[%s4740_s0 + $0x30] sm:$0xff]  ;;  %v3012_v25 = vor.u32 %v4169_v7, %v3009_v10  ;;  %v3140_v26 = vor.u32 %v4201_v11, %v3137_v12 }
  0x40   :  { %v3711_v30 = vld [vmem:[#allocation2 + $0x760] sm:$0xf]  ;;  %v4347_v31 = vld [vmem:[#allocation2 + $0x76c] sm:$0xf0]  ;;  %v3584_v34 = vor.u32 %v4315_v29, %v3583_v28  ;;  %1667 = vmatpush.bf16.msrb.mxu0 %v3328_v32  ;;  %v4133_v22 = vld [vmem:[#allocation2 + $0xc4] sm:$0xf] }
  0x41   :  { %v3311_v35 = vld [vmem:[#allocation2 + $0x440] sm:$0xf]  ;;  %v4247_v36 = vld [vmem:[#allocation2 + $0x44c] sm:$0xf0]  ;;  %v3712_v38 = vor.u32 %v4347_v31, %v3711_v30  ;;  %v62_v23 = vld [vmem:[%s4740_s0 + $0x20] sm:$0xff]  ;;  %v3268_v30 = vor.u32 %v4233_v15, %v3265_v18 }
  0x42   :  { %v3439_v37 = vld [vmem:[#allocation2 + $0x540] sm:$0xf]  ;;  %v4279_v39 = vld [vmem:[#allocation2 + $0x54c] sm:$0xf0]  ;;  %v3312_v44 = vor.u32 %v4247_v36, %v3311_v35  ;;  %1680 = vmatpush.bf16.msrb.mxu1 %v3456_v33  ;;  %1693 = vmatpush.bf16.msrb.mxu2 %v3584_v34  ;;  %v2865_v27 = vld [vmem:[#allocation2 + $0xd0] sm:$0xf0]  ;;  %v4591_v34 = vpack.c.bf16 %v64_v19, %v64_v19 }
  0x43   :  { %v3567_v40 = vld [vmem:[#allocation2 + $0x640] sm:$0xf]  ;;  %v4311_v41 = vld [vmem:[#allocation2 + $0x64c] sm:$0xf0]  ;;  %v3440_v45 = vor.u32 %v4279_v39, %v3439_v37  ;;  %1706 = vmatpush.bf16.msrb.mxu3 %v3712_v38  ;;  %v4165_v28 = vld [vmem:[#allocation2 + $0x1c4] sm:$0xf]  ;;  %v4593_v37 = vpack.c.bf16 %v62_v23, %v62_v23  ;;  %v2868_v39 = vor.u32 %v4133_v22, %v2865_v27 }
  0x44   :  { %v3695_v42 = vld [vmem:[#allocation2 + $0x740] sm:$0xf]  ;;  %v4343_v43 = vld [vmem:[#allocation2 + $0x74c] sm:$0xf0]  ;;  %v3568_v46 = vor.u32 %v4311_v41, %v3567_v40  ;;  %1668 = vmatpush.bf16.msrb.mxu0 %v3312_v44  ;;  %v2993_v31 = vld [vmem:[#allocation2 + $0x1d0] sm:$0xf0] }
  0x45   :  { %v3295_v47 = vld [vmem:[#allocation2 + $0x420] sm:$0xf]  ;;  %v4243_v48 = vld [vmem:[#allocation2 + $0x42c] sm:$0xf0]  ;;  %v3696_v50 = vor.u32 %v4343_v43, %v3695_v42  ;;  %v4197_v32 = vld [vmem:[#allocation2 + $0x2c4] sm:$0xf]  ;;  %v2996_v41 = vor.u32 %v4165_v28, %v2993_v31 }
  0x46   :  { %v3423_v49 = vld [vmem:[#allocation2 + $0x520] sm:$0xf]  ;;  %v4275_v51 = vld [vmem:[#allocation2 + $0x52c] sm:$0xf0]  ;;  %v3296_v56 = vor.u32 %v4243_v48, %v3295_v47  ;;  %1681 = vmatpush.bf16.msrb.mxu1 %v3440_v45  ;;  %1694 = vmatpush.bf16.msrb.mxu2 %v3568_v46  ;;  %v3121_v33 = vld [vmem:[#allocation2 + $0x2d0] sm:$0xf0] }
  0x47   :  { %v3551_v52 = vld [vmem:[#allocation2 + $0x620] sm:$0xf]  ;;  %v4307_v53 = vld [vmem:[#allocation2 + $0x62c] sm:$0xf0]  ;;  %v3424_v59 = vor.u32 %v4275_v51, %v3423_v49  ;;  %1707 = vmatpush.bf16.msrb.mxu3 %v3696_v50  ;;  %v4229_v35 = vld [vmem:[#allocation2 + $0x3c4] sm:$0xf]  ;;  %v3124_v42 = vor.u32 %v4197_v32, %v3121_v33 }
  0x48   :  { %v3679_v54 = vld [vmem:[#allocation2 + $0x720] sm:$0xf]  ;;  %v4339_v55 = vld [vmem:[#allocation2 + $0x72c] sm:$0xf0]  ;;  %v3552_v60 = vor.u32 %v4307_v53, %v3551_v52  ;;  %1669 = vmatpush.bf16.msrb.mxu0 %v3296_v56  ;;  %v3249_v36 = vld [vmem:[#allocation2 + $0x3d0] sm:$0xf0] }
  0x49   :  { %v3279_v57 = vld [vmem:[#allocation2 + $0x400] sm:$0xf]  ;;  %v4239_v58 = vld [vmem:[#allocation2 + $0x40c] sm:$0xf0]  ;;  %v3680_v1 = vor.u32 %v4339_v55, %v3679_v54  ;;  %v4129_v43 = vld [vmem:[#allocation2 + $0xa4] sm:$0xf]  ;;  %v3252_v46 = vor.u32 %v4229_v35, %v3249_v36 }
  0x4a   :  { %v3407_v61 = vld [vmem:[#allocation2 + $0x500] sm:$0xf]  ;;  %v4271_v62 = vld [vmem:[#allocation2 + $0x50c] sm:$0xf0]  ;;  %v3280_v8 = vor.u32 %v4239_v58, %v3279_v57  ;;  %1682 = vmatpush.bf16.msrb.mxu1 %v3424_v59  ;;  %1695 = vmatpush.bf16.msrb.mxu2 %v3552_v60  ;;  %v2849_v44 = vld [vmem:[#allocation2 + $0xb0] sm:$0xf0] }
  0x4b   :  { %v3535_v0 = vld [vmem:[#allocation2 + $0x600] sm:$0xf]  ;;  %v4303_v2 = vld [vmem:[#allocation2 + $0x60c] sm:$0xf0]  ;;  %v3408_v13 = vor.u32 %v4271_v62, %v3407_v61  ;;  %1708 = vmatpush.bf16.msrb.mxu3 %v3680_v1  ;;  %v4161_v45 = vld [vmem:[#allocation2 + $0x1a4] sm:$0xf]  ;;  %v2852_v52 = vor.u32 %v4129_v43, %v2849_v44 }
  0x4c   :  { %v3663_v3 = vld [vmem:[#allocation2 + $0x700] sm:$0xf]  ;;  %v4335_v4 = vld [vmem:[#allocation2 + $0x70c] sm:$0xf0]  ;;  %v3536_v14 = vor.u32 %v4303_v2, %v3535_v0  ;;  %1670 = vmatpush.bf16.msrb.mxu0 %v3280_v8  ;;  %v2977_v47 = vld [vmem:[#allocation2 + $0x1b0] sm:$0xf0] }
  0x4d   :  { %v3664_v20 = vor.u32 %v4335_v4, %v3663_v3  ;;  %v65_v24 = vld [vmem:[%s4740_s0 + $0x38] sm:$0xff]  ;;  %v63_v29 = vld [vmem:[%s4740_s0 + $0x28] sm:$0xff]  ;;  %v2980_v53 = vor.u32 %v4161_v45, %v2977_v47 }
  0x4e   :  { %1683 = vmatpush.bf16.msrb.mxu1 %v3408_v13  ;;  %1696 = vmatpush.bf16.msrb.mxu2 %v3536_v14  ;;  %v4595_v38 = vpack.c.bf16 %v65_v24, %v65_v24  ;;  %v4597_v40 = vpack.c.bf16 %v63_v29, %v63_v29  ;;  %v4193_v48 = vld [vmem:[#allocation2 + $0x2a4] sm:$0xf]  ;;  %v3105_v49 = vld [vmem:[#allocation2 + $0x2b0] sm:$0xf0] }
  0x4f   :  { %1709 = vmatpush.bf16.msrb.mxu3 %v3664_v20  ;;  %1671 = vmatmul.bf16.vlgmr.msrb.gmra.mxu0 %v4593_v37  ;;  %v4225_v50 = vld [vmem:[#allocation2 + $0x3a4] sm:$0xf]  ;;  %v3233_v51 = vld [vmem:[#allocation2 + $0x3b0] sm:$0xf0]  ;;  %v3108_v54 = vor.u32 %v4193_v48, %v3105_v49 }
  0x50   :  { %1715 = vmatpush.bf16.msra.mxu0 %v2884_v21  ;;  %v4125_v55 = vld [vmem:[#allocation2 + $0x84] sm:$0xf]  ;;  %v2833_v56 = vld [vmem:[#allocation2 + $0x90] sm:$0xf0]  ;;  %v3236_v58 = vor.u32 %v4225_v50, %v3233_v51 }
  0x51   :  { %1697 = vmatmul.bf16.vlgmr.msrb.gmra.mxu2 %v4591_v34  ;;  %1684 = vmatmul.bf16.vlgmr.msrb.gmra.mxu1 %v4597_v40  ;;  %v4157_v57 = vld [vmem:[#allocation2 + $0x184] sm:$0xf]  ;;  %v2961_v59 = vld [vmem:[#allocation2 + $0x190] sm:$0xf0]  ;;  %v2836_v1 = vor.u32 %v4125_v55, %v2833_v56 }
  0x52   :  { %1728 = vmatpush.bf16.msra.mxu1 %v3012_v25  ;;  %1741 = vmatpush.bf16.msra.mxu2 %v3140_v26  ;;  %v4189_v60 = vld [vmem:[#allocation2 + $0x284] sm:$0xf]  ;;  %v3089_v61 = vld [vmem:[#allocation2 + $0x290] sm:$0xf0]  ;;  %v2964_v2 = vor.u32 %v4157_v57, %v2961_v59 }
  0x53   :  { %1754 = vmatpush.bf16.msra.mxu3 %v3268_v30  ;;  %v4221_v62 = vld [vmem:[#allocation2 + $0x384] sm:$0xf]  ;;  %v3217_v0 = vld [vmem:[#allocation2 + $0x390] sm:$0xf0]  ;;  %v3092_v3 = vor.u32 %v4189_v60, %v3089_v61 }
  0x54   :  { %1710 = vmatmul.bf16.vlgmr.msrb.gmra.mxu3 %v4595_v38  ;;  %1716 = vmatpush.bf16.msra.mxu0 %v2868_v39  ;;  %v4121_v4 = vld [vmem:[#allocation2 + $0x64] sm:$0xf]  ;;  %v2817_v5 = vld [vmem:[#allocation2 + $0x70] sm:$0xf0]  ;;  %v3220_v7 = vor.u32 %v4221_v62, %v3217_v0 }
  0x55   :  { %v4153_v6 = vld [vmem:[#allocation2 + $0x164] sm:$0xf]  ;;  %v2945_v8 = vld [vmem:[#allocation2 + $0x170] sm:$0xf0]  ;;  %v2820_v14 = vor.u32 %v4121_v4, %v2817_v5 }
  0x56   :  { %1729 = vmatpush.bf16.msra.mxu1 %v2996_v41  ;;  %1742 = vmatpush.bf16.msra.mxu2 %v3124_v42  ;;  %v4185_v10 = vld [vmem:[#allocation2 + $0x264] sm:$0xf]  ;;  %v3073_v11 = vld [vmem:[#allocation2 + $0x270] sm:$0xf0]  ;;  %v2948_v15 = vor.u32 %v4153_v6, %v2945_v8 }
  0x57   :  { %1755 = vmatpush.bf16.msra.mxu3 %v3252_v46  ;;  %v4217_v12 = vld [vmem:[#allocation2 + $0x364] sm:$0xf]  ;;  %v3201_v13 = vld [vmem:[#allocation2 + $0x370] sm:$0xf0]  ;;  %v3076_v18 = vor.u32 %v4185_v10, %v3073_v11 }
  0x58   :  { %1717 = vmatpush.bf16.msra.mxu0 %v2852_v52  ;;  %v4117_v19 = vld [vmem:[#allocation2 + $0x44] sm:$0xf]  ;;  %v2801_v20 = vld [vmem:[#allocation2 + $0x50] sm:$0xf0]  ;;  %v3204_v22 = vor.u32 %v4217_v12, %v3201_v13 }
  0x59   :  { %v4149_v21 = vld [vmem:[#allocation2 + $0x144] sm:$0xf]  ;;  %v2929_v23 = vld [vmem:[#allocation2 + $0x150] sm:$0xf0]  ;;  %v2804_v28 = vor.u32 %v4117_v19, %v2801_v20 }
  0x5a   :  { %1730 = vmatpush.bf16.msra.mxu1 %v2980_v53  ;;  %1743 = vmatpush.bf16.msra.mxu2 %v3108_v54  ;;  %v4181_v24 = vld [vmem:[#allocation2 + $0x244] sm:$0xf]  ;;  %v3057_v25 = vld [vmem:[#allocation2 + $0x250] sm:$0xf0]  ;;  %v2932_v29 = vor.u32 %v4149_v21, %v2929_v23 }
  0x5b   :  { %1756 = vmatpush.bf16.msra.mxu3 %v3236_v58  ;;  %v4213_v26 = vld [vmem:[#allocation2 + $0x344] sm:$0xf]  ;;  %v3185_v27 = vld [vmem:[#allocation2 + $0x350] sm:$0xf0]  ;;  %v3060_v30 = vor.u32 %v4181_v24, %v3057_v25 }
  0x5c   :  { %1718 = vmatpush.bf16.msra.mxu0 %v2836_v1  ;;  %v4113_v31 = vld [vmem:[#allocation2 + $0x24] sm:$0xf]  ;;  %v2785_v32 = vld [vmem:[#allocation2 + $0x30] sm:$0xf0]  ;;  %v3188_v35 = vor.u32 %v4213_v26, %v3185_v27 }
  0x5d   :  { %v4145_v33 = vld [vmem:[#allocation2 + $0x124] sm:$0xf]  ;;  %v2913_v36 = vld [vmem:[#allocation2 + $0x130] sm:$0xf0]  ;;  %v2788_v44 = vor.u32 %v4113_v31, %v2785_v32 }
  0x5e   :  { %1731 = vmatpush.bf16.msra.mxu1 %v2964_v2  ;;  %1744 = vmatpush.bf16.msra.mxu2 %v3092_v3  ;;  %v4177_v39 = vld [vmem:[#allocation2 + $0x224] sm:$0xf]  ;;  %v3041_v41 = vld [vmem:[#allocation2 + $0x230] sm:$0xf0]  ;;  %v2916_v47 = vor.u32 %v4145_v33, %v2913_v36 }
  0x5f   :  { %1757 = vmatpush.bf16.msra.mxu3 %v3220_v7  ;;  %v4209_v42 = vld [vmem:[#allocation2 + $0x324] sm:$0xf]  ;;  %v3169_v43 = vld [vmem:[#allocation2 + $0x330] sm:$0xf0]  ;;  %v3044_v48 = vor.u32 %v4177_v39, %v3041_v41 }
  0x60   :  { %1719 = vmatpush.bf16.msra.mxu0 %v2820_v14  ;;  %v4109_v45 = vld [vmem:[#allocation2 + $0x4] sm:$0xf]  ;;  %v2769_v46 = vld [vmem:[#allocation2 + $0x10] sm:$0xf0]  ;;  %v3172_v52 = vor.u32 %v4209_v42, %v3169_v43 }
  0x61   :  { %v4141_v49 = vld [vmem:[#allocation2 + $0x104] sm:$0xf]  ;;  %v2897_v50 = vld [vmem:[#allocation2 + $0x110] sm:$0xf0]  ;;  %v2772_v59 = vor.u32 %v4109_v45, %v2769_v46 }
  0x62   :  { %1732 = vmatpush.bf16.msra.mxu1 %v2948_v15  ;;  %1745 = vmatpush.bf16.msra.mxu2 %v3076_v18  ;;  %v4173_v51 = vld [vmem:[#allocation2 + $0x204] sm:$0xf]  ;;  %v3025_v53 = vld [vmem:[#allocation2 + $0x210] sm:$0xf0]  ;;  %v2900_v0 = vor.u32 %v4141_v49, %v2897_v50 }
  0x63   :  { %1758 = vmatpush.bf16.msra.mxu3 %v3204_v22  ;;  %v4205_v54 = vld [vmem:[#allocation2 + $0x304] sm:$0xf]  ;;  %v3153_v55 = vld [vmem:[#allocation2 + $0x310] sm:$0xf0]  ;;  %v3028_v1 = vor.u32 %v4173_v51, %v3025_v53 }
  0x64   :  { %1720 = vmatpush.bf16.msra.mxu0 %v2804_v28  ;;  %v4265_v56 = vld [vmem:[#allocation2 + $0x4e4] sm:$0xf]  ;;  %v3393_v57 = vld [vmem:[#allocation2 + $0x4f0] sm:$0xf0]  ;;  %v3156_v4 = vor.u32 %v4205_v54, %v3153_v55 }
  0x65   :  { %v4297_v58 = vld [vmem:[#allocation2 + $0x5e4] sm:$0xf]  ;;  %v3521_v60 = vld [vmem:[#allocation2 + $0x5f0] sm:$0xf0]  ;;  %v3396_v5 = vor.u32 %v4265_v56, %v3393_v57 }
  0x66   :  { %1733 = vmatpush.bf16.msra.mxu1 %v2932_v29  ;;  %1746 = vmatpush.bf16.msra.mxu2 %v3060_v30  ;;  %v4329_v61 = vld [vmem:[#allocation2 + $0x6e4] sm:$0xf]  ;;  %v3649_v62 = vld [vmem:[#allocation2 + $0x6f0] sm:$0xf0]  ;;  %v3524_v6 = vor.u32 %v4297_v58, %v3521_v60 }
  0x67   :  { %1759 = vmatpush.bf16.msra.mxu3 %v3188_v35  ;;  %v4361_v2 = vld [vmem:[#allocation2 + $0x7e4] sm:$0xf]  ;;  %v3777_v3 = vld [vmem:[#allocation2 + $0x7f0] sm:$0xf0]  ;;  %v3652_v7 = vor.u32 %v4329_v61, %v3649_v62 }
  0x68   :  { %1721 = vmatpush.bf16.msra.mxu0 %v2788_v44  ;;  %v4261_v8 = vld [vmem:[#allocation2 + $0x4c4] sm:$0xf]  ;;  %v3377_v10 = vld [vmem:[#allocation2 + $0x4d0] sm:$0xf0]  ;;  %v3780_v12 = vor.u32 %v4361_v2, %v3777_v3 }
  0x69   :  { %v4293_v11 = vld [vmem:[#allocation2 + $0x5c4] sm:$0xf]  ;;  %v3505_v13 = vld [vmem:[#allocation2 + $0x5d0] sm:$0xf0]  ;;  %v3380_v20 = vor.u32 %v4261_v8, %v3377_v10 }
  0x6a   :  { %1734 = vmatpush.bf16.msra.mxu1 %v2916_v47  ;;  %1747 = vmatpush.bf16.msra.mxu2 %v3044_v48  ;;  %v4325_v14 = vld [vmem:[#allocation2 + $0x6c4] sm:$0xf]  ;;  %v3633_v15 = vld [vmem:[#allocation2 + $0x6d0] sm:$0xf0]  ;;  %v3508_v21 = vor.u32 %v4293_v11, %v3505_v13 }
  0x6b   :  { %1760 = vmatpush.bf16.msra.mxu3 %v3172_v52  ;;  %v4357_v18 = vld [vmem:[#allocation2 + $0x7c4] sm:$0xf]  ;;  %v3761_v19 = vld [vmem:[#allocation2 + $0x7d0] sm:$0xf0]  ;;  %v3636_v22 = vor.u32 %v4325_v14, %v3633_v15 }
  0x6c   :  { %1722 = vmatpush.bf16.msra.mxu0 %v2772_v59  ;;  %v4257_v23 = vld [vmem:[#allocation2 + $0x4a4] sm:$0xf]  ;;  %v3361_v24 = vld [vmem:[#allocation2 + $0x4b0] sm:$0xf0]  ;;  %v3764_v26 = vor.u32 %v4357_v18, %v3761_v19 }
  0x6d   :  { %v4289_v25 = vld [vmem:[#allocation2 + $0x5a4] sm:$0xf]  ;;  %v3489_v27 = vld [vmem:[#allocation2 + $0x5b0] sm:$0xf0]  ;;  %v3364_v32 = vor.u32 %v4257_v23, %v3361_v24 }
  0x6e   :  { %1735 = vmatpush.bf16.msra.mxu1 %v2900_v0  ;;  %1748 = vmatpush.bf16.msra.mxu2 %v3028_v1  ;;  %v4321_v28 = vld [vmem:[#allocation2 + $0x6a4] sm:$0xf]  ;;  %v3617_v29 = vld [vmem:[#allocation2 + $0x6b0] sm:$0xf0]  ;;  %v3492_v33 = vor.u32 %v4289_v25, %v3489_v27 }
  0x6f   :  { %1761 = vmatpush.bf16.msra.mxu3 %v3156_v4  ;;  %v4353_v30 = vld [vmem:[#allocation2 + $0x7a4] sm:$0xf]  ;;  %v3745_v31 = vld [vmem:[#allocation2 + $0x7b0] sm:$0xf0]  ;;  %1723 = vmatmul.bf16.vlgmr.msra.gmra.mxu0 %v4564_v9  ;;  %v3620_v35 = vor.u32 %v4321_v28, %v3617_v29 }
  0x70   :  { %1767 = vmatpush.bf16.msrb.mxu0 %v3396_v5  ;;  %v4253_v36 = vld [vmem:[#allocation2 + $0x484] sm:$0xf]  ;;  %v3345_v39 = vld [vmem:[#allocation2 + $0x490] sm:$0xf0]  ;;  %v3748_v42 = vor.u32 %v4353_v30, %v3745_v31 }
  0x71   :  { %1749 = vmatmul.bf16.vlgmr.msra.gmra.mxu2 %v4558_v63  ;;  %1736 = vmatmul.bf16.vlgmr.msra.gmra.mxu1 %v4574_v17  ;;  %v4285_v41 = vld [vmem:[#allocation2 + $0x584] sm:$0xf]  ;;  %v3473_v43 = vld [vmem:[#allocation2 + $0x590] sm:$0xf0]  ;;  %v3348_v48 = vor.u32 %v4253_v36, %v3345_v39  ;;  %v2887_v39 = vld [vmem:[#allocation2 + $0xe8] sm:$0xf] }
  0x72   :  { %1780 = vmatpush.bf16.msrb.mxu1 %v3524_v6  ;;  %1793 = vmatpush.bf16.msrb.mxu2 %v3652_v7  ;;  %v4317_v44 = vld [vmem:[#allocation2 + $0x684] sm:$0xf]  ;;  %v3601_v45 = vld [vmem:[#allocation2 + $0x690] sm:$0xf0]  ;;  %v3476_v49 = vor.u32 %v4285_v41, %v3473_v43  ;;  %v4140_v41 = vld [vmem:[#allocation2 + $0xf4] sm:$0xf0] }
  0x73   :  { %1806 = vmatpush.bf16.msrb.mxu3 %v3780_v12  ;;  %v4349_v46 = vld [vmem:[#allocation2 + $0x784] sm:$0xf]  ;;  %v3729_v47 = vld [vmem:[#allocation2 + $0x790] sm:$0xf0]  ;;  %v3604_v50 = vor.u32 %v4317_v44, %v3601_v45  ;;  %v4172_v44 = vld [vmem:[#allocation2 + $0x1f4] sm:$0xf0] }
  0x74   :  { %1762 = vmatmul.bf16.vlgmr.msra.gmra.mxu3 %v4572_v16  ;;  %1768 = vmatpush.bf16.msrb.mxu0 %v3380_v20  ;;  %v4249_v51 = vld [vmem:[#allocation2 + $0x464] sm:$0xf]  ;;  %v3329_v52 = vld [vmem:[#allocation2 + $0x470] sm:$0xf0]  ;;  %v3732_v54 = vor.u32 %v4349_v46, %v3729_v47  ;;  %v3143_v45 = vld [vmem:[#allocation2 + $0x2e8] sm:$0xf] }
  0x75   :  { %v4281_v53 = vld [vmem:[#allocation2 + $0x564] sm:$0xf]  ;;  %v3457_v55 = vld [vmem:[#allocation2 + $0x570] sm:$0xf0]  ;;  %v3332_v60 = vor.u32 %v4249_v51, %v3329_v52  ;;  %v4204_v46 = vld [vmem:[#allocation2 + $0x2f4] sm:$0xf0]  ;;  %v2888_v52 = vor.u32 %v4140_v41, %v2887_v39 }
  0x76   :  { %1781 = vmatpush.bf16.msrb.mxu1 %v3508_v21  ;;  %1794 = vmatpush.bf16.msrb.mxu2 %v3636_v22  ;;  %v4313_v56 = vld [vmem:[#allocation2 + $0x664] sm:$0xf]  ;;  %v3585_v57 = vld [vmem:[#allocation2 + $0x670] sm:$0xf0]  ;;  %v3460_v61 = vor.u32 %v4281_v53, %v3457_v55  ;;  %v2871_v55 = vld [vmem:[#allocation2 + $0xc8] sm:$0xf] }
  0x77   :  { %1807 = vmatpush.bf16.msrb.mxu3 %v3764_v26  ;;  %v4345_v58 = vld [vmem:[#allocation2 + $0x764] sm:$0xf]  ;;  %v3713_v59 = vld [vmem:[#allocation2 + $0x770] sm:$0xf0]  ;;  %v3588_v62 = vor.u32 %v4313_v56, %v3585_v57  ;;  %v4136_v56 = vld [vmem:[#allocation2 + $0xd4] sm:$0xf0] }
  0x78   :  { %1769 = vmatpush.bf16.msrb.mxu0 %v3364_v32  ;;  %v4245_v0 = vld [vmem:[#allocation2 + $0x444] sm:$0xf]  ;;  %v3313_v1 = vld [vmem:[#allocation2 + $0x450] sm:$0xf0]  ;;  %v3716_v3 = vor.u32 %v4345_v58, %v3713_v59  ;;  %v2999_v57 = vld [vmem:[#allocation2 + $0x1c8] sm:$0xf] }
  0x79   :  { %v4277_v2 = vld [vmem:[#allocation2 + $0x544] sm:$0xf]  ;;  %v3441_v4 = vld [vmem:[#allocation2 + $0x550] sm:$0xf0]  ;;  %v3316_v10 = vor.u32 %v4245_v0, %v3313_v1  ;;  %v4168_v59 = vld [vmem:[#allocation2 + $0x1d4] sm:$0xf0]  ;;  %v2872_v1 = vor.u32 %v4136_v56, %v2871_v55 }
  0x7a   :  { %1782 = vmatpush.bf16.msrb.mxu1 %v3492_v33  ;;  %1795 = vmatpush.bf16.msrb.mxu2 %v3620_v35  ;;  %v4309_v5 = vld [vmem:[#allocation2 + $0x644] sm:$0xf]  ;;  %v3569_v6 = vld [vmem:[#allocation2 + $0x650] sm:$0xf0]  ;;  %v3444_v11 = vor.u32 %v4277_v2, %v3441_v4  ;;  %v4232_v0 = vld [vmem:[#allocation2 + $0x3d4] sm:$0xf0]  ;;  %v3000_v2 = vor.u32 %v4168_v59, %v2999_v57 }
  0x7b   :  { %1808 = vmatpush.bf16.msrb.mxu3 %v3748_v42  ;;  %v4341_v7 = vld [vmem:[#allocation2 + $0x744] sm:$0xf]  ;;  %v3697_v8 = vld [vmem:[#allocation2 + $0x750] sm:$0xf0]  ;;  %v3572_v12 = vor.u32 %v4309_v5, %v3569_v6  ;;  %v3015_v42 = vld [vmem:[#allocation2 + $0x1e8] sm:$0xf] }
  0x7c   :  { %1770 = vmatpush.bf16.msrb.mxu0 %v3348_v48  ;;  %v4241_v13 = vld [vmem:[#allocation2 + $0x424] sm:$0xf]  ;;  %v3297_v14 = vld [vmem:[#allocation2 + $0x430] sm:$0xf0]  ;;  %v3700_v18 = vor.u32 %v4341_v7, %v3697_v8  ;;  %v3016_v53 = vor.u32 %v4172_v44, %v3015_v42  ;;  %v2855_v4 = vld [vmem:[#allocation2 + $0xa8] sm:$0xf] }
  0x7d   :  { %v4273_v15 = vld [vmem:[#allocation2 + $0x524] sm:$0xf]  ;;  %v3425_v19 = vld [vmem:[#allocation2 + $0x530] sm:$0xf0]  ;;  %v3300_v24 = vor.u32 %v4241_v13, %v3297_v14  ;;  %v4132_v5 = vld [vmem:[#allocation2 + $0xb4] sm:$0xf0] }
  0x7e   :  { %1783 = vmatpush.bf16.msrb.mxu1 %v3476_v49  ;;  %1796 = vmatpush.bf16.msrb.mxu2 %v3604_v50  ;;  %v4305_v20 = vld [vmem:[#allocation2 + $0x624] sm:$0xf]  ;;  %v3553_v21 = vld [vmem:[#allocation2 + $0x630] sm:$0xf0]  ;;  %v3428_v27 = vor.u32 %v4273_v15, %v3425_v19  ;;  %v3271_v49 = vld [vmem:[#allocation2 + $0x3e8] sm:$0xf]  ;;  %v2856_v14 = vor.u32 %v4132_v5, %v2855_v4 }
  0x7f   :  { %1809 = vmatpush.bf16.msrb.mxu3 %v3732_v54  ;;  %v4337_v22 = vld [vmem:[#allocation2 + $0x724] sm:$0xf]  ;;  %v3681_v23 = vld [vmem:[#allocation2 + $0x730] sm:$0xf0]  ;;  %v3556_v28 = vor.u32 %v4305_v20, %v3553_v21  ;;  %v4236_v50 = vld [vmem:[#allocation2 + $0x3f4] sm:$0xf0]  ;;  %v3144_v54 = vor.u32 %v4204_v46, %v3143_v45 }
  0x80   :  { %1771 = vmatpush.bf16.msrb.mxu0 %v3332_v60  ;;  %v4237_v25 = vld [vmem:[#allocation2 + $0x404] sm:$0xf]  ;;  %v3281_v26 = vld [vmem:[#allocation2 + $0x410] sm:$0xf0]  ;;  %v3684_v32 = vor.u32 %v4337_v22, %v3681_v23  ;;  %v3272_v58 = vor.u32 %v4236_v50, %v3271_v49  ;;  %v3127_v60 = vld [vmem:[#allocation2 + $0x2c8] sm:$0xf] }
  0x81   :  { %v4269_v29 = vld [vmem:[#allocation2 + $0x504] sm:$0xf]  ;;  %v3409_v30 = vld [vmem:[#allocation2 + $0x510] sm:$0xf0]  ;;  %v3284_v43 = vor.u32 %v4237_v25, %v3281_v26  ;;  %v2983_v6 = vld [vmem:[#allocation2 + $0x1a8] sm:$0xf] }
  0x82   :  { %1784 = vmatpush.bf16.msrb.mxu1 %v3460_v61  ;;  %1797 = vmatpush.bf16.msrb.mxu2 %v3588_v62  ;;  %v4301_v31 = vld [vmem:[#allocation2 + $0x604] sm:$0xf]  ;;  %v3537_v33 = vld [vmem:[#allocation2 + $0x610] sm:$0xf0]  ;;  %v3412_v47 = vor.u32 %v4269_v29, %v3409_v30  ;;  %v4200_v61 = vld [vmem:[#allocation2 + $0x2d4] sm:$0xf0] }
  0x83   :  { %1810 = vmatpush.bf16.msrb.mxu3 %v3716_v3  ;;  %v4333_v35 = vld [vmem:[#allocation2 + $0x704] sm:$0xf]  ;;  %v3665_v36 = vld [vmem:[#allocation2 + $0x710] sm:$0xf0]  ;;  %v3540_v48 = vor.u32 %v4301_v31, %v3537_v33  ;;  %v3255_v62 = vld [vmem:[#allocation2 + $0x3c8] sm:$0xf]  ;;  %v3128_v3 = vor.u32 %v4200_v61, %v3127_v60 }
  0x84   :  { %1772 = vmatpush.bf16.msrb.mxu0 %v3316_v10  ;;  %v3668_v51 = vor.u32 %v4333_v35, %v3665_v36  ;;  %v3256_v7 = vor.u32 %v4232_v0, %v3255_v62  ;;  %v4164_v8 = vld [vmem:[#allocation2 + $0x1b4] sm:$0xf0]  ;;  %v3111_v10 = vld [vmem:[#allocation2 + $0x2a8] sm:$0xf] }
  0x85   :  { %v4228_v13 = vld [vmem:[#allocation2 + $0x3b4] sm:$0xf0]  ;;  %v2984_v15 = vor.u32 %v4164_v8, %v2983_v6  ;;  %v2839_v19 = vld [vmem:[#allocation2 + $0x88] sm:$0xf] }
  0x86   :  { %1785 = vmatpush.bf16.msrb.mxu1 %v3444_v11  ;;  %1798 = vmatpush.bf16.msrb.mxu2 %v3572_v12  ;;  %v4196_v11 = vld [vmem:[#allocation2 + $0x2b4] sm:$0xf0]  ;;  %v3239_v12 = vld [vmem:[#allocation2 + $0x3a8] sm:$0xf] }
  0x87   :  { %1811 = vmatpush.bf16.msrb.mxu3 %v3700_v18  ;;  %v3112_v18 = vor.u32 %v4196_v11, %v3111_v10  ;;  %v4128_v20 = vld [vmem:[#allocation2 + $0x94] sm:$0xf0]  ;;  %v2967_v21 = vld [vmem:[#allocation2 + $0x188] sm:$0xf]  ;;  %v3240_v22 = vor.u32 %v4228_v13, %v3239_v12 }
  0x88   :  { %1773 = vmatpush.bf16.msrb.mxu0 %v3300_v24  ;;  %v4160_v23 = vld [vmem:[#allocation2 + $0x194] sm:$0xf0]  ;;  %v3095_v24 = vld [vmem:[#allocation2 + $0x288] sm:$0xf] }
  0x89   :  { %v4192_v25 = vld [vmem:[#allocation2 + $0x294] sm:$0xf0]  ;;  %v3223_v26 = vld [vmem:[#allocation2 + $0x388] sm:$0xf]  ;;  %v2968_v29 = vor.u32 %v4160_v23, %v2967_v21 }
  0x8a   :  { %1786 = vmatpush.bf16.msrb.mxu1 %v3428_v27  ;;  %1799 = vmatpush.bf16.msrb.mxu2 %v3556_v28  ;;  %v4224_v27 = vld [vmem:[#allocation2 + $0x394] sm:$0xf0]  ;;  %v2840_v28 = vor.u32 %v4128_v20, %v2839_v19  ;;  %v3096_v30 = vor.u32 %v4192_v25, %v3095_v24  ;;  %v2823_v31 = vld [vmem:[#allocation2 + $0x68] sm:$0xf] }
  0x8b   :  { %1812 = vmatpush.bf16.msrb.mxu3 %v3684_v32  ;;  %v4124_v32 = vld [vmem:[#allocation2 + $0x74] sm:$0xf0]  ;;  %v2951_v33 = vld [vmem:[#allocation2 + $0x168] sm:$0xf]  ;;  %v3224_v35 = vor.u32 %v4224_v27, %v3223_v26 }
  0x8c   :  { %1774 = vmatpush.bf16.msrb.mxu0 %v3284_v43  ;;  %v4156_v36 = vld [vmem:[#allocation2 + $0x174] sm:$0xf0]  ;;  %v3079_v39 = vld [vmem:[#allocation2 + $0x268] sm:$0xf]  ;;  %v2824_v44 = vor.u32 %v4124_v32, %v2823_v31 }
  0x8d   :  { %v4188_v41 = vld [vmem:[#allocation2 + $0x274] sm:$0xf0]  ;;  %v3207_v42 = vld [vmem:[#allocation2 + $0x368] sm:$0xf]  ;;  %v2952_v45 = vor.u32 %v4156_v36, %v2951_v33 }
  0x8e   :  { %1787 = vmatpush.bf16.msrb.mxu1 %v3412_v47  ;;  %1800 = vmatpush.bf16.msrb.mxu2 %v3540_v48  ;;  %v4220_v43 = vld [vmem:[#allocation2 + $0x374] sm:$0xf0]  ;;  %v3080_v46 = vor.u32 %v4188_v41, %v3079_v39  ;;  %v2807_v47 = vld [vmem:[#allocation2 + $0x48] sm:$0xf] }
  0x8f   :  { %1813 = vmatpush.bf16.msrb.mxu3 %v3668_v51  ;;  %1775 = vmatmul.bf16.vlgmr.msrb.gmra.mxu0 %v4593_v37  ;;  %v4120_v48 = vld [vmem:[#allocation2 + $0x54] sm:$0xf0]  ;;  %v2935_v49 = vld [vmem:[#allocation2 + $0x148] sm:$0xf]  ;;  %v3208_v50 = vor.u32 %v4220_v43, %v3207_v42 }
  0x90   :  { %1819 = vmatpush.bf16.msra.mxu0 %v2888_v52  ;;  %v4152_v51 = vld [vmem:[#allocation2 + $0x154] sm:$0xf0]  ;;  %v3063_v52 = vld [vmem:[#allocation2 + $0x248] sm:$0xf]  ;;  %v2808_v56 = vor.u32 %v4120_v48, %v2807_v47 }
  0x91   :  { %1801 = vmatmul.bf16.vlgmr.msrb.gmra.mxu2 %v4591_v34  ;;  %1788 = vmatmul.bf16.vlgmr.msrb.gmra.mxu1 %v4597_v40  ;;  %v4216_v55 = vld [vmem:[#allocation2 + $0x354] sm:$0xf0]  ;;  %v2936_v57 = vor.u32 %v4152_v51, %v2935_v49  ;;  %v2791_v59 = vld [vmem:[#allocation2 + $0x28] sm:$0xf] }
  0x92   :  { %1832 = vmatpush.bf16.msra.mxu1 %v3016_v53  ;;  %1845 = vmatpush.bf16.msra.mxu2 %v3144_v54  ;;  %v4184_v53 = vld [vmem:[#allocation2 + $0x254] sm:$0xf0]  ;;  %v3191_v54 = vld [vmem:[#allocation2 + $0x348] sm:$0xf] }
  0x93   :  { %1858 = vmatpush.bf16.msra.mxu3 %v3272_v58  ;;  %v3064_v58 = vor.u32 %v4184_v53, %v3063_v52  ;;  %v4116_v60 = vld [vmem:[#allocation2 + $0x34] sm:$0xf0]  ;;  %v2919_v61 = vld [vmem:[#allocation2 + $0x128] sm:$0xf]  ;;  %v3192_v62 = vor.u32 %v4216_v55, %v3191_v54 }
  0x94   :  { %1814 = vmatmul.bf16.vlgmr.msrb.gmra.mxu3 %v4595_v38  ;;  %1820 = vmatpush.bf16.msra.mxu0 %v2872_v1  ;;  %v4148_v0 = vld [vmem:[#allocation2 + $0x134] sm:$0xf0]  ;;  %v3047_v1 = vld [vmem:[#allocation2 + $0x228] sm:$0xf]  ;;  %v2792_v5 = vor.u32 %v4116_v60, %v2791_v59 }
  0x95   :  { %v4212_v4 = vld [vmem:[#allocation2 + $0x334] sm:$0xf0]  ;;  %v2775_v6 = vld [vmem:[#allocation2 + $0x8] sm:$0xf]  ;;  %v2920_v8 = vor.u32 %v4148_v0, %v2919_v61 }
  0x96   :  { %1833 = vmatpush.bf16.msra.mxu1 %v3000_v2  ;;  %1846 = vmatpush.bf16.msra.mxu2 %v3128_v3  ;;  %v4180_v2 = vld [vmem:[#allocation2 + $0x234] sm:$0xf0]  ;;  %v3175_v3 = vld [vmem:[#allocation2 + $0x328] sm:$0xf] }
  0x97   :  { %1859 = vmatpush.bf16.msra.mxu3 %v3256_v7  ;;  %v4112_v7 = vld [vmem:[#allocation2 + $0x14] sm:$0xf0]  ;;  %v3048_v10 = vor.u32 %v4180_v2, %v3047_v1  ;;  %v2903_v11 = vld [vmem:[#allocation2 + $0x108] sm:$0xf] }
  0x98   :  { %1821 = vmatpush.bf16.msra.mxu0 %v2856_v14  ;;  %v4144_v12 = vld [vmem:[#allocation2 + $0x114] sm:$0xf0]  ;;  %v3031_v13 = vld [vmem:[#allocation2 + $0x208] sm:$0xf]  ;;  %v3176_v14 = vor.u32 %v4212_v4, %v3175_v3  ;;  %v2776_v23 = vor.u32 %v4112_v7, %v2775_v6 }
  0x99   :  { %v4208_v19 = vld [vmem:[#allocation2 + $0x314] sm:$0xf0]  ;;  %v3399_v20 = vld [vmem:[#allocation2 + $0x4e8] sm:$0xf]  ;;  %v2904_v27 = vor.u32 %v4144_v12, %v2903_v11 }
  0x9a   :  { %1834 = vmatpush.bf16.msra.mxu1 %v2984_v15  ;;  %1847 = vmatpush.bf16.msra.mxu2 %v3112_v18  ;;  %v4176_v15 = vld [vmem:[#allocation2 + $0x214] sm:$0xf0]  ;;  %v3159_v18 = vld [vmem:[#allocation2 + $0x308] sm:$0xf] }
  0x9b   :  { %1860 = vmatpush.bf16.msra.mxu3 %v3240_v22  ;;  %v4268_v21 = vld [vmem:[#allocation2 + $0x4f4] sm:$0xf0]  ;;  %v3527_v22 = vld [vmem:[#allocation2 + $0x5e8] sm:$0xf]  ;;  %v3160_v31 = vor.u32 %v4208_v19, %v3159_v18 }
  0x9c   :  { %1822 = vmatpush.bf16.msra.mxu0 %v2840_v28  ;;  %v4300_v24 = vld [vmem:[#allocation2 + $0x5f4] sm:$0xf0]  ;;  %v3655_v25 = vld [vmem:[#allocation2 + $0x6e8] sm:$0xf]  ;;  %v3032_v28 = vor.u32 %v4176_v15, %v3031_v13  ;;  %v3400_v32 = vor.u32 %v4268_v21, %v3399_v20 }
  0x9d   :  { %v4332_v26 = vld [vmem:[#allocation2 + $0x6f4] sm:$0xf0]  ;;  %v3528_v33 = vor.u32 %v4300_v24, %v3527_v22  ;;  %v3383_v36 = vld [vmem:[#allocation2 + $0x4c8] sm:$0xf] }
  0x9e   :  { %1835 = vmatpush.bf16.msra.mxu1 %v2968_v29  ;;  %1848 = vmatpush.bf16.msra.mxu2 %v3096_v30  ;;  %v3783_v29 = vld [vmem:[#allocation2 + $0x7e8] sm:$0xf]  ;;  %v4364_v30 = vld [vmem:[#allocation2 + $0x7f4] sm:$0xf0] }
  0x9f   :  { %1861 = vmatpush.bf16.msra.mxu3 %v3224_v35  ;;  %v3656_v35 = vor.u32 %v4332_v26, %v3655_v25  ;;  %v4264_v39 = vld [vmem:[#allocation2 + $0x4d4] sm:$0xf0]  ;;  %v3511_v41 = vld [vmem:[#allocation2 + $0x5c8] sm:$0xf]  ;;  %v3784_v42 = vor.u32 %v4364_v30, %v3783_v29 }
  0xa0   :  { %1823 = vmatpush.bf16.msra.mxu0 %v2824_v44  ;;  %v4296_v43 = vld [vmem:[#allocation2 + $0x5d4] sm:$0xf0]  ;;  %v3639_v44 = vld [vmem:[#allocation2 + $0x6c8] sm:$0xf]  ;;  %v3384_v48 = vor.u32 %v4264_v39, %v3383_v36 }
  0xa1   :  { %v4360_v47 = vld [vmem:[#allocation2 + $0x7d4] sm:$0xf0]  ;;  %v3512_v49 = vor.u32 %v4296_v43, %v3511_v41  ;;  %v3367_v51 = vld [vmem:[#allocation2 + $0x4a8] sm:$0xf] }
  0xa2   :  { %1836 = vmatpush.bf16.msra.mxu1 %v2952_v45  ;;  %1849 = vmatpush.bf16.msra.mxu2 %v3080_v46  ;;  %v4328_v45 = vld [vmem:[#allocation2 + $0x6d4] sm:$0xf0]  ;;  %v3767_v46 = vld [vmem:[#allocation2 + $0x7c8] sm:$0xf] }
  0xa3   :  { %1862 = vmatpush.bf16.msra.mxu3 %v3208_v50  ;;  %v3640_v50 = vor.u32 %v4328_v45, %v3639_v44  ;;  %v4260_v52 = vld [vmem:[#allocation2 + $0x4b4] sm:$0xf0]  ;;  %v3495_v53 = vld [vmem:[#allocation2 + $0x5a8] sm:$0xf]  ;;  %v3768_v54 = vor.u32 %v4360_v47, %v3767_v46 }
  0xa4   :  { %1824 = vmatpush.bf16.msra.mxu0 %v2808_v56  ;;  %v4292_v55 = vld [vmem:[#allocation2 + $0x5b4] sm:$0xf0]  ;;  %v3623_v56 = vld [vmem:[#allocation2 + $0x6a8] sm:$0xf]  ;;  %v3368_v60 = vor.u32 %v4260_v52, %v3367_v51 }
  0xa5   :  { %v4356_v59 = vld [vmem:[#allocation2 + $0x7b4] sm:$0xf0]  ;;  %v3496_v61 = vor.u32 %v4292_v55, %v3495_v53  ;;  %v3351_v0 = vld [vmem:[#allocation2 + $0x488] sm:$0xf] }
  0xa6   :  { %1837 = vmatpush.bf16.msra.mxu1 %v2936_v57  ;;  %1850 = vmatpush.bf16.msra.mxu2 %v3064_v58  ;;  %v4324_v57 = vld [vmem:[#allocation2 + $0x6b4] sm:$0xf0]  ;;  %v3751_v58 = vld [vmem:[#allocation2 + $0x7a8] sm:$0xf] }
  0xa7   :  { %1863 = vmatpush.bf16.msra.mxu3 %v3192_v62  ;;  %v3624_v62 = vor.u32 %v4324_v57, %v3623_v56  ;;  %v4256_v1 = vld [vmem:[#allocation2 + $0x494] sm:$0xf0]  ;;  %v3479_v2 = vld [vmem:[#allocation2 + $0x588] sm:$0xf]  ;;  %v3752_v3 = vor.u32 %v4356_v59, %v3751_v58 }
  0xa8   :  { %1825 = vmatpush.bf16.msra.mxu0 %v2792_v5  ;;  %v4288_v4 = vld [vmem:[#allocation2 + $0x594] sm:$0xf0]  ;;  %v3607_v5 = vld [vmem:[#allocation2 + $0x688] sm:$0xf] }
  0xa9   :  { %v4320_v6 = vld [vmem:[#allocation2 + $0x694] sm:$0xf0]  ;;  %v3735_v7 = vld [vmem:[#allocation2 + $0x788] sm:$0xf]  ;;  %v3480_v11 = vor.u32 %v4288_v4, %v3479_v2 }
  0xaa   :  { %1838 = vmatpush.bf16.msra.mxu1 %v2920_v8  ;;  %1851 = vmatpush.bf16.msra.mxu2 %v3048_v10  ;;  %v4352_v8 = vld [vmem:[#allocation2 + $0x794] sm:$0xf0]  ;;  %v3352_v10 = vor.u32 %v4256_v1, %v3351_v0  ;;  %v3608_v12 = vor.u32 %v4320_v6, %v3607_v5  ;;  %v3335_v13 = vld [vmem:[#allocation2 + $0x468] sm:$0xf] }
  0xab   :  { %1864 = vmatpush.bf16.msra.mxu3 %v3176_v14  ;;  %v4252_v14 = vld [vmem:[#allocation2 + $0x474] sm:$0xf0]  ;;  %v3463_v15 = vld [vmem:[#allocation2 + $0x568] sm:$0xf]  ;;  %v3736_v18 = vor.u32 %v4352_v8, %v3735_v7  ;;  %v1620_v25 = vpop.f32.mrf.mxu0 }
  0xac   :  { %1826 = vmatpush.bf16.msra.mxu0 %v2776_v23  ;;  %v4284_v19 = vld [vmem:[#allocation2 + $0x574] sm:$0xf0]  ;;  %v3591_v20 = vld [vmem:[#allocation2 + $0x668] sm:$0xf]  ;;  %v3336_v24 = vor.u32 %v4252_v14, %v3335_v13 }
  0xad   :  { %v4316_v21 = vld [vmem:[#allocation2 + $0x674] sm:$0xf0]  ;;  %v3719_v22 = vld [vmem:[#allocation2 + $0x768] sm:$0xf]  ;;  %v3464_v26 = vor.u32 %v4284_v19, %v3463_v15  ;;  %v4202_v19 = vld [vmem:[#allocation2 + $0x2ec] sm:$0xf] }
  0xae   :  { %1839 = vmatpush.bf16.msra.mxu1 %v2904_v27  ;;  %1852 = vmatpush.bf16.msra.mxu2 %v3032_v28  ;;  %v4348_v23 = vld [vmem:[#allocation2 + $0x774] sm:$0xf0]  ;;  %v3592_v27 = vor.u32 %v4316_v21, %v3591_v20  ;;  %v3319_v28 = vld [vmem:[#allocation2 + $0x448] sm:$0xf]  ;;  %v3145_v20 = vld [vmem:[#allocation2 + $0x2f8] sm:$0xf0] }
  0xaf   :  { %1865 = vmatpush.bf16.msra.mxu3 %v3160_v31  ;;  %1827 = vmatmul.bf16.vlgmr.msra.gmra.mxu0 %v4564_v9  ;;  %v4248_v29 = vld [vmem:[#allocation2 + $0x454] sm:$0xf0]  ;;  %v3447_v30 = vld [vmem:[#allocation2 + $0x548] sm:$0xf]  ;;  %v3720_v31 = vor.u32 %v4348_v23, %v3719_v22  ;;  %v4234_v23 = vld [vmem:[#allocation2 + $0x3ec] sm:$0xf] }
  0xb0   :  { %1871 = vmatpush.bf16.msrb.mxu0 %v3400_v32  ;;  %v4280_v32 = vld [vmem:[#allocation2 + $0x554] sm:$0xf0]  ;;  %v3703_v36 = vld [vmem:[#allocation2 + $0x748] sm:$0xf]  ;;  %v3320_v43 = vor.u32 %v4248_v29, %v3319_v28  ;;  %v3148_v28 = vor.u32 %v4202_v19, %v3145_v20  ;;  %v4134_v29 = vld [vmem:[#allocation2 + $0xcc] sm:$0xf] }
  0xb1   :  { %1853 = vmatmul.bf16.vlgmr.msra.gmra.mxu2 %v4558_v63  ;;  %1840 = vmatmul.bf16.vlgmr.msra.gmra.mxu1 %v4574_v17  ;;  %v4344_v39 = vld [vmem:[#allocation2 + $0x754] sm:$0xf0]  ;;  %v3448_v45 = vor.u32 %v4280_v32, %v3447_v30  ;;  %v3303_v47 = vld [vmem:[#allocation2 + $0x428] sm:$0xf]  ;;  %v2873_v30 = vld [vmem:[#allocation2 + $0xd8] sm:$0xf0] }
  0xb2   :  { %1884 = vmatpush.bf16.msrb.mxu1 %v3528_v33  ;;  %1897 = vmatpush.bf16.msrb.mxu2 %v3656_v35  ;;  %v3575_v33 = vld [vmem:[#allocation2 + $0x648] sm:$0xf]  ;;  %v4312_v35 = vld [vmem:[#allocation2 + $0x654] sm:$0xf0]  ;;  %v3081_v19 = vld [vmem:[#allocation2 + $0x278] sm:$0xf0] }
  0xb3   :  { %1910 = vmatpush.bf16.msrb.mxu3 %v3784_v42  ;;  %v1646_v42 = vpop.f32.mrf.mxu2  ;;  %v3576_v46 = vor.u32 %v4312_v35, %v3575_v33  ;;  %v4276_v51 = vld [vmem:[#allocation2 + $0x534] sm:$0xf0]  ;;  %v3559_v52 = vld [vmem:[#allocation2 + $0x628] sm:$0xf]  ;;  %v3001_v35 = vld [vmem:[#allocation2 + $0x1d8] sm:$0xf0] }
  0xb4   :  { %1866 = vmatmul.bf16.vlgmr.msra.gmra.mxu3 %v4572_v16  ;;  %1872 = vmatpush.bf16.msrb.mxu0 %v3384_v48  ;;  %v4244_v48 = vld [vmem:[#allocation2 + $0x434] sm:$0xf0]  ;;  %v3687_v55 = vld [vmem:[#allocation2 + $0x728] sm:$0xf]  ;;  %v4218_v20 = vld [vmem:[#allocation2 + $0x36c] sm:$0xf] }
  0xb5   :  { %v4308_v53 = vld [vmem:[#allocation2 + $0x634] sm:$0xf0]  ;;  %v3304_v58 = vor.u32 %v4244_v48, %v3303_v47  ;;  %v3287_v59 = vld [vmem:[#allocation2 + $0x408] sm:$0xf]  ;;  %v2857_v47 = vld [vmem:[#allocation2 + $0xb8] sm:$0xf0] }
  0xb6   :  { %1885 = vmatpush.bf16.msrb.mxu1 %v3512_v49  ;;  %1898 = vmatpush.bf16.msrb.mxu2 %v3640_v50  ;;  %v3431_v49 = vld [vmem:[#allocation2 + $0x528] sm:$0xf]  ;;  %v3704_v50 = vor.u32 %v4344_v39, %v3703_v36  ;;  %v4340_v56 = vld [vmem:[#allocation2 + $0x734] sm:$0xf0]  ;;  %v3560_v1 = vor.u32 %v4308_v53, %v3559_v52  ;;  %v4198_v36 = vld [vmem:[#allocation2 + $0x2cc] sm:$0xf] }
  0xb7   :  { %1911 = vmatpush.bf16.msrb.mxu3 %v3768_v54  ;;  %v3432_v0 = vor.u32 %v4276_v51, %v3431_v49  ;;  %v3415_v2 = vld [vmem:[#allocation2 + $0x508] sm:$0xf]  ;;  %v3688_v5 = vor.u32 %v4340_v56, %v3687_v55  ;;  %v4304_v6 = vld [vmem:[#allocation2 + $0x614] sm:$0xf0]  ;;  %v3129_v39 = vld [vmem:[#allocation2 + $0x2d8] sm:$0xf0] }
  0xb8   :  { %1873 = vmatpush.bf16.msrb.mxu0 %v3368_v60  ;;  %v4240_v60 = vld [vmem:[#allocation2 + $0x414] sm:$0xf0]  ;;  %v3543_v4 = vld [vmem:[#allocation2 + $0x608] sm:$0xf]  ;;  %v4162_v48 = vld [vmem:[#allocation2 + $0x1ac] sm:$0xf] }
  0xb9   :  { %v3671_v7 = vld [vmem:[#allocation2 + $0x708] sm:$0xf]  ;;  %v4336_v8 = vld [vmem:[#allocation2 + $0x714] sm:$0xf0]  ;;  %v3288_v15 = vor.u32 %v4240_v60, %v3287_v59  ;;  %v3544_v22 = vor.u32 %v4304_v6, %v3543_v4  ;;  %v4194_v51 = vld [vmem:[#allocation2 + $0x2ac] sm:$0xf] }
  0xba   :  { %1886 = vmatpush.bf16.msrb.mxu1 %v3496_v61  ;;  %1899 = vmatpush.bf16.msrb.mxu2 %v3624_v62  ;;  %v1633_v41 = vpop.f32.mrf.mxu1  ;;  %v1622_v62 = vpop.f32.mrf.mxu0  ;;  %v3113_v52 = vld [vmem:[#allocation2 + $0x2b8] sm:$0xf0]  ;;  %v4226_v53 = vld [vmem:[#allocation2 + $0x3ac] sm:$0xf] }
  0xbb   :  { %1912 = vmatpush.bf16.msrb.mxu3 %v3752_v3  ;;  %v1634_v44 = vadd.f32 %v1633_v41, %v1620_v25  ;;  %v4272_v3 = vld [vmem:[#allocation2 + $0x514] sm:$0xf0]  ;;  %v1648_v14 = vpop.f32.mrf.mxu2  ;;  %v3672_v25 = vor.u32 %v4336_v8, %v3671_v7  ;;  %v4230_v41 = vld [vmem:[#allocation2 + $0x3cc] sm:$0xf]  ;;  %v2841_v59 = vld [vmem:[#allocation2 + $0x98] sm:$0xf0] }
  0xbc   :  { %1874 = vmatpush.bf16.msrb.mxu0 %v3352_v10  ;;  %v4138_v10 = vld [vmem:[#allocation2 + $0xec] sm:$0xf]  ;;  %v3416_v21 = vor.u32 %v4272_v3, %v3415_v2  ;;  %v3097_v2 = vld [vmem:[#allocation2 + $0x298] sm:$0xf0] }
  0xbd   :  { %v1647_v54 = vadd.f32 %v1646_v42, %v1634_v44  ;;  %v3257_v42 = vld [vmem:[#allocation2 + $0x3d8] sm:$0xf0]  ;;  %v4158_v60 = vld [vmem:[#allocation2 + $0x18c] sm:$0xf] }
  0xbe   :  { %1887 = vmatpush.bf16.msrb.mxu1 %v3480_v11  ;;  %1900 = vmatpush.bf16.msrb.mxu2 %v3608_v12  ;;  %v2889_v11 = vld [vmem:[#allocation2 + $0xf8] sm:$0xf0]  ;;  %v4170_v12 = vld [vmem:[#allocation2 + $0x1ec] sm:$0xf]  ;;  %v3260_v49 = vor.u32 %v4230_v41, %v3257_v42 }
  0xbf   :  { %1913 = vmatpush.bf16.msrb.mxu3 %v3736_v18  ;;  %v1659_v57 = vpop.f32.mrf.mxu3  ;;  %v3017_v18 = vld [vmem:[#allocation2 + $0x1f8] sm:$0xf0]  ;;  %v4222_v3 = vld [vmem:[#allocation2 + $0x38c] sm:$0xf] }
  0xc0   :  { %1875 = vmatpush.bf16.msrb.mxu0 %v3336_v24  ;;  %v4615_v61 = vadd.f32 %v1659_v57, %v1647_v54  ;;  %v3273_v24 = vld [vmem:[#allocation2 + $0x3f8] sm:$0xf0]  ;;  %v3116_v57 = vor.u32 %v4194_v51, %v3113_v52  ;;  %v4210_v52 = vld [vmem:[#allocation2 + $0x32c] sm:$0xf] }
  0xc1   :  { %v3276_v33 = vor.u32 %v4234_v23, %v3273_v24  ;;  %v3241_v54 = vld [vmem:[#allocation2 + $0x3b8] sm:$0xf0] }
  0xc2   :  { %1888 = vmatpush.bf16.msrb.mxu1 %v3464_v26  ;;  %1901 = vmatpush.bf16.msrb.mxu2 %v3592_v27  ;;  %v1635_v13 = vpop.f32.mrf.mxu1  ;;  %v2892_v26 = vor.u32 %v4138_v10, %v2889_v11  ;;  %v3020_v27 = vor.u32 %v4170_v12, %v3017_v18  ;;  %v3244_v62 = vor.u32 %v4226_v53, %v3241_v54  ;;  %v3225_v4 = vld [vmem:[#allocation2 + $0x398] sm:$0xf0]  ;;  %v4122_v10 = vld [vmem:[#allocation2 + $0x6c] sm:$0xf] }
  0xc3   :  { %1914 = vmatpush.bf16.msrb.mxu3 %v3720_v31  ;;  %v4166_v31 = vld [vmem:[#allocation2 + $0x1cc] sm:$0xf]  ;;  %v2825_v11 = vld [vmem:[#allocation2 + $0x78] sm:$0xf0]  ;;  %v3228_v14 = vor.u32 %v4222_v3, %v3225_v4 }
  0xc4   :  { %1876 = vmatpush.bf16.msrb.mxu0 %v3320_v43  ;;  %v2876_v43 = vor.u32 %v4134_v29, %v2873_v30  ;;  %v3004_v44 = vor.u32 %v4166_v31, %v3001_v35  ;;  %v4154_v12 = vld [vmem:[#allocation2 + $0x16c] sm:$0xf]  ;;  %v2937_v30 = vld [vmem:[#allocation2 + $0x158] sm:$0xf0] }
  0xc5   :  { %v4186_v18 = vld [vmem:[#allocation2 + $0x26c] sm:$0xf]  ;;  %v3049_v51 = vld [vmem:[#allocation2 + $0x238] sm:$0xf0] }
  0xc6   :  { %1889 = vmatpush.bf16.msrb.mxu1 %v3448_v45  ;;  %1902 = vmatpush.bf16.msrb.mxu2 %v3576_v46  ;;  %v3132_v45 = vor.u32 %v4198_v36, %v3129_v39  ;;  %v4130_v46 = vld [vmem:[#allocation2 + $0xac] sm:$0xf]  ;;  %v3084_v24 = vor.u32 %v4186_v18, %v3081_v19  ;;  %v3193_v36 = vld [vmem:[#allocation2 + $0x358] sm:$0xf0] }
  0xc7   :  { %1915 = vmatpush.bf16.msrb.mxu3 %v3704_v50  ;;  %v1661_v32 = vpop.f32.mrf.mxu3  ;;  %v2985_v50 = vld [vmem:[#allocation2 + $0x1b8] sm:$0xf0]  ;;  %v2860_v55 = vor.u32 %v4130_v46, %v2857_v47  ;;  %v4182_v31 = vld [vmem:[#allocation2 + $0x24c] sm:$0xf] }
  0xc8   :  { %1877 = vmatpush.bf16.msrb.mxu0 %v3304_v58  ;;  %v2988_v56 = vor.u32 %v4162_v48, %v2985_v50  ;;  %v4126_v58 = vld [vmem:[#allocation2 + $0x8c] sm:$0xf]  ;;  %v3065_v32 = vld [vmem:[#allocation2 + $0x258] sm:$0xf0] }
  0xc9   :  { %v4214_v35 = vld [vmem:[#allocation2 + $0x34c] sm:$0xf]  ;;  %v3177_v53 = vld [vmem:[#allocation2 + $0x338] sm:$0xf0] }
  0xca   :  { %1890 = vmatpush.bf16.msrb.mxu1 %v3432_v0  ;;  %1903 = vmatpush.bf16.msrb.mxu2 %v3560_v1  ;;  %v2969_v0 = vld [vmem:[#allocation2 + $0x198] sm:$0xf0]  ;;  %v4190_v1 = vld [vmem:[#allocation2 + $0x28c] sm:$0xf]  ;;  %v3196_v48 = vor.u32 %v4214_v35, %v3193_v36 }
  0xcb   :  { %1916 = vmatpush.bf16.msrb.mxu3 %v3688_v5  ;;  %v2844_v5 = vor.u32 %v4126_v58, %v2841_v59  ;;  %v2972_v7 = vor.u32 %v4158_v60, %v2969_v0  ;;  %v3100_v8 = vor.u32 %v4190_v1, %v3097_v2  ;;  %v4146_v46 = vld [vmem:[#allocation2 + $0x12c] sm:$0xf]  ;;  %v2905_v60 = vld [vmem:[#allocation2 + $0x118] sm:$0xf0]  ;;  %v3180_v1 = vor.u32 %v4210_v52, %v3177_v53 }
  0xcc   :  { %1878 = vmatpush.bf16.msrb.mxu0 %v3288_v15  ;;  %v4621_v6 = vpop.f32.mrf.mxu0  ;;  %v2953_v15 = vld [vmem:[#allocation2 + $0x178] sm:$0xf0]  ;;  %v4178_v50 = vld [vmem:[#allocation2 + $0x22c] sm:$0xf] }
  0xcd   :  { %v2956_v23 = vor.u32 %v4154_v12, %v2953_v15  ;;  %v3052_v58 = vor.u32 %v4178_v50, %v3049_v51  ;;  %v4142_v59 = vld [vmem:[#allocation2 + $0x10c] sm:$0xf]  ;;  %v3033_v2 = vld [vmem:[#allocation2 + $0x218] sm:$0xf0] }
  0xce   :  { %1891 = vmatpush.bf16.msrb.mxu1 %v3416_v21  ;;  %1904 = vmatpush.bf16.msrb.mxu2 %v3544_v22  ;;  %v4623_v13 = vpop.f32.mrf.mxu1  ;;  %v3209_v21 = vld [vmem:[#allocation2 + $0x378] sm:$0xf0]  ;;  %v2828_v22 = vor.u32 %v4122_v10, %v2825_v11  ;;  %v4206_v3 = vld [vmem:[#allocation2 + $0x30c] sm:$0xf]  ;;  %v2908_v18 = vor.u32 %v4142_v59, %v2905_v60 }
  0xcf   :  { %1917 = vmatpush.bf16.msrb.mxu3 %v3672_v25  ;;  %1879 = vmatmul.bf16.vlgmr.msrb.gmra.mxu0 %v4593_v37  ;;  %v4118_v25 = vld [vmem:[#allocation2 + $0x4c] sm:$0xf]  ;;  %v3212_v29 = vor.u32 %v4218_v20, %v3209_v21  ;;  %v3161_v4 = vld [vmem:[#allocation2 + $0x318] sm:$0xf0] }
  0xd0   :  { %1923 = vmatpush.bf16.msra.mxu0 %v2892_v26  ;;  %v2809_v26 = vld [vmem:[#allocation2 + $0x58] sm:$0xf0]  ;;  %v4298_v10 = vld [vmem:[#allocation2 + $0x5ec] sm:$0xf] }
  0xd1   :  { %1905 = vmatmul.bf16.vlgmr.msrb.gmra.mxu2 %v4591_v34  ;;  %1892 = vmatmul.bf16.vlgmr.msrb.gmra.mxu1 %v4597_v40  ;;  %v2812_v39 = vor.u32 %v4118_v25, %v2809_v26  ;;  %v3529_v12 = vld [vmem:[#allocation2 + $0x5f8] sm:$0xf0]  ;;  %v4362_v20 = vld [vmem:[#allocation2 + $0x7ec] sm:$0xf] }
  0xd2   :  { %1936 = vmatpush.bf16.msra.mxu1 %v3020_v27  ;;  %1949 = vmatpush.bf16.msra.mxu2 %v3148_v28  ;;  %v4150_v27 = vld [vmem:[#allocation2 + $0x14c] sm:$0xf]  ;;  %v3657_v15 = vld [vmem:[#allocation2 + $0x6f8] sm:$0xf0] }
  0xd3   :  { %1962 = vmatpush.bf16.msra.mxu3 %v3276_v33  ;;  %v2940_v42 = vor.u32 %v4150_v27, %v2937_v30  ;;  %v3785_v21 = vld [vmem:[#allocation2 + $0x7f8] sm:$0xf0]  ;;  %v4262_v26 = vld [vmem:[#allocation2 + $0x4cc] sm:$0xf] }
  0xd4   :  { %1918 = vmatmul.bf16.vlgmr.msrb.gmra.mxu3 %v4595_v38  ;;  %1924 = vmatpush.bf16.msra.mxu0 %v2876_v43  ;;  %v4625_v28 = vpop.f32.mrf.mxu2  ;;  %v1674_v41 = vpop.f32.mrf.mxu0  ;;  %v3068_v43 = vor.u32 %v4182_v31, %v3065_v32  ;;  %v3385_v27 = vld [vmem:[#allocation2 + $0x4d8] sm:$0xf0]  ;;  %v3788_v30 = vor.u32 %v4362_v20, %v3785_v21  ;;  %v4326_v32 = vld [vmem:[#allocation2 + $0x6cc] sm:$0xf] }
  0xd5   :  { %v3513_v31 = vld [vmem:[#allocation2 + $0x5d8] sm:$0xf0]  ;;  %v4358_v36 = vld [vmem:[#allocation2 + $0x7cc] sm:$0xf]  ;;  %v3388_v41 = vor.u32 %v4262_v26, %v3385_v27 }
  0xd6   :  { %1937 = vmatpush.bf16.msra.mxu1 %v3004_v44  ;;  %1950 = vmatpush.bf16.msra.mxu2 %v3132_v45  ;;  %v4114_v44 = vld [vmem:[#allocation2 + $0x2c] sm:$0xf]  ;;  %v2793_v45 = vld [vmem:[#allocation2 + $0x38] sm:$0xf0]  ;;  %v1687_v47 = vpop.f32.mrf.mxu1 }
  0xd7   :  { %1963 = vmatpush.bf16.msra.mxu3 %v3260_v49  ;;  %v4627_v33 = vpop.f32.mrf.mxu3  ;;  %v2921_v49 = vld [vmem:[#allocation2 + $0x138] sm:$0xf0]  ;;  %v2796_v54 = vor.u32 %v4114_v44, %v2793_v45  ;;  %v4258_v44 = vld [vmem:[#allocation2 + $0x4ac] sm:$0xf] }
  0xd8   :  { %1925 = vmatpush.bf16.msra.mxu0 %v2860_v55  ;;  %v4110_v55 = vld [vmem:[#allocation2 + $0xc] sm:$0xf]  ;;  %v3641_v35 = vld [vmem:[#allocation2 + $0x6d8] sm:$0xf0] }
  0xd9   :  { %v3369_v45 = vld [vmem:[#allocation2 + $0x4b8] sm:$0xf0]  ;;  %v4354_v51 = vld [vmem:[#allocation2 + $0x7ac] sm:$0xf] }
  0xda   :  { %1938 = vmatpush.bf16.msra.mxu1 %v2988_v56  ;;  %1951 = vmatpush.bf16.msra.mxu2 %v3116_v57  ;;  %v2777_v56 = vld [vmem:[#allocation2 + $0x18] sm:$0xf0]  ;;  %v2924_v57 = vor.u32 %v4146_v46, %v2921_v49  ;;  %v4290_v46 = vld [vmem:[#allocation2 + $0x5ac] sm:$0xf]  ;;  %v3372_v53 = vor.u32 %v4258_v44, %v3369_v45 }
  0xdb   :  { %1964 = vmatpush.bf16.msra.mxu3 %v3244_v62  ;;  %v4174_v62 = vld [vmem:[#allocation2 + $0x20c] sm:$0xf]  ;;  %v2780_v11 = vor.u32 %v4110_v55, %v2777_v56  ;;  %v3625_v50 = vld [vmem:[#allocation2 + $0x6b8] sm:$0xf0] }
  0xdc   :  { %1926 = vmatpush.bf16.msra.mxu0 %v2844_v5  ;;  %v1700_v0 = vpop.f32.mrf.mxu2  ;;  %v3036_v19 = vor.u32 %v4174_v62, %v3033_v2  ;;  %v4322_v49 = vld [vmem:[#allocation2 + $0x6ac] sm:$0xf]  ;;  %v3753_v52 = vld [vmem:[#allocation2 + $0x7b8] sm:$0xf0] }
  0xdd   :  { %v3628_v55 = vor.u32 %v4322_v49, %v3625_v50  ;;  %v4254_v56 = vld [vmem:[#allocation2 + $0x48c] sm:$0xf]  ;;  %v3481_v59 = vld [vmem:[#allocation2 + $0x598] sm:$0xf0] }
  0xde   :  { %1939 = vmatpush.bf16.msra.mxu1 %v2972_v7  ;;  %1952 = vmatpush.bf16.msra.mxu2 %v3100_v8  ;;  %v4266_v7 = vld [vmem:[#allocation2 + $0x4ec] sm:$0xf]  ;;  %v3401_v8 = vld [vmem:[#allocation2 + $0x4f8] sm:$0xf0] }
  0xdf   :  { %1965 = vmatpush.bf16.msra.mxu3 %v3228_v14  ;;  %v1713_v5 = vpop.f32.mrf.mxu3  ;;  %v4330_v14 = vld [vmem:[#allocation2 + $0x6ec] sm:$0xf]  ;;  %v3609_v62 = vld [vmem:[#allocation2 + $0x698] sm:$0xf0] }
  0xe0   :  { %1927 = vmatpush.bf16.msra.mxu0 %v2828_v22  ;;  %v3164_v22 = vor.u32 %v4206_v3, %v3161_v4  ;;  %v3660_v25 = vor.u32 %v4330_v14, %v3657_v15  ;;  %v4318_v60 = vld [vmem:[#allocation2 + $0x68c] sm:$0xf]  ;;  %v3337_v4 = vld [vmem:[#allocation2 + $0x478] sm:$0xf0]  ;;  %v330_v14 = vld [vmem:[%s4742_s2] sm:$0xf] }
  0xe1   :  { %v4350_v0 = vld [vmem:[#allocation2 + $0x78c] sm:$0xf]  ;;  %v3612_v3 = vor.u32 %v4318_v60, %v3609_v62  ;;  %2030 = vst [vmem:[#allocation1] ss:$9 sm:$0xff] %v330_v14  ;;  %v3449_v27 = vld [vmem:[#allocation2 + $0x558] sm:$0xf0] }
  0xe2   :  { %1940 = vmatpush.bf16.msra.mxu1 %v2956_v23  ;;  %1953 = vmatpush.bf16.msra.mxu2 %v3084_v24  ;;  %v3404_v23 = vor.u32 %v4266_v7, %v3401_v8  ;;  %v3532_v24 = vor.u32 %v4298_v10, %v3529_v12  ;;  %v4282_v5 = vld [vmem:[#allocation2 + $0x56c] sm:$0xf]  ;;  %v3465_v7 = vld [vmem:[#allocation2 + $0x578] sm:$0xf0] }
  0xe3   :  { %1966 = vmatpush.bf16.msra.mxu3 %v3212_v29  ;;  %v4294_v29 = vld [vmem:[#allocation2 + $0x5cc] sm:$0xf]  ;;  %v3593_v12 = vld [vmem:[#allocation2 + $0x678] sm:$0xf0]  ;;  %v3468_v20 = vor.u32 %v4282_v5, %v3465_v7  ;;  %v3911_v5 = vld [vmem:[#allocation4 + $0xf0] sm:$0xf] }
  0xe4   :  { %1928 = vmatpush.bf16.msra.mxu0 %v2812_v39  ;;  %v3769_v39 = vld [vmem:[#allocation2 + $0x7d8] sm:$0xf0]  ;;  %v4346_v15 = vld [vmem:[#allocation2 + $0x76c] sm:$0xf]  ;;  %v4396_v7 = vld [vmem:[#allocation4 + $0xf4] sm:$0xf0] }
  0xe5   :  { %v3772_v47 = vor.u32 %v4358_v36, %v3769_v39  ;;  %v3305_v44 = vld [vmem:[#allocation2 + $0x438] sm:$0xf0]  ;;  %v4274_v45 = vld [vmem:[#allocation2 + $0x52c] sm:$0xf] }
  0xe6   :  { %1941 = vmatpush.bf16.msra.mxu1 %v2940_v42  ;;  %1954 = vmatpush.bf16.msra.mxu2 %v3068_v43  ;;  %v3516_v42 = vor.u32 %v4294_v29, %v3513_v31  ;;  %v3644_v43 = vor.u32 %v4326_v32, %v3641_v35  ;;  %v4310_v29 = vld [vmem:[#allocation2 + $0x64c] sm:$0xf]  ;;  %v3705_v35 = vld [vmem:[#allocation2 + $0x758] sm:$0xf0] }
  0xe7   :  { %1967 = vmatpush.bf16.msra.mxu3 %v3196_v48  ;;  %v3497_v48 = vld [vmem:[#allocation2 + $0x5b8] sm:$0xf0]  ;;  %v4342_v32 = vld [vmem:[#allocation2 + $0x74c] sm:$0xf] }
  0xe8   :  { %1929 = vmatpush.bf16.msra.mxu0 %v2796_v54  ;;  %v3500_v54 = vor.u32 %v4290_v46, %v3497_v48  ;;  %v3433_v48 = vld [vmem:[#allocation2 + $0x538] sm:$0xf0]  ;;  %v4306_v49 = vld [vmem:[#allocation2 + $0x62c] sm:$0xf] }
  0xe9   :  { %v3561_v50 = vld [vmem:[#allocation2 + $0x638] sm:$0xf0]  ;;  %v4302_v62 = vld [vmem:[#allocation2 + $0x60c] sm:$0xf] }
  0xea   :  { %1942 = vmatpush.bf16.msra.mxu1 %v2924_v57  ;;  %1955 = vmatpush.bf16.msra.mxu2 %v3052_v58  ;;  %v3353_v57 = vld [vmem:[#allocation2 + $0x498] sm:$0xf0]  ;;  %v3756_v58 = vor.u32 %v4354_v51, %v3753_v52  ;;  %v4338_v51 = vld [vmem:[#allocation2 + $0x72c] sm:$0xf] }
  0xeb   :  { %1968 = vmatpush.bf16.msra.mxu3 %v3180_v1  ;;  %v4250_v1 = vld [vmem:[#allocation2 + $0x46c] sm:$0xf]  ;;  %v3689_v52 = vld [vmem:[#allocation2 + $0x738] sm:$0xf0] }
  0xec   :  { %1930 = vmatpush.bf16.msra.mxu0 %v2780_v11  ;;  %v4633_v2 = vpop.f32.mrf.mxu0  ;;  %v4314_v11 = vld [vmem:[#allocation2 + $0x66c] sm:$0xf]  ;;  %v3692_v60 = vor.u32 %v4338_v51, %v3689_v52 }
  0xed   :  { %v3596_v21 = vor.u32 %v4314_v11, %v3593_v12 }
  0xee   :  { %1943 = vmatpush.bf16.msra.mxu1 %v2908_v18  ;;  %1956 = vmatpush.bf16.msra.mxu2 %v3036_v19  ;;  %v4635_v8 = vpop.f32.mrf.mxu1  ;;  %v3721_v18 = vld [vmem:[#allocation2 + $0x778] sm:$0xf0]  ;;  %v3340_v19 = vor.u32 %v4250_v1, %v3337_v4 }
  0xef   :  { %1969 = vmatpush.bf16.msra.mxu3 %v3164_v22  ;;  %1931 = vmatmul.bf16.vlgmr.msra.gmra.mxu0 %v4564_v9  ;;  %v3737_v9 = vld [vmem:[#allocation2 + $0x798] sm:$0xf0]  ;;  %v4246_v22 = vld [vmem:[#allocation2 + $0x44c] sm:$0xf]  ;;  %v3724_v26 = vor.u32 %v4346_v15, %v3721_v18  ;;  %v1738_v15 = vadd.f32 %v4635_v8, %v4633_v2  ;;  %v3912_v18 = vor.u32 %v4396_v7, %v3911_v5  ;;  %v3895_v2 = vld [vmem:[#allocation4 + $0xd0] sm:$0xf] }
  0xf0   :  { %1975 = vmatpush.bf16.msrb.mxu0 %v3404_v23  ;;  %v3740_v10 = vor.u32 %v4350_v0, %v3737_v9  ;;  %v3321_v23 = vld [vmem:[#allocation2 + $0x458] sm:$0xf0]  ;;  %v4334_v9 = vld [vmem:[#allocation2 + $0x70c] sm:$0xf]  ;;  %v4392_v8 = vld [vmem:[#allocation4 + $0xd4] sm:$0xf0] }
  0xf1   :  { %1957 = vmatmul.bf16.vlgmr.msra.gmra.mxu2 %v4558_v63  ;;  %1944 = vmatmul.bf16.vlgmr.msra.gmra.mxu1 %v4574_v17  ;;  %v4286_v63 = vld [vmem:[#allocation2 + $0x58c] sm:$0xf]  ;;  %v3324_v36 = vor.u32 %v4246_v22, %v3321_v23  ;;  %v3545_v0 = vld [vmem:[#allocation2 + $0x618] sm:$0xf0]  ;;  %v4394_v22 = vld [vmem:[#allocation4 + $0xe4] sm:$0xf0] }
  0xf2   :  { %1988 = vmatpush.bf16.msrb.mxu1 %v3532_v24  ;;  %2001 = vmatpush.bf16.msrb.mxu2 %v3660_v25  ;;  %v3484_v17 = vor.u32 %v4286_v63, %v3481_v59  ;;  %v4278_v24 = vld [vmem:[#allocation2 + $0x54c] sm:$0xf]  ;;  %v3673_v1 = vld [vmem:[#allocation2 + $0x718] sm:$0xf0]  ;;  %v3548_v11 = vor.u32 %v4302_v62, %v3545_v0 }
  0xf3   :  { %2014 = vmatpush.bf16.msrb.mxu3 %v3788_v30  ;;  %v3577_v30 = vld [vmem:[#allocation2 + $0x658] sm:$0xf0]  ;;  %v4270_v63 = vld [vmem:[#allocation2 + $0x50c] sm:$0xf]  ;;  %v3676_v12 = vor.u32 %v4334_v9, %v3673_v1  ;;  %v3799_v1 = vld [vmem:[#allocation4 + $0x10] sm:$0xf] }
  0xf4   :  { %1970 = vmatmul.bf16.vlgmr.msra.gmra.mxu3 %v4572_v16  ;;  %1976 = vmatpush.bf16.msrb.mxu0 %v3388_v41  ;;  %v3356_v16 = vor.u32 %v4254_v56, %v3353_v57  ;;  %v4640_v25 = vpop.f32.mrf.mxu2  ;;  %v1726_v39 = vpop.f32.mrf.mxu0  ;;  %v3452_v41 = vor.u32 %v4278_v24, %v3449_v27  ;;  %v3564_v56 = vor.u32 %v4306_v49, %v3561_v50  ;;  %v3289_v57 = vld [vmem:[#allocation2 + $0x418] sm:$0xf0]  ;;  %v3831_v27 = vld [vmem:[#allocation4 + $0x50] sm:$0xf] }
  0xf5   :  { %v1751_v24 = vadd.f32 %v4640_v25, %v1738_v15  ;;  %v3887_v39 = vld [vmem:[#allocation4 + $0xc0] sm:$0xf] }
  0xf6   :  { %1989 = vmatpush.bf16.msrb.mxu1 %v3516_v42  ;;  %2002 = vmatpush.bf16.msrb.mxu2 %v3644_v43  ;;  %v3580_v42 = vor.u32 %v4310_v29, %v3577_v30  ;;  %v4242_v43 = vld [vmem:[#allocation2 + $0x42c] sm:$0xf]  ;;  %v1739_v46 = vpop.f32.mrf.mxu1  ;;  %v4376_v29 = vld [vmem:[#allocation4 + $0x54] sm:$0xf0]  ;;  %v1673_v30 = vadd.f32 %v4621_v6, %v4615_v61 }
  0xf7   :  { %2015 = vmatpush.bf16.msrb.mxu3 %v3772_v47  ;;  %v4642_v31 = vpop.f32.mrf.mxu3  ;;  %v3708_v47 = vor.u32 %v4342_v32, %v3705_v35  ;;  %v3832_v32 = vor.u32 %v4376_v29, %v3831_v27  ;;  %v3823_v35 = vld [vmem:[#allocation4 + $0x40] sm:$0xf]  ;;  %v4372_v46 = vld [vmem:[#allocation4 + $0x34] sm:$0xf0]  ;;  %v3849_v27 = vld [vmem:[#allocation4 + $0x78] sm:$0xf0] }
  0xf8   :  { %1977 = vmatpush.bf16.msrb.mxu0 %v3372_v53  ;;  %v3308_v53 = vor.u32 %v4242_v43, %v3305_v44  ;;  %v1764_v25 = vadd.f32 %v4642_v31, %v1751_v24  ;;  %v3879_v31 = vld [vmem:[#allocation4 + $0xb0] sm:$0xf]  ;;  %v4382_v24 = vld [vmem:[#allocation4 + $0x84] sm:$0xf0] }
  0xfa   :  { %1990 = vmatpush.bf16.msrb.mxu1 %v3500_v54  ;;  %2003 = vmatpush.bf16.msrb.mxu2 %v3628_v55  ;;  %v4238_v54 = vld [vmem:[#allocation2 + $0x40c] sm:$0xf]  ;;  %v3436_v55 = vor.u32 %v4274_v45, %v3433_v48  ;;  %v3815_v45 = vld [vmem:[#allocation4 + $0x30] sm:$0xf] }
  0xfb   :  { %2016 = vmatpush.bf16.msrb.mxu3 %v3756_v58  ;;  %v3417_v58 = vld [vmem:[#allocation2 + $0x518] sm:$0xf0]  ;;  %v3292_v4 = vor.u32 %v4238_v54, %v3289_v57  ;;  %v3816_v52 = vor.u32 %v4372_v46, %v3815_v45  ;;  %v3807_v54 = vld [vmem:[#allocation4 + $0x20] sm:$0xf] }
  0xfc   :  { %1978 = vmatpush.bf16.msrb.mxu0 %v3356_v16  ;;  %v1752_v59 = vpop.f32.mrf.mxu2  ;;  %v3833_v45 = vld [vmem:[#allocation4 + $0x58] sm:$0xf0] }
  0xfd   :  { %v3871_v59 = vld [vmem:[#allocation4 + $0xa0] sm:$0xf] }
  0xfe   :  { %1991 = vmatpush.bf16.msrb.mxu1 %v3484_v17  ;;  %2004 = vmatpush.bf16.msrb.mxu2 %v3612_v3  ;;  %v3847_v17 = vld [vmem:[#allocation4 + $0x70] sm:$0xf]  ;;  %v4380_v3 = vld [vmem:[#allocation4 + $0x74] sm:$0xf0] }
  0xff   :  { %2017 = vmatpush.bf16.msrb.mxu3 %v3740_v10  ;;  %v1765_v16 = vpop.f32.mrf.mxu3  ;;  %v3420_v10 = vor.u32 %v4270_v63, %v3417_v58  ;;  %v3848_v14 = vor.u32 %v4380_v3, %v3847_v17  ;;  %v4368_v17 = vld [vmem:[#allocation4 + $0x14] sm:$0xf0] }
 0x100   :  { %1979 = vmatpush.bf16.msrb.mxu0 %v3340_v19  ;;  %v3839_v19 = vld [vmem:[#allocation4 + $0x60] sm:$0xf]  ;;  %v3800_v15 = vor.u32 %v4368_v17, %v3799_v1  ;;  %v4369_v1 = vld [vmem:[#allocation4 + $0x24] sm:$0xf]  ;;  %v3809_v17 = vld [vmem:[#allocation4 + $0x28] sm:$0xf0] }
 0x102   :  { %1992 = vmatpush.bf16.msrb.mxu1 %v3468_v20  ;;  %2005 = vmatpush.bf16.msrb.mxu2 %v3596_v21  ;;  %v4378_v20 = vld [vmem:[#allocation4 + $0x64] sm:$0xf0]  ;;  %v3903_v21 = vld [vmem:[#allocation4 + $0xe0] sm:$0xf] }
 0x103   :  { %2018 = vmatpush.bf16.msrb.mxu3 %v3724_v26  ;;  %v3840_v23 = vor.u32 %v4378_v20, %v3839_v19  ;;  %v3904_v26 = vor.u32 %v4394_v22, %v3903_v21  ;;  %v4366_v19 = vld [vmem:[#allocation4 + $0x4] sm:$0xf0]  ;;  %v3855_v20 = vld [vmem:[#allocation4 + $0x80] sm:$0xf] }
 0x104   :  { %1980 = vmatpush.bf16.msrb.mxu0 %v3324_v36  ;;  %v4374_v36 = vld [vmem:[#allocation4 + $0x44] sm:$0xf0] }
 0x105   :  { %v3824_v43 = vor.u32 %v4374_v36, %v3823_v35  ;;  %v4377_v36 = vld [vmem:[#allocation4 + $0x64] sm:$0xf] }
 0x106   :  { %1993 = vmatpush.bf16.msrb.mxu1 %v3452_v41  ;;  %2006 = vmatpush.bf16.msrb.mxu2 %v3580_v42  ;;  %v4390_v41 = vld [vmem:[#allocation4 + $0xc4] sm:$0xf0] }
 0x107   :  { %2019 = vmatpush.bf16.msrb.mxu3 %v3708_v47  ;;  %v2032_v42 = vld [vmem:[#allocation1 + $0x9] sm:$0xff]  ;;  %v3888_v44 = vor.u32 %v4390_v41, %v3887_v39  ;;  %v4388_v47 = vld [vmem:[#allocation4 + $0xb4] sm:$0xf0]  ;;  %v3841_v39 = vld [vmem:[#allocation4 + $0x68] sm:$0xf0] }
 0x108   :  { %1981 = vmatpush.bf16.msrb.mxu0 %v3308_v53  ;;  %v2038_v49 = vpack.i.b16 %v2032_v42, %v2032_v42  ;;  %v4393_v42 = vld [vmem:[#allocation4 + $0xe4] sm:$0xf] }
 0x10a   :  { %1994 = vmatpush.bf16.msrb.mxu1 %v3436_v55  ;;  %2007 = vmatpush.bf16.msrb.mxu2 %v3564_v56  ;;  %v4370_v55 = vld [vmem:[#allocation4 + $0x24] sm:$0xf0]  ;;  %v2040_v58 = vperm.slane %v2038_v49, 0 }
 0x10b   :  { %2020 = vmatpush.bf16.msrb.mxu3 %v3692_v60  ;;  %v4386_v60 = vld [vmem:[#allocation4 + $0xa4] sm:$0xf0]  ;;  %v3808_v9 = vor.u32 %v4370_v55, %v3807_v54  ;;  %v4389_v54 = vld [vmem:[#allocation4 + $0xc4] sm:$0xf]  ;;  %v3889_v55 = vld [vmem:[#allocation4 + $0xc8] sm:$0xf0] }
 0x10c   :  { %1982 = vmatpush.bf16.msrb.mxu0 %v3292_v4  ;;  %v2052_v7 = vunpack.c.l.bf16 %v2040_v58  ;;  %v3817_v58 = vld [vmem:[#allocation4 + $0x38] sm:$0xf0] }
 0x10e   :  { %1995 = vmatpush.bf16.msrb.mxu1 %v3420_v10  ;;  %2008 = vmatpush.bf16.msrb.mxu2 %v3548_v11  ;;  %v1789_v6 = vpop.f32.mrf.mxu1  ;;  %v3863_v10 = vld [vmem:[#allocation4 + $0x90] sm:$0xf]  ;;  %v4384_v11 = vld [vmem:[#allocation4 + $0x94] sm:$0xf0] }
 0x10f   :  { %2021 = vmatpush.bf16.msrb.mxu3 %v3676_v12  ;;  %1983 = vmatmul.bf16.vlgmr.msrb.gmra.mxu0 %v4593_v37  ;;  %v3896_v37 = vor.u32 %v4392_v8, %v3895_v2  ;;  %v4395_v2 = vld [vmem:[#allocation4 + $0xf4] sm:$0xf]  ;;  %v3913_v8 = vld [vmem:[#allocation4 + $0xf8] sm:$0xf0] }
 0x110   :  { %2468 = vmatpush.bf16.msra.mxu0 %v3848_v14  ;;  %v3916_v35 = vor.u32 %v4395_v2, %v3913_v8 }
 0x111   :  { %1996 = vmatmul.bf16.vlgmr.msrb.gmra.mxu1 %v4597_v40  ;;  %2009 = vmatmul.bf16.vlgmr.msrb.gmra.mxu2 %v4591_v34  ;;  %v2031_v40 = vld [vmem:[#allocation1] sm:$0xff]  ;;  %v1686_v34 = vadd.f32 %v4623_v13, %v1673_v30  ;;  %v3880_v13 = vor.u32 %v4388_v47, %v3879_v31  ;;  %v4391_v47 = vld [vmem:[#allocation4 + $0xd4] sm:$0xf] }
 0x112   :  { %2481 = vmatpush.bf16.msra.mxu1 %v3912_v18  ;;  %2022 = vmatmul.bf16.vlgmr.msrb.gmra.mxu3 %v4595_v38  ;;  %v1776_v38 = vpop.f32.mrf.mxu0  ;;  %v2035_v48 = vpack.i.b16 %v2031_v40, %v2031_v40  ;;  %v3791_v18 = vld [vmem:[#allocation4] sm:$0xf] }
 0x113   :  { %v1777_v61 = vadd.f32 %v1776_v38, %v1764_v25  ;;  %v1699_v51 = vadd.f32 %v4625_v28, %v1686_v34  ;;  %v3872_v28 = vor.u32 %v4386_v60, %v3871_v59  ;;  %v3856_v25 = vor.u32 %v4382_v24, %v3855_v20  ;;  %v3905_v34 = vld [vmem:[#allocation4 + $0xe8] sm:$0xf0]  ;;  %v4387_v60 = vld [vmem:[#allocation4 + $0xb4] sm:$0xf]  ;;  %v3865_v20 = vld [vmem:[#allocation4 + $0x98] sm:$0xf0] }
 0x114   :  { %2469 = vmatpush.bf16.msra.mxu0 %v3840_v23  ;;  %v1802_v53 = vpop.f32.mrf.mxu2  ;;  %v2037_v63 = vperm.slane %v2035_v48, 0  ;;  %v3897_v48 = vld [vmem:[#allocation4 + $0xd8] sm:$0xf0]  ;;  %v4365_v24 = vld [vmem:[#allocation4 + $0x4] sm:$0xf] }
 0x115   :  { %v1790_v50 = vadd.f32 %v1789_v6, %v1777_v61  ;;  %v1712_v62 = vadd.f32 %v4627_v33, %v1699_v51  ;;  %v3864_v33 = vor.u32 %v4384_v11, %v3863_v10  ;;  %v3908_v61 = vor.u32 %v4393_v42, %v3905_v34  ;;  %v4375_v6 = vld [vmem:[#allocation4 + $0x54] sm:$0xf]  ;;  %v4428_v42 = vld [vmem:[#allocation4 + $0x1f4] sm:$0xf0] }
 0x116   :  { %2482 = vmatpush.bf16.msra.mxu1 %v3904_v26  ;;  %v1791_v3 = vpop.f32.mrf.mxu1  ;;  %v2051_v5 = vunpack.c.l.bf16 %v2037_v63  ;;  %v4379_v26 = vld [vmem:[#allocation4 + $0x74] sm:$0xf]  ;;  %v3836_v51 = vor.u32 %v4375_v6, %v3833_v45  ;;  %v3812_v11 = vor.u32 %v4369_v1, %v3809_v17  ;;  %v4426_v45 = vld [vmem:[#allocation4 + $0x1e4] sm:$0xf0]  ;;  %v3935_v1 = vld [vmem:[#allocation4 + $0x120] sm:$0xf] }
 0x117   :  { %v1803_v56 = vadd.f32 %v1802_v53, %v1790_v50  ;;  %v1815_v57 = vpop.f32.mrf.mxu3  ;;  %v3825_v53 = vld [vmem:[#allocation4 + $0x48] sm:$0xf0]  ;;  %v4371_v63 = vld [vmem:[#allocation4 + $0x34] sm:$0xf]  ;;  %v4385_v3 = vld [vmem:[#allocation4 + $0xa4] sm:$0xf] }
 0x118   :  { %2470 = vmatpush.bf16.msra.mxu0 %v3832_v32  ;;  %v3792_v32 = vor.u32 %v4366_v19, %v3791_v18  ;;  %v4383_v19 = vld [vmem:[#allocation4 + $0x94] sm:$0xf]  ;;  %v4402_v17 = vld [vmem:[#allocation4 + $0x124] sm:$0xf0] }
 0x119   :  { %v1816_v0 = vadd.f32 %v1815_v57, %v1803_v56  ;;  %v3892_v57 = vor.u32 %v4389_v54, %v3889_v55 }
 0x11a   :  { %2483 = vmatpush.bf16.msra.mxu1 %v3896_v37  ;;  %v1778_v16 = vpop.f32.mrf.mxu0  ;;  %v3852_v37 = vor.u32 %v4379_v26, %v3849_v27  ;;  %v3793_v26 = vld [vmem:[#allocation4 + $0x8] sm:$0xf0]  ;;  %v4381_v27 = vld [vmem:[#allocation4 + $0x84] sm:$0xf] }
 0x11b   :  { %v2027_v4 = vpack.c.bf16 %v1816_v0, %v1712_v62  ;;  %v3881_v62 = vld [vmem:[#allocation4 + $0xb8] sm:$0xf0]  ;;  %v3820_v16 = vor.u32 %v4371_v63, %v3817_v58 }
 0x11c   :  { %2471 = vmatpush.bf16.msra.mxu0 %v3824_v43  ;;  %v1804_v21 = vpop.f32.mrf.mxu2 }
 0x11d   :  { %v2047_v12 = vunpack.c.l.bf16 %v2027_v4  ;;  %v2048_v14 = vunpack.c.h.bf16 %v2027_v4  ;;  %v3873_v4 = vld [vmem:[#allocation4 + $0xa8] sm:$0xf0] }
 0x11e   :  { %2484 = vmatpush.bf16.msra.mxu1 %v3888_v44  ;;  %v3844_v44 = vor.u32 %v4377_v36, %v3841_v39  ;;  %v4412_v36 = vld [vmem:[#allocation4 + $0x174] sm:$0xf0]  ;;  %v4039_v39 = vld [vmem:[#allocation4 + $0x1f0] sm:$0xf] }
 0x11f   :  { %v2055_v22 = vadd.f32 %v2051_v5, %v2047_v12  ;;  %v2056_v23 = vadd.f32 %v2052_v7, %v2048_v14  ;;  %v1817_v29 = vpop.f32.mrf.mxu3  ;;  %v3876_v12 = vor.u32 %v4385_v3, %v3873_v4  ;;  %v4367_v14 = vld [vmem:[#allocation4 + $0x14] sm:$0xf]  ;;  %v3999_v3 = vld [vmem:[#allocation4 + $0x1a0] sm:$0xf]  ;;  %v3936_v4 = vor.u32 %v4402_v17, %v3935_v1  ;;  %v4009_v1 = vld [vmem:[#allocation4 + $0x1b8] sm:$0xf0] }
 0x120   :  { %2472 = vmatpush.bf16.msra.mxu0 %v3816_v52  ;;  %v3900_v52 = vor.u32 %v4391_v47, %v3897_v48  ;;  %v3857_v29 = vld [vmem:[#allocation4 + $0x88] sm:$0xf0]  ;;  %v3959_v48 = vld [vmem:[#allocation4 + $0x150] sm:$0xf]  ;;  %v4401_v17 = vld [vmem:[#allocation4 + $0x124] sm:$0xf] }
 0x121   :  { %v2059_v30 = vpack.c.bf16 %v2056_v23, %v2055_v22  ;;  %v3868_v23 = vor.u32 %v4383_v19, %v3865_v20  ;;  %v4416_v19 = vld [vmem:[#allocation4 + $0x194] sm:$0xf0] }
 0x122   :  { %2485 = vmatpush.bf16.msra.mxu1 %v3880_v13  ;;  %v4373_v13 = vld [vmem:[#allocation4 + $0x44] sm:$0xf] }
 0x123   :  { %v2061_v41 = vunpack.c.l.bf16 %v2059_v30  ;;  %v2062_v40 = vunpack.c.h.bf16 %v2059_v30  ;;  %v3828_v56 = vor.u32 %v4373_v13, %v3825_v53  ;;  %v3796_v30 = vor.u32 %v4365_v24, %v3793_v26  ;;  %v3951_v13 = vld [vmem:[#allocation4 + $0x140] sm:$0xf]  ;;  %v4406_v53 = vld [vmem:[#allocation4 + $0x144] sm:$0xf0] }
 0x124   :  { %2473 = vmatpush.bf16.msra.mxu0 %v3808_v9  ;;  %v3952_v58 = vor.u32 %v4406_v53, %v3951_v13  ;;  %v4398_v24 = vld [vmem:[#allocation4 + $0x104] sm:$0xf0]  ;;  %v3983_v26 = vld [vmem:[#allocation4 + $0x180] sm:$0xf]  ;;  %v4423_v13 = vld [vmem:[#allocation4 + $0x1d4] sm:$0xf] }
 0x125   :  { %v2065_v43 = vmul.f32 0.20019531, %v2061_v41  ;;  %v2066_v38 = vmul.f32 0.20019531, %v2062_v40  ;;  %v4025_v53 = vld [vmem:[#allocation4 + $0x1d8] sm:$0xf0] }
 0x126   :  { %2486 = vmatpush.bf16.msra.mxu1 %v3872_v28  ;;  %v3884_v28 = vor.u32 %v4387_v60, %v3881_v62  ;;  %v3943_v60 = vld [vmem:[#allocation4 + $0x130] sm:$0xf]  ;;  %v4404_v62 = vld [vmem:[#allocation4 + $0x134] sm:$0xf0] }
 0x127   :  { %v2075_v46 = vmax.f32 %v2061_v41, %v2065_v43  ;;  %v2076_v31 = vmax.f32 %v2062_v40, %v2066_v38  ;;  %v4040_v43 = vor.u32 %v4428_v42, %v4039_v39  ;;  %v3967_v38 = vld [vmem:[#allocation4 + $0x160] sm:$0xf] }
 0x128   :  { %2474 = vmatpush.bf16.msra.mxu0 %v3800_v15  ;;  %v3801_v15 = vld [vmem:[#allocation4 + $0x18] sm:$0xf0] }
 0x129   :  { %v2079_v49 = vpack.c.bf16 %v2075_v46, %v2075_v46  ;;  %v2080_v50 = vpack.c.bf16 %v2076_v31, %v2076_v31  ;;  %v3804_v22 = vor.u32 %v4367_v14, %v3801_v15  ;;  %2507 = vmatpush.bf16.msra.mxu3 %v4040_v43  ;;  %v4400_v14 = vld [vmem:[#allocation4 + $0x114] sm:$0xf0]  ;;  %v3991_v15 = vld [vmem:[#allocation4 + $0x190] sm:$0xf]  ;;  %v4409_v43 = vld [vmem:[#allocation4 + $0x164] sm:$0xf] }
 0x12a   :  { %2487 = vmatpush.bf16.msra.mxu1 %v3864_v33  ;;  %v3992_v20 = vor.u32 %v4416_v19, %v3991_v15 }
 0x12c   :  { %2475 = vmatpush.bf16.msra.mxu0 %v3792_v32  ;;  %v1828_v59 = vpop.f32.mrf.mxu0  ;;  %v3860_v32 = vor.u32 %v4381_v27, %v3857_v29  ;;  %v4414_v27 = vld [vmem:[#allocation4 + $0x184] sm:$0xf0] }
 0x12e   :  { %2488 = vmatpush.bf16.msra.mxu1 %v3856_v25  ;;  %v1841_v0 = vpop.f32.mrf.mxu1 }
 0x12f   :  { %2476 = vmatmul.bf16.vlgmr.msra.gmra.mxu0 %v2079_v49  ;;  %v1842_v9 = vadd.f32 %v1841_v0, %v1828_v59  ;;  %v4007_v0 = vld [vmem:[#allocation4 + $0x1b0] sm:$0xf] }
 0x130   :  { %2520 = vmatpush.bf16.msrb.mxu0 %v3852_v37 }
 0x131   :  { %2489 = vmatmul.bf16.vlgmr.msra.gmra.mxu1 %v2080_v50 }
 0x132   :  { %2533 = vmatpush.bf16.msrb.mxu1 %v3916_v35  ;;  %v3975_v35 = vld [vmem:[#allocation4 + $0x170] sm:$0xf] }
 0x133   :  { %v3976_v40 = vor.u32 %v4412_v36, %v3975_v35  ;;  %v4427_v35 = vld [vmem:[#allocation4 + $0x1f4] sm:$0xf] }
 0x134   :  { %2521 = vmatpush.bf16.msrb.mxu0 %v3844_v44  ;;  %v1854_v5 = vpop.f32.mrf.mxu2  ;;  %v1830_v18 = vpop.f32.mrf.mxu0  ;;  %v4410_v44 = vld [vmem:[#allocation4 + $0x164] sm:$0xf0] }
 0x135   :  { %v1855_v7 = vadd.f32 %v1854_v5, %v1842_v9  ;;  %2494 = vmatpush.bf16.msra.mxu2 %v3976_v40  ;;  %v3968_v6 = vor.u32 %v4410_v44, %v3967_v38  ;;  %v4420_v9 = vld [vmem:[#allocation4 + $0x1b4] sm:$0xf0]  ;;  %v4418_v5 = vld [vmem:[#allocation4 + $0x1a4] sm:$0xf0]  ;;  %v4041_v40 = vld [vmem:[#allocation4 + $0x1f8] sm:$0xf0] }
 0x136   :  { %2534 = vmatpush.bf16.msrb.mxu1 %v3908_v61  ;;  %v1843_v21 = vpop.f32.mrf.mxu1  ;;  %v4031_v61 = vld [vmem:[#allocation4 + $0x1e0] sm:$0xf]  ;;  %v4044_v42 = vor.u32 %v4427_v35, %v4041_v40  ;;  %v3969_v38 = vld [vmem:[#allocation4 + $0x168] sm:$0xf0]  ;;  %v4425_v44 = vld [vmem:[#allocation4 + $0x1e4] sm:$0xf] }
 0x137   :  { %v1867_v10 = vpop.f32.mrf.mxu3  ;;  %v4032_v31 = vor.u32 %v4426_v45, %v4031_v61  ;;  %v3972_v61 = vor.u32 %v4409_v43, %v3969_v38 }
 0x138   :  { %2522 = vmatpush.bf16.msrb.mxu0 %v3836_v51  ;;  %v4657_v33 = vadd.f32 %v1867_v10, %v1855_v7  ;;  %v4000_v10 = vor.u32 %v4418_v5, %v3999_v3  ;;  %v3937_v3 = vld [vmem:[#allocation4 + $0x128] sm:$0xf0]  ;;  %v4417_v5 = vld [vmem:[#allocation4 + $0x1a4] sm:$0xf] }
 0x139   :  { %2495 = vmatpush.bf16.msra.mxu2 %v3968_v6  ;;  %2508 = vmatpush.bf16.msra.mxu3 %v4032_v31  ;;  %v4033_v6 = vld [vmem:[#allocation4 + $0x1e8] sm:$0xf0]  ;;  %v4671_v31 = vld [vmem:[#allocation1 + $0x1b] sm:$0xff] }
 0x13a   :  { %2535 = vmatpush.bf16.msrb.mxu1 %v3900_v52  ;;  %v4424_v52 = vld [vmem:[#allocation4 + $0x1d4] sm:$0xf0] }
 0x13c   :  { %2523 = vmatpush.bf16.msrb.mxu0 %v3828_v56  ;;  %v1856_v2 = vpop.f32.mrf.mxu2  ;;  %v4015_v56 = vld [vmem:[#allocation4 + $0x1c0] sm:$0xf] }
 0x13e   :  { %2536 = vmatpush.bf16.msrb.mxu1 %v3892_v57  ;;  %v4422_v57 = vld [vmem:[#allocation4 + $0x1c4] sm:$0xf0] }
 0x13f   :  { %v1869_v8 = vpop.f32.mrf.mxu3  ;;  %v4016_v59 = vor.u32 %v4422_v57, %v4015_v56  ;;  %v3953_v56 = vld [vmem:[#allocation4 + $0x148] sm:$0xf0]  ;;  %v4421_v57 = vld [vmem:[#allocation4 + $0x1c4] sm:$0xf] }
 0x140   :  { %2524 = vmatpush.bf16.msrb.mxu0 %v3820_v16  ;;  %v3944_v16 = vor.u32 %v4404_v62, %v3943_v60  ;;  %v3984_v8 = vor.u32 %v4414_v27, %v3983_v26  ;;  %v4403_v62 = vld [vmem:[#allocation4 + $0x134] sm:$0xf]  ;;  %v4397_v27 = vld [vmem:[#allocation4 + $0x104] sm:$0xf] }
 0x142   :  { %2537 = vmatpush.bf16.msrb.mxu1 %v3884_v28  ;;  %v4008_v28 = vor.u32 %v4420_v9, %v4007_v0  ;;  %v3945_v0 = vld [vmem:[#allocation4 + $0x138] sm:$0xf0]  ;;  %v4419_v9 = vld [vmem:[#allocation4 + $0x1b4] sm:$0xf] }
 0x144   :  { %2525 = vmatpush.bf16.msrb.mxu0 %v3812_v11 }
 0x146   :  { %2538 = vmatpush.bf16.msrb.mxu1 %v3876_v12  ;;  %v3927_v12 = vld [vmem:[#allocation4 + $0x110] sm:$0xf] }
 0x147   :  { %v3928_v18 = vor.u32 %v4400_v14, %v3927_v12 }
 0x148   :  { %2526 = vmatpush.bf16.msrb.mxu0 %v3804_v22 }
 0x14a   :  { %2539 = vmatpush.bf16.msrb.mxu1 %v3868_v23  ;;  %v3919_v23 = vld [vmem:[#allocation4 + $0x100] sm:$0xf] }
 0x14b   :  { %v3920_v2 = vor.u32 %v4398_v24, %v3919_v23  ;;  %v3929_v23 = vld [vmem:[#allocation4 + $0x118] sm:$0xf0]  ;;  %v4415_v24 = vld [vmem:[#allocation4 + $0x194] sm:$0xf] }
 0x14c   :  { %2527 = vmatpush.bf16.msrb.mxu0 %v3796_v30  ;;  %v4659_v25 = vpop.f32.mrf.mxu0  ;;  %v4411_v30 = vld [vmem:[#allocation4 + $0x174] sm:$0xf] }
 0x14d   :  { %v1881_v12 = vadd.f32 %v4659_v25, %v4657_v33  ;;  %v2044_v33 = vpack.i.b16 %v4671_v31, %v4671_v31 }
 0x14e   :  { %2540 = vmatpush.bf16.msrb.mxu1 %v3860_v32  ;;  %v4661_v37 = vpop.f32.mrf.mxu1  ;;  %v3977_v32 = vld [vmem:[#allocation4 + $0x178] sm:$0xf0] }
 0x14f   :  { %2528 = vmatmul.bf16.vlgmr.msrb.gmra.mxu0 %v2079_v49  ;;  %v4408_v49 = vld [vmem:[#allocation4 + $0x154] sm:$0xf0]  ;;  %v3980_v39 = vor.u32 %v4411_v30, %v3977_v32  ;;  %v1894_v19 = vadd.f32 %v4661_v37, %v1881_v12  ;;  %v3985_v30 = vld [vmem:[#allocation4 + $0x188] sm:$0xf0]  ;;  %v2046_v43 = vperm.slane %v2044_v33, 0 }
 0x150   :  { %v3960_v51 = vor.u32 %v4408_v49, %v3959_v48  ;;  %v2147_v49 = vld [vmem:[%s4744_s4] sm:$0x3]  ;;  %v4443_v12 = vld [vmem:[%s4745_s5 + $0x70] sm:$0xff] }
 0x151   :  { %2541 = vmatmul.bf16.vlgmr.msrb.gmra.mxu1 %v2080_v50  ;;  %v4023_v50 = vld [vmem:[#allocation4 + $0x1d0] sm:$0xf]  ;;  %v4437_v33 = vld [vmem:[%s4745_s5 + $0x40] sm:$0xff] }
 0x152   :  { %v4024_v55 = vor.u32 %v4424_v52, %v4023_v50  ;;  %2496 = vmatpush.bf16.msra.mxu2 %v3960_v51  ;;  %v4407_v50 = vld [vmem:[#allocation4 + $0x154] sm:$0xf]  ;;  %v3961_v51 = vld [vmem:[#allocation4 + $0x158] sm:$0xf0] }
 0x153   :  { %v3964_v52 = vor.u32 %v4407_v50, %v3961_v51 }
 0x154   :  { %v4663_v41 = vpop.f32.mrf.mxu2  ;;  %v1882_v46 = vpop.f32.mrf.mxu0  ;;  %2509 = vmatpush.bf16.msra.mxu3 %v4024_v55  ;;  %v4405_v55 = vld [vmem:[#allocation4 + $0x144] sm:$0xf] }
 0x155   :  { %v4669_v46 = vld [vmem:[#allocation1 + $0x12] sm:$0xff]  ;;  %v1907_v37 = vadd.f32 %v4663_v41, %v1894_v19 }
 0x156   :  { %v1895_v47 = vpop.f32.mrf.mxu1  ;;  %2497 = vmatpush.bf16.msra.mxu2 %v3952_v58  ;;  %2574 = vst [vmem:[#allocation1] ss:$9 sm:$0xff] %v2147_v49  ;;  %v3956_v58 = vor.u32 %v4405_v55, %v3953_v56  ;;  %v2041_v26 = vpack.i.b16 %v4669_v46, %v4669_v46  ;;  %v4440_v19 = vld [vmem:[%s4745_s5 + $0x58] sm:$0xff] }
 0x157   :  { %v4665_v34 = vpop.f32.mrf.mxu3  ;;  %v4036_v47 = vor.u32 %v4425_v44, %v4033_v6 }
 0x158   :  { %2510 = vmatpush.bf16.msra.mxu3 %v4016_v59  ;;  %v1920_v6 = vadd.f32 %v4665_v34, %v1907_v37 }
 0x15a   :  { %2498 = vmatpush.bf16.msra.mxu2 %v3944_v16 }
 0x15c   :  { %v1908_v54 = vpop.f32.mrf.mxu2  ;;  %2511 = vmatpush.bf16.msra.mxu3 %v4008_v28  ;;  %v3948_v28 = vor.u32 %v4403_v62, %v3945_v0 }
 0x15d   :  { %v4028_v54 = vor.u32 %v4423_v13, %v4025_v53 }
 0x15e   :  { %2499 = vmatpush.bf16.msra.mxu2 %v3936_v4  ;;  %v4012_v4 = vor.u32 %v4419_v9, %v4009_v1 }
 0x15f   :  { %v1921_v63 = vpop.f32.mrf.mxu3 }
 0x160   :  { %2512 = vmatpush.bf16.msra.mxu3 %v4000_v10  ;;  %v4017_v63 = vld [vmem:[#allocation4 + $0x1c8] sm:$0xf0] }
 0x161   :  { %v4020_v60 = vor.u32 %v4421_v57, %v4017_v63  ;;  %v4001_v10 = vld [vmem:[#allocation4 + $0x1a8] sm:$0xf0] }
 0x162   :  { %2500 = vmatpush.bf16.msra.mxu2 %v3928_v18  ;;  %v4004_v15 = vor.u32 %v4417_v5, %v4001_v10  ;;  %v4444_v5 = vld [vmem:[%s4745_s5 + $0x78] sm:$0xff]  ;;  %v4435_v10 = vld [vmem:[%s4745_s5 + $0x30] sm:$0xff] }
 0x163   :  { %2745 = vmatpush.bf16.msra.mxu1 %v4444_v5 }
 0x164   :  { %2513 = vmatpush.bf16.msra.mxu3 %v3992_v20 }
 0x166   :  { %2501 = vmatpush.bf16.msra.mxu2 %v3920_v2 }
 0x167   :  { %2746 = vmatpush.bf16.msra.mxu1 %v4443_v12 }
 0x168   :  { %2514 = vmatpush.bf16.msra.mxu3 %v3984_v8  ;;  %v4413_v8 = vld [vmem:[#allocation4 + $0x184] sm:$0xf] }
 0x169   :  { %v3988_v44 = vor.u32 %v4413_v8, %v3985_v30  ;;  %v2576_v8 = vld [vmem:[#allocation1 + $0x9] sm:$0xff] }
 0x16a   :  { %2546 = vmatpush.bf16.msrb.mxu2 %v3980_v39  ;;  %v2580_v37 = vpack.i.b16 %v2576_v8, %v2576_v8 }
 0x16c   :  { %v1932_v7 = vpop.f32.mrf.mxu0  ;;  %2559 = vmatpush.bf16.msrb.mxu3 %v4044_v42  ;;  %v2043_v42 = vperm.slane %v2041_v26, 0  ;;  %v4429_v26 = vld [vmem:[%s4745_s5] sm:$0xff] }
 0x16e   :  { %v1945_v11 = vpop.f32.mrf.mxu1  ;;  %2547 = vmatpush.bf16.msrb.mxu2 %v3972_v61  ;;  %v2053_v31 = vunpack.c.l.bf16 %v2043_v42  ;;  %v2582_v42 = vperm.slane %v2580_v37, 0 }
 0x16f   :  { %v1946_v59 = vadd.f32 %v1945_v11, %v1932_v7  ;;  %v3940_v7 = vor.u32 %v4401_v17, %v3937_v3 }
 0x170   :  { %2560 = vmatpush.bf16.msrb.mxu3 %v4036_v47  ;;  %v2054_v47 = vunpack.c.l.bf16 %v2046_v43 }
 0x172   :  { %2548 = vmatpush.bf16.msrb.mxu2 %v3964_v52 }
 0x174   :  { %v1958_v21 = vpop.f32.mrf.mxu2  ;;  %v1934_v29 = vpop.f32.mrf.mxu0  ;;  %2561 = vmatpush.bf16.msrb.mxu3 %v4028_v54 }
 0x175   :  { %v1959_v16 = vadd.f32 %v1958_v21, %v1946_v59  ;;  %v4399_v21 = vld [vmem:[#allocation4 + $0x114] sm:$0xf]  ;;  %v3921_v29 = vld [vmem:[#allocation4 + $0x108] sm:$0xf0] }
 0x176   :  { %v1947_v36 = vpop.f32.mrf.mxu1  ;;  %2549 = vmatpush.bf16.msrb.mxu2 %v3956_v58  ;;  %v3932_v25 = vor.u32 %v4399_v21, %v3929_v23  ;;  %v4439_v21 = vld [vmem:[%s4745_s5 + $0x50] sm:$0xff]  ;;  %v4430_v23 = vld [vmem:[%s4745_s5 + $0x8] sm:$0xff] }
 0x177   :  { %v4667_v22 = vpop.f32.mrf.mxu3  ;;  %v3924_v36 = vor.u32 %v4397_v27, %v3921_v29 }
 0x178   :  { %2562 = vmatpush.bf16.msrb.mxu3 %v4020_v60  ;;  %v1972_v11 = vadd.f32 %v4667_v22, %v1959_v16  ;;  %v3993_v22 = vld [vmem:[#allocation4 + $0x198] sm:$0xf0] }
 0x179   :  { %v3996_v2 = vor.u32 %v4415_v24, %v3993_v22  ;;  %v4438_v24 = vld [vmem:[%s4745_s5 + $0x48] sm:$0xff] }
 0x17a   :  { %2550 = vmatpush.bf16.msrb.mxu2 %v3948_v28 }
 0x17c   :  { %v1960_v45 = vpop.f32.mrf.mxu2  ;;  %2563 = vmatpush.bf16.msrb.mxu3 %v4012_v4  ;;  %v4436_v4 = vld [vmem:[%s4745_s5 + $0x38] sm:$0xff] }
 0x17d   :  { %2732 = vmatpush.bf16.msra.mxu0 %v4436_v4 }
 0x17e   :  { %2551 = vmatpush.bf16.msrb.mxu2 %v3940_v7  ;;  %v4434_v7 = vld [vmem:[%s4745_s5 + $0x28] sm:$0xff] }
 0x17f   :  { %v1973_v48 = vpop.f32.mrf.mxu3 }
 0x180   :  { %2564 = vmatpush.bf16.msrb.mxu3 %v4004_v15  ;;  %v4441_v15 = vld [vmem:[%s4745_s5 + $0x60] sm:$0xff] }
 0x181   :  { %2733 = vmatpush.bf16.msra.mxu0 %v4435_v10 }
 0x182   :  { %2552 = vmatpush.bf16.msrb.mxu2 %v3932_v25 }
 0x184   :  { %2565 = vmatpush.bf16.msrb.mxu3 %v3996_v2  ;;  %v2575_v2 = vld [vmem:[#allocation1] sm:$0xff] }
 0x185   :  { %2734 = vmatpush.bf16.msra.mxu0 %v4434_v7  ;;  %v2577_v30 = vpack.i.b16 %v2575_v2, %v2575_v2 }
 0x186   :  { %2553 = vmatpush.bf16.msrb.mxu2 %v3924_v36 }
 0x188   :  { %2566 = vmatpush.bf16.msrb.mxu3 %v3988_v44 }
 0x18c   :  { %v1984_v14 = vpop.f32.mrf.mxu0 }
 0x18d   :  { %v1985_v20 = vadd.f32 %v1984_v14, %v1972_v11  ;;  %v4442_v11 = vld [vmem:[%s4745_s5 + $0x68] sm:$0xff]  ;;  %v4433_v14 = vld [vmem:[%s4745_s5 + $0x20] sm:$0xff] }
 0x18e   :  { %v1997_v18 = vpop.f32.mrf.mxu1  ;;  %2747 = vmatpush.bf16.msra.mxu1 %v4442_v11  ;;  %2735 = vmatpush.bf16.msra.mxu0 %v4433_v14 }
 0x18f   :  { %v1998_v32 = vadd.f32 %v1997_v18, %v1985_v20  ;;  %v4432_v18 = vld [vmem:[%s4745_s5 + $0x18] sm:$0xff]  ;;  %v4431_v20 = vld [vmem:[%s4745_s5 + $0x10] sm:$0xff] }
 0x192   :  { %2748 = vmatpush.bf16.msra.mxu1 %v4441_v15  ;;  %2736 = vmatpush.bf16.msra.mxu0 %v4432_v18 }
 0x194   :  { %v2010_v35 = vpop.f32.mrf.mxu2  ;;  %v1986_v38 = vpop.f32.mrf.mxu0 }
 0x195   :  { %v2011_v39 = vadd.f32 %v2010_v35, %v1998_v32  ;;  %v2023_v40 = vpop.f32.mrf.mxu3 }
 0x196   :  { %v1999_v61 = vpop.f32.mrf.mxu1  ;;  %2749 = vmatpush.bf16.msra.mxu1 %v4440_v19  ;;  %2737 = vmatpush.bf16.msra.mxu0 %v4431_v20 }
 0x197   :  { %v2024_v45 = vadd.f32 %v2023_v40, %v2011_v39  ;;  %v2579_v40 = vperm.slane %v2577_v30, 0 }
 0x199   :  { %v2028_v46 = vpack.c.bf16 %v2024_v45, %v1920_v6  ;;  %v2585_v61 = vunpack.c.l.bf16 %v2579_v40  ;;  %v2586_v6 = vunpack.c.l.bf16 %v2582_v42 }
 0x19a   :  { %2750 = vmatpush.bf16.msra.mxu1 %v4439_v21  ;;  %2738 = vmatpush.bf16.msra.mxu0 %v4430_v23 }
 0x19b   :  { %v2049_v41 = vunpack.c.l.bf16 %v2028_v46  ;;  %v2050_v48 = vunpack.c.h.bf16 %v2028_v46 }
 0x19c   :  { %v2012_v49 = vpop.f32.mrf.mxu2 }
 0x19d   :  { %v2057_v50 = vadd.f32 %v2053_v31, %v2049_v41  ;;  %v2058_v51 = vadd.f32 %v2054_v47, %v2050_v48  ;;  %v2025_v52 = vpop.f32.mrf.mxu3 }
 0x19e   :  { %2751 = vmatpush.bf16.msra.mxu1 %v4438_v24  ;;  %2739 = vmatpush.bf16.msra.mxu0 %v4429_v26 }
 0x19f   :  { %v2060_v13 = vpack.c.bf16 %v2058_v51, %v2057_v50 }
 0x1a1   :  { %v2063_v53 = vunpack.c.l.bf16 %v2060_v13  ;;  %v2064_v54 = vunpack.c.h.bf16 %v2060_v13 }
 0x1a2   :  { %2752 = vmatpush.bf16.msra.mxu1 %v4437_v33 }
 0x1a3   :  { %v2067_v55 = vmul.f32 0.20019531, %v2063_v53  ;;  %v2068_v56 = vmul.f32 0.20019531, %v2064_v54 }
 0x1a5   :  { %v2077_v57 = vmax.f32 %v2063_v53, %v2067_v55  ;;  %v2078_v63 = vmax.f32 %v2064_v54, %v2068_v56 }
 0x1a7   :  { %v2081_v34 = vpack.c.bf16 %v2077_v57, %v2077_v57  ;;  %v2082_v58 = vpack.c.bf16 %v2078_v63, %v2078_v63  ;;  %v2633_v57 = vld [vmem:[%s4746_s6] sm:$0x1] }
 0x1a8   :  { %v2634_v63 = vunpack.c.l.bf16 %v2633_v57 }
 0x1a9   :  { %2502 = vmatmul.bf16.vlgmr.msra.gmra.mxu2 %v2081_v34  ;;  %2515 = vmatmul.bf16.vlgmr.msra.gmra.mxu3 %v2082_v58 }
 0x1ac   :  { %v2477_v59 = vpop.f32.mrf.mxu0 }
 0x1ae   :  { %v2490_v60 = vpop.f32.mrf.mxu1 }
 0x1af   :  { %v2491_v62 = vadd.f32 %v2490_v60, %v2477_v59 }
 0x1b4   :  { %v2479_v0 = vpop.f32.mrf.mxu0 }
 0x1b6   :  { %v2492_v9 = vpop.f32.mrf.mxu1 }
 0x1b9   :  { %2554 = vmatmul.bf16.vlgmr.msrb.gmra.mxu2 %v2081_v34  ;;  %2567 = vmatmul.bf16.vlgmr.msrb.gmra.mxu3 %v2082_v58  ;;  %v2635_v34 = vperm.slane %v2634_v63, 0 }
 0x1cc   :  { %v2529_v16 = vpop.f32.mrf.mxu0 }
 0x1ce   :  { %v2542_v28 = vpop.f32.mrf.mxu1 }
 0x1cf   :  { %v2543_v1 = vadd.f32 %v2542_v28, %v2529_v16 }
 0x1d4   :  { %v2531_v17 = vpop.f32.mrf.mxu0 }
 0x1d6   :  { %v2544_v3 = vpop.f32.mrf.mxu1 }
 0x22c   :  { %v2503_v25 = vpop.f32.mrf.mxu2  ;;  %v2516_v22 = vpop.f32.mrf.mxu3 }
 0x22d   :  { %v2504_v32 = vadd.f32 %v2503_v25, %v2491_v62 }
 0x22f   :  { %v2517_v43 = vadd.f32 %v2516_v22, %v2504_v32 }
 0x234   :  { %v2505_v27 = vpop.f32.mrf.mxu2  ;;  %v2518_v29 = vpop.f32.mrf.mxu3 }
 0x23c   :  { %v2555_v35 = vpop.f32.mrf.mxu2  ;;  %v2568_v36 = vpop.f32.mrf.mxu3 }
 0x23d   :  { %v2556_v39 = vadd.f32 %v2555_v35, %v2543_v1 }
 0x23f   :  { %v2569_v38 = vadd.f32 %v2568_v36, %v2556_v39 }
 0x241   :  { %v2572_v44 = vpack.c.bf16 %v2569_v38, %v2517_v43 }
 0x243   :  { %v2583_v45 = vunpack.c.l.bf16 %v2572_v44  ;;  %v2584_v46 = vunpack.c.h.bf16 %v2572_v44 }
 0x244   :  { %v2557_v31 = vpop.f32.mrf.mxu2  ;;  %v2570_v47 = vpop.f32.mrf.mxu3 }
 0x245   :  { %v2587_v41 = vadd.f32 %v2585_v61, %v2583_v45  ;;  %v2588_v48 = vadd.f32 %v2586_v6, %v2584_v46 }
 0x247   :  { %v2589_v49 = vpack.c.bf16 %v2588_v48, %v2587_v41 }
 0x249   :  { %v2590_v50 = vunpack.c.l.bf16 %v2589_v49  ;;  %v2591_v51 = vunpack.c.h.bf16 %v2589_v49 }
 0x24b   :  { %v2592_v52 = vmul.f32 0.20019531, %v2590_v50  ;;  %v2593_v13 = vmul.f32 0.20019531, %v2591_v51 }
 0x24d   :  { %v2597_v53 = vmax.f32 %v2590_v50, %v2592_v52  ;;  %v2598_v54 = vmax.f32 %v2591_v51, %v2593_v13 }
 0x24f   :  { %v2599_v55 = vpack.c.bf16 %v2597_v53, %v2597_v53  ;;  %v2600_v56 = vpack.c.bf16 %v2598_v54, %v2598_v54 }
 0x251   :  { %2740 = vmatmul.bf16.vlgmr.msra.gmra.mxu0 %v2599_v55  ;;  %2753 = vmatmul.bf16.vlgmr.msra.gmra.mxu1 %v2600_v56 }
 0x2ce   :  { %v2741_v58 = vpop.f32.mrf.mxu0  ;;  %v2754_v59 = vpop.f32.mrf.mxu1 }
 0x2cf   :  { %v2742_v60 = vadd.f32 %v2741_v58, %v2635_v34 }
 0x2d1   :  { %v2755_v62 = vadd.f32 %v2754_v59, %v2742_v60 }
 0x2d3   :  { %2758 = vst [vmem:[%s4747_s7] sm:$0xff] %v2755_v62 }
 0x2d6   :  { %v2743_v0 = vpop.f32.mrf.mxu0  ;;  %v2756_v9 = vpop.f32.mrf.mxu1 }
 0x2d7   :  { %2763 = vsyncpa [#allocation3], 1 }
 0x2d8   :  { %2764 = vsyncpa [#allocation5], 1 }

</bundles_post_ra>
